<compile_context>
chip_gen: v5e
topology: v5e:2x2
jax: 0.10.0
libtpu: 0.0.40
codegen_flags: <defaults>
</compile_context>

<pallas_src>
import jax
import jax.numpy as jnp
from jax import lax
from jax.experimental import pallas as pl
from jax.experimental.pallas import tpu as pltpu


# Dims implied by the module (Linear(32*28, 128) => input length 250, 63 channels).
C_IN, L_IN = 63, 250
C1, K1, S1, P1 = 10, 5, 1, 2      # L: 250 -> 250
C2, K2, S2, P2 = 8, 5, 3, 2       # L: 250 -> 84
C3, K3, S3, P3 = 32, 3, 3, 1      # L: 84  -> 28
C4, K4, S4, P4 = 32, 3, 1, 1      # L: 28  -> 28
L1, L2, L3, L4 = 250, 84, 28, 28
F1, F2 = 128, 1


def _dot(a, b):
    return jnp.dot(a, b, preferred_element_type=jnp.float32)


# ----------------------------- Pallas kernel ------------------------------ #

def eeg_kernel(xcol_ref, w1_ref, w2_ref, g2_ref, w3_ref, g3_ref, w4_ref,
               w5_ref, w6_ref, bias_ref, out_ref):
    f32 = jnp.float32
    bp = bias_ref[...]                        # (6, 128) packed biases
    b1 = bp[0:1, 0:C1]
    b2 = bp[1:2, 0:C2]
    b3 = bp[2:3, 0:C3]
    b4 = bp[3:4, 0:C4]
    b5 = bp[4:5, 0:F1]
    b6 = bp[5:6, 0:F2]

    # ---- Conv1 (k5,s1,p2): im2col'd in the wrapper -> ONE matmul ----------
    xc = xcol_ref[0]                          # (250, 315)
    h1 = jnp.maximum(_dot(xc, w1_ref[...]) + b1, 0.0)            # (250, 10)

    # ---- Conv2 (k5,s3,p2): stride-1 conv via shifted slices, then ----------
    #      stride-3 subsample with a 0/1 selection matmul (MXU, not strided slicing).
    h1p = jnp.concatenate(
        [jnp.zeros((P2, C1), f32), h1, jnp.zeros((P2, C1), f32)], axis=0)   # (254, 10)
    z2 = _dot(h1p[0:L1, :], w2_ref[0])
    for j in range(1, K2):
        z2 = z2 + _dot(h1p[j:j + L1, :], w2_ref[j])              # (250, 8)
    h2 = jnp.maximum(_dot(g2_ref[...], z2) + b2, 0.0)            # (84, 8)

    # ---- Conv3 (k3,s3,p1): same pattern -------------------------------------
    h2p = jnp.concatenate(
        [jnp.zeros((P3, C2), f32), h2, jnp.zeros((P3, C2), f32)], axis=0)   # (86, 8)
    z3 = _dot(h2p[0:L2, :], w3_ref[0])
    for j in range(1, K3):
        z3 = z3 + _dot(h2p[j:j + L2, :], w3_ref[j])              # (84, 32)
    h3 = jnp.maximum(_dot(g3_ref[...], z3) + b3, 0.0)            # (28, 32)

    # ---- Conv4 (k3,s1,p1): shifted slices only ------------------------------
    h3p = jnp.concatenate(
        [jnp.zeros((P4, C3), f32), h3, jnp.zeros((P4, C3), f32)], axis=0)   # (30, 32)
    z4 = _dot(h3p[0:L3, :], w4_ref[0])
    for j in range(1, K4):
        z4 = z4 + _dot(h3p[j:j + L3, :], w4_ref[j])              # (28, 32)
    h4 = jnp.maximum(z4 + b4, 0.0)                               # (28, 32)

    # ---- FC1 (32*28 -> 128): contract (position, channel) without an --------
    #      in-kernel flatten reshape; fully unrolled per-position matmuls.
    acc = _dot(h4[0:1, :], w5_ref[0])                            # (1, 128)
    for l in range(1, L4):
        acc = acc + _dot(h4[l:l + 1, :], w5_ref[l])
    h5 = jnp.maximum(acc + b5, 0.0)                              # (1, 128)

    # ---- FC2 + sigmoid -------------------------------------------------------
    logit = _dot(h5, w6_ref[...]) + b6                           # (1, 1)
    out_ref[0] = jax.nn.sigmoid(logit)


# ------------------------------- wrapper ----------------------------------- #

def eeg_model_forward(x, params):
    """x: (B, 63, 250) float32 -> (B, 1) sigmoid probabilities."""
    B = x.shape[0]
    f32 = jnp.float32
    x = x.astype(f32)

    # Layer-1 im2col on the host side (pure layout; gives the kernel one big matmul).
    xt = jnp.transpose(x, (0, 2, 1))                              # (B, 250, 63)
    xp = jnp.pad(xt, ((0, 0), (P1, P1), (0, 0)))                  # (B, 254, 63)
    xcol = jnp.concatenate([xp[:, j:j + L1, :] for j in range(K1)],
                           axis=2)                                # (B, 250, 315)

    # Weight re-layout to right-multiply, channel-last form.
    w1 = jnp.transpose(params["conv1_w"], (2, 1, 0)).reshape(K1 * C_IN, C1)  # (315, 10)
    w2 = jnp.transpose(params["conv2_w"], (2, 1, 0))              # (5, 10, 8)
    w3 = jnp.transpose(params["conv3_w"], (2, 1, 0))              # (3, 8, 32)
    w4 = jnp.transpose(params["conv4_w"], (2, 1, 0))              # (3, 32, 32)
    w5 = jnp.transpose(params["fc1_w"].reshape(F1, C4, L4), (2, 1, 0))       # (28, 32, 128)
    w6 = jnp.transpose(params["fc2_w"], (1, 0))                   # (128, 1)

    # Stride-3 subsampling as 0/1 selection matrices (run on the idle MXU).
    g2 = (jnp.arange(L1)[None, :] == S2 * jnp.arange(L2)[:, None]).astype(f32)  # (84, 250)
    g3 = (jnp.arange(L2)[None, :] == S3 * jnp.arange(L3)[:, None]).astype(f32)  # (28, 84)

    # Pack all 6 biases into one (6, 128) block -> one DMA at kernel entry.
    def _row(b):
        return jnp.pad(b, (0, 128 - b.shape[0]))[None, :]
    bias_pack = jnp.concatenate(
        [_row(params["conv1_b"]), _row(params["conv2_b"]),
         _row(params["conv3_b"]), _row(params["conv4_b"]),
         _row(params["fc1_b"]), _row(params["fc2_b"])], axis=0)   # (6, 128)

    def full(a):
        nd = a.ndim
        return pl.BlockSpec(a.shape, lambda b, _nd=nd: (0,) * _nd)

    weights = (w1, w2, g2, w3, g3, w4, w5, w6, bias_pack)

    out = pl.pallas_call(
        eeg_kernel,
        out_shape=jax.ShapeDtypeStruct((B, 1, 1), f32),
        grid=(B,),
        in_specs=[pl.BlockSpec((1, L1, K1 * C_IN), lambda b: (b, 0, 0))]
                 + [full(w) for w in weights],
        out_specs=pl.BlockSpec((1, 1, 1), lambda b: (b, 0, 0)),
        compiler_params=pltpu.CompilerParams(
            dimension_semantics=("parallel",)),
    )(xcol, *weights)
    return out.reshape(B, 1)


# --------------------------- pure-JAX reference ---------------------------- #

def _conv1d_ncl(x, w, b, stride, pad):
    y = lax.conv_general_dilated(
        x, w, window_strides=(stride,), padding=[(pad, pad)],
        dimension_numbers=("NCH", "OIH", "NCH"),
        precision=lax.Precision.HIGHEST)
    return y + b[None, :, None]


def eeg_model_reference(x, params):
    hi = lax.Precision.HIGHEST
    h = jnp.maximum(_conv1d_ncl(x, params["conv1_w"], params["conv1_b"], S1, P1), 0.0)
    h = jnp.maximum(_conv1d_ncl(h, params["conv2_w"], params["conv2_b"], S2, P2), 0.0)
    h = jnp.maximum(_conv1d_ncl(h, params["conv3_w"], params["conv3_b"], S3, P3), 0.0)
    h = jnp.maximum(_conv1d_ncl(h, params["conv4_w"], params["conv4_b"], S4, P4), 0.0)
    h = h.reshape(h.shape[0], -1)                                 # PyTorch Flatten order
    h = jnp.maximum(jnp.dot(h, params["fc1_w"].T, precision=hi) + params["fc1_b"], 0.0)
    h = jnp.dot(h, params["fc2_w"].T, precision=hi) + params["fc2_b"]
    return jax.nn.sigmoid(h)


# --------------------------------- main ------------------------------------ #

if __name__ == "__main__":
    B = 2
    key = jax.random.PRNGKey(0)
    ks = jax.random.split(key, 13)

    def u(k, shape, fan_in):
        s = 1.0 / jnp.sqrt(float(fan_in))
        return jax.random.uniform(k, shape, jnp.float32, -s, s)

    params = {
        "conv1_w": u(ks[0], (C1, C_IN, K1), C_IN * K1), "conv1_b": u(ks[1], (C1,), C_IN * K1),
        "conv2_w": u(ks[2], (C2, C1, K2), C1 * K2),     "conv2_b": u(ks[3], (C2,), C1 * K2),
        "conv3_w": u(ks[4], (C3, C2, K3), C2 * K3),     "conv3_b": u(ks[5], (C3,), C2 * K3),
        "conv4_w": u(ks[6], (C4, C3, K4), C3 * K4),     "conv4_b": u(ks[7], (C4,), C3 * K4),
        "fc1_w":   u(ks[8], (F1, C4 * L4), C4 * L4),    "fc1_b":   u(ks[9], (F1,), C4 * L4),
        "fc2_w":   u(ks[10], (F2, F1), F1),             "fc2_b":   u(ks[11], (F2,), F1),
    }
    x = jax.random.normal(ks[12], (B, C_IN, L_IN), jnp.float32)

    out = jax.jit(eeg_model_forward)(x, params)
    out = jax.block_until_ready(out)
    ref = eeg_model_reference(x, params)

    assert out.shape == (B, 1)
    assert jnp.allclose(out, ref, atol=2e-3, rtol=2e-3), (out, ref)
    print("KERNEL_OK")
</pallas_src>

<mosaic_0001>
module attributes {stable_mosaic.version = 11 : i64} {
  func.func @eeg_kernel(%arg0: i32, %arg1: memref<1x250x315xf32, #tpu.memory_space<vmem>>, %arg2: memref<315x10xf32, #tpu.memory_space<vmem>>, %arg3: memref<5x10x8xf32, #tpu.memory_space<vmem>>, %arg4: memref<84x250xf32, #tpu.memory_space<vmem>>, %arg5: memref<3x8x32xf32, #tpu.memory_space<vmem>>, %arg6: memref<28x84xf32, #tpu.memory_space<vmem>>, %arg7: memref<3x32x32xf32, #tpu.memory_space<vmem>>, %arg8: memref<28x32x128xf32, #tpu.memory_space<vmem>>, %arg9: memref<128x1xf32, #tpu.memory_space<vmem>>, %arg10: memref<6x128xf32, #tpu.memory_space<vmem>>, %arg11: memref<1x1x1xf32, #tpu.memory_space<vmem>>) attributes {dimension_semantics = [#tpu.dimension_semantics<parallel>], iteration_bounds = array<i64: 2>, scalar_prefetch = 0 : i64, scratch_operands = 0 : i64, tpu.core_type = #tpu.core_type<tc>, window_params = [{transform_indices = @transform_0, window_bounds = array<i64: 1, 250, 315>}, {pipeline_mode = #tpu.pipeline_mode<synchronous>, transform_indices = @transform_1, window_bounds = array<i64: 315, 10>}, {pipeline_mode = #tpu.pipeline_mode<synchronous>, transform_indices = @transform_2, window_bounds = array<i64: 5, 10, 8>}, {pipeline_mode = #tpu.pipeline_mode<synchronous>, transform_indices = @transform_3, window_bounds = array<i64: 84, 250>}, {pipeline_mode = #tpu.pipeline_mode<synchronous>, transform_indices = @transform_4, window_bounds = array<i64: 3, 8, 32>}, {pipeline_mode = #tpu.pipeline_mode<synchronous>, transform_indices = @transform_5, window_bounds = array<i64: 28, 84>}, {pipeline_mode = #tpu.pipeline_mode<synchronous>, transform_indices = @transform_6, window_bounds = array<i64: 3, 32, 32>}, {pipeline_mode = #tpu.pipeline_mode<synchronous>, transform_indices = @transform_7, window_bounds = array<i64: 28, 32, 128>}, {pipeline_mode = #tpu.pipeline_mode<synchronous>, transform_indices = @transform_8, window_bounds = array<i64: 128, 1>}, {pipeline_mode = #tpu.pipeline_mode<synchronous>, transform_indices = @transform_9, window_bounds = array<i64: 6, 128>}, {transform_indices = @transform_10, window_bounds = array<i64: 1, 1, 1>}]} {
    %c0 = arith.constant 0 : index
    %c0_0 = arith.constant 0 : index
    %0 = vector.load %arg10[%c0, %c0_0] : memref<6x128xf32, #tpu.memory_space<vmem>>, vector<6x128xf32>
    %1 = vector.extract_strided_slice %0 {offsets = [0, 0], sizes = [1, 10], strides = [1, 1]} : vector<6x128xf32> to vector<1x10xf32>
    %2 = vector.extract_strided_slice %0 {offsets = [1, 0], sizes = [1, 8], strides = [1, 1]} : vector<6x128xf32> to vector<1x8xf32>
    %3 = vector.extract_strided_slice %0 {offsets = [2, 0], sizes = [1, 32], strides = [1, 1]} : vector<6x128xf32> to vector<1x32xf32>
    %4 = vector.extract_strided_slice %0 {offsets = [3, 0], sizes = [1, 32], strides = [1, 1]} : vector<6x128xf32> to vector<1x32xf32>
    %5 = vector.extract_strided_slice %0 {offsets = [4, 0], sizes = [1, 128], strides = [1, 1]} : vector<6x128xf32> to vector<1x128xf32>
    %6 = vector.extract_strided_slice %0 {offsets = [5, 0], sizes = [1, 1], strides = [1, 1]} : vector<6x128xf32> to vector<1x1xf32>
    %c0_1 = arith.constant 0 : index
    %c0_2 = arith.constant 0 : index
    %c0_3 = arith.constant 0 : index
    %7 = vector.load %arg1[%c0_1, %c0_2, %c0_3] : memref<1x250x315xf32, #tpu.memory_space<vmem>>, vector<1x250x315xf32>
    %8 = vector.shape_cast %7 : vector<1x250x315xf32> to vector<250x315xf32>
    %c0_4 = arith.constant 0 : index
    %c0_5 = arith.constant 0 : index
    %9 = vector.load %arg2[%c0_4, %c0_5] : memref<315x10xf32, #tpu.memory_space<vmem>>, vector<315x10xf32>
    %cst = arith.constant dense<0.000000e+00> : vector<250x10xf32>
    %10 = tpu.matmul %8, %9, %cst {dimension_numbers = #tpu.dot_dimension_numbers<[1], [0], [0], [1], [0, 0, 1, 1], [], []>} : vector<250x315xf32>, vector<315x10xf32>, vector<250x10xf32> -> vector<250x10xf32>
    %11 = vector.broadcast %1 : vector<1x10xf32> to vector<250x10xf32>
    %12 = arith.addf %10, %11 : vector<250x10xf32>
    %cst_6 = arith.constant 0.000000e+00 : f32
    %13 = vector.broadcast %cst_6 : f32 to vector<250x10xf32>
    %14 = arith.maximumf %12, %13 : vector<250x10xf32>
    %cst_7 = arith.constant 0.000000e+00 : f32
    %15 = vector.broadcast %cst_7 : f32 to vector<2x10xf32>
    %cst_8 = arith.constant 0.000000e+00 : f32
    %16 = vector.broadcast %cst_8 : f32 to vector<2x10xf32>
    %17 = tpu.concatenate %15, %14, %16 in 0 : vector<2x10xf32>, vector<250x10xf32>, vector<2x10xf32> -> vector<254x10xf32>
    %18 = vector.extract_strided_slice %17 {offsets = [0, 0], sizes = [250, 10], strides = [1, 1]} : vector<254x10xf32> to vector<250x10xf32>
    %c0_9 = arith.constant 0 : index
    %c0_10 = arith.constant 0 : index
    %c0_11 = arith.constant 0 : index
    %19 = vector.load %arg3[%c0_9, %c0_10, %c0_11] : memref<5x10x8xf32, #tpu.memory_space<vmem>>, vector<1x10x8xf32>
    %20 = vector.shape_cast %19 : vector<1x10x8xf32> to vector<10x8xf32>
    %cst_12 = arith.constant dense<0.000000e+00> : vector<250x8xf32>
    %21 = tpu.matmul %18, %20, %cst_12 {dimension_numbers = #tpu.dot_dimension_numbers<[1], [0], [0], [1], [0, 0, 1, 1], [], []>} : vector<250x10xf32>, vector<10x8xf32>, vector<250x8xf32> -> vector<250x8xf32>
    %22 = vector.extract_strided_slice %17 {offsets = [1, 0], sizes = [250, 10], strides = [1, 1]} : vector<254x10xf32> to vector<250x10xf32>
    %c1 = arith.constant 1 : index
    %c0_13 = arith.constant 0 : index
    %c0_14 = arith.constant 0 : index
    %23 = vector.load %arg3[%c1, %c0_13, %c0_14] : memref<5x10x8xf32, #tpu.memory_space<vmem>>, vector<1x10x8xf32>
    %24 = vector.shape_cast %23 : vector<1x10x8xf32> to vector<10x8xf32>
    %cst_15 = arith.constant dense<0.000000e+00> : vector<250x8xf32>
    %25 = tpu.matmul %22, %24, %cst_15 {dimension_numbers = #tpu.dot_dimension_numbers<[1], [0], [0], [1], [0, 0, 1, 1], [], []>} : vector<250x10xf32>, vector<10x8xf32>, vector<250x8xf32> -> vector<250x8xf32>
    %26 = arith.addf %21, %25 : vector<250x8xf32>
    %27 = vector.extract_strided_slice %17 {offsets = [2, 0], sizes = [250, 10], strides = [1, 1]} : vector<254x10xf32> to vector<250x10xf32>
    %c2 = arith.constant 2 : index
    %c0_16 = arith.constant 0 : index
    %c0_17 = arith.constant 0 : index
    %28 = vector.load %arg3[%c2, %c0_16, %c0_17] : memref<5x10x8xf32, #tpu.memory_space<vmem>>, vector<1x10x8xf32>
    %29 = vector.shape_cast %28 : vector<1x10x8xf32> to vector<10x8xf32>
    %cst_18 = arith.constant dense<0.000000e+00> : vector<250x8xf32>
    %30 = tpu.matmul %27, %29, %cst_18 {dimension_numbers = #tpu.dot_dimension_numbers<[1], [0], [0], [1], [0, 0, 1, 1], [], []>} : vector<250x10xf32>, vector<10x8xf32>, vector<250x8xf32> -> vector<250x8xf32>
    %31 = arith.addf %26, %30 : vector<250x8xf32>
    %32 = vector.extract_strided_slice %17 {offsets = [3, 0], sizes = [250, 10], strides = [1, 1]} : vector<254x10xf32> to vector<250x10xf32>
    %c3 = arith.constant 3 : index
    %c0_19 = arith.constant 0 : index
    %c0_20 = arith.constant 0 : index
    %33 = vector.load %arg3[%c3, %c0_19, %c0_20] : memref<5x10x8xf32, #tpu.memory_space<vmem>>, vector<1x10x8xf32>
    %34 = vector.shape_cast %33 : vector<1x10x8xf32> to vector<10x8xf32>
    %cst_21 = arith.constant dense<0.000000e+00> : vector<250x8xf32>
    %35 = tpu.matmul %32, %34, %cst_21 {dimension_numbers = #tpu.dot_dimension_numbers<[1], [0], [0], [1], [0, 0, 1, 1], [], []>} : vector<250x10xf32>, vector<10x8xf32>, vector<250x8xf32> -> vector<250x8xf32>
    %36 = arith.addf %31, %35 : vector<250x8xf32>
    %37 = vector.extract_strided_slice %17 {offsets = [4, 0], sizes = [250, 10], strides = [1, 1]} : vector<254x10xf32> to vector<250x10xf32>
    %c4 = arith.constant 4 : index
    %c0_22 = arith.constant 0 : index
    %c0_23 = arith.constant 0 : index
    %38 = vector.load %arg3[%c4, %c0_22, %c0_23] : memref<5x10x8xf32, #tpu.memory_space<vmem>>, vector<1x10x8xf32>
    %39 = vector.shape_cast %38 : vector<1x10x8xf32> to vector<10x8xf32>
    %cst_24 = arith.constant dense<0.000000e+00> : vector<250x8xf32>
    %40 = tpu.matmul %37, %39, %cst_24 {dimension_numbers = #tpu.dot_dimension_numbers<[1], [0], [0], [1], [0, 0, 1, 1], [], []>} : vector<250x10xf32>, vector<10x8xf32>, vector<250x8xf32> -> vector<250x8xf32>
    %41 = arith.addf %36, %40 : vector<250x8xf32>
    %c0_25 = arith.constant 0 : index
    %c0_26 = arith.constant 0 : index
    %42 = vector.load %arg4[%c0_25, %c0_26] : memref<84x250xf32, #tpu.memory_space<vmem>>, vector<84x250xf32>
    %cst_27 = arith.constant dense<0.000000e+00> : vector<84x8xf32>
    %43 = tpu.matmul %42, %41, %cst_27 {dimension_numbers = #tpu.dot_dimension_numbers<[1], [0], [0], [1], [0, 0, 1, 1], [], []>} : vector<84x250xf32>, vector<250x8xf32>, vector<84x8xf32> -> vector<84x8xf32>
    %44 = vector.broadcast %2 : vector<1x8xf32> to vector<84x8xf32>
    %45 = arith.addf %43, %44 : vector<84x8xf32>
    %cst_28 = arith.constant 0.000000e+00 : f32
    %46 = vector.broadcast %cst_28 : f32 to vector<84x8xf32>
    %47 = arith.maximumf %45, %46 : vector<84x8xf32>
    %cst_29 = arith.constant 0.000000e+00 : f32
    %48 = vector.broadcast %cst_29 : f32 to vector<1x8xf32>
    %cst_30 = arith.constant 0.000000e+00 : f32
    %49 = vector.broadcast %cst_30 : f32 to vector<1x8xf32>
    %50 = tpu.concatenate %48, %47, %49 in 0 : vector<1x8xf32>, vector<84x8xf32>, vector<1x8xf32> -> vector<86x8xf32>
    %51 = vector.extract_strided_slice %50 {offsets = [0, 0], sizes = [84, 8], strides = [1, 1]} : vector<86x8xf32> to vector<84x8xf32>
    %c0_31 = arith.constant 0 : index
    %c0_32 = arith.constant 0 : index
    %c0_33 = arith.constant 0 : index
    %52 = vector.load %arg5[%c0_31, %c0_32, %c0_33] : memref<3x8x32xf32, #tpu.memory_space<vmem>>, vector<1x8x32xf32>
    %53 = vector.shape_cast %52 : vector<1x8x32xf32> to vector<8x32xf32>
    %cst_34 = arith.constant dense<0.000000e+00> : vector<84x32xf32>
    %54 = tpu.matmul %51, %53, %cst_34 {dimension_numbers = #tpu.dot_dimension_numbers<[1], [0], [0], [1], [0, 0, 1, 1], [], []>} : vector<84x8xf32>, vector<8x32xf32>, vector<84x32xf32> -> vector<84x32xf32>
    %55 = vector.extract_strided_slice %50 {offsets = [1, 0], sizes = [84, 8], strides = [1, 1]} : vector<86x8xf32> to vector<84x8xf32>
    %c1_35 = arith.constant 1 : index
    %c0_36 = arith.constant 0 : index
    %c0_37 = arith.constant 0 : index
    %56 = vector.load %arg5[%c1_35, %c0_36, %c0_37] : memref<3x8x32xf32, #tpu.memory_space<vmem>>, vector<1x8x32xf32>
    %57 = vector.shape_cast %56 : vector<1x8x32xf32> to vector<8x32xf32>
    %cst_38 = arith.constant dense<0.000000e+00> : vector<84x32xf32>
    %58 = tpu.matmul %55, %57, %cst_38 {dimension_numbers = #tpu.dot_dimension_numbers<[1], [0], [0], [1], [0, 0, 1, 1], [], []>} : vector<84x8xf32>, vector<8x32xf32>, vector<84x32xf32> -> vector<84x32xf32>
    %59 = arith.addf %54, %58 : vector<84x32xf32>
    %60 = vector.extract_strided_slice %50 {offsets = [2, 0], sizes = [84, 8], strides = [1, 1]} : vector<86x8xf32> to vector<84x8xf32>
    %c2_39 = arith.constant 2 : index
    %c0_40 = arith.constant 0 : index
    %c0_41 = arith.constant 0 : index
    %61 = vector.load %arg5[%c2_39, %c0_40, %c0_41] : memref<3x8x32xf32, #tpu.memory_space<vmem>>, vector<1x8x32xf32>
    %62 = vector.shape_cast %61 : vector<1x8x32xf32> to vector<8x32xf32>
    %cst_42 = arith.constant dense<0.000000e+00> : vector<84x32xf32>
    %63 = tpu.matmul %60, %62, %cst_42 {dimension_numbers = #tpu.dot_dimension_numbers<[1], [0], [0], [1], [0, 0, 1, 1], [], []>} : vector<84x8xf32>, vector<8x32xf32>, vector<84x32xf32> -> vector<84x32xf32>
    %64 = arith.addf %59, %63 : vector<84x32xf32>
    %c0_43 = arith.constant 0 : index
    %c0_44 = arith.constant 0 : index
    %65 = vector.load %arg6[%c0_43, %c0_44] : memref<28x84xf32, #tpu.memory_space<vmem>>, vector<28x84xf32>
    %cst_45 = arith.constant dense<0.000000e+00> : vector<28x32xf32>
    %66 = tpu.matmul %65, %64, %cst_45 {dimension_numbers = #tpu.dot_dimension_numbers<[1], [0], [0], [1], [0, 0, 1, 1], [], []>} : vector<28x84xf32>, vector<84x32xf32>, vector<28x32xf32> -> vector<28x32xf32>
    %67 = vector.broadcast %3 : vector<1x32xf32> to vector<28x32xf32>
    %68 = arith.addf %66, %67 : vector<28x32xf32>
    %cst_46 = arith.constant 0.000000e+00 : f32
    %69 = vector.broadcast %cst_46 : f32 to vector<28x32xf32>
    %70 = arith.maximumf %68, %69 : vector<28x32xf32>
    %cst_47 = arith.constant 0.000000e+00 : f32
    %71 = vector.broadcast %cst_47 : f32 to vector<1x32xf32>
    %cst_48 = arith.constant 0.000000e+00 : f32
    %72 = vector.broadcast %cst_48 : f32 to vector<1x32xf32>
    %73 = tpu.concatenate %71, %70, %72 in 0 : vector<1x32xf32>, vector<28x32xf32>, vector<1x32xf32> -> vector<30x32xf32>
    %74 = vector.extract_strided_slice %73 {offsets = [0, 0], sizes = [28, 32], strides = [1, 1]} : vector<30x32xf32> to vector<28x32xf32>
    %c0_49 = arith.constant 0 : index
    %c0_50 = arith.constant 0 : index
    %c0_51 = arith.constant 0 : index
    %75 = vector.load %arg7[%c0_49, %c0_50, %c0_51] : memref<3x32x32xf32, #tpu.memory_space<vmem>>, vector<1x32x32xf32>
    %76 = vector.shape_cast %75 : vector<1x32x32xf32> to vector<32x32xf32>
    %cst_52 = arith.constant dense<0.000000e+00> : vector<28x32xf32>
    %77 = tpu.matmul %74, %76, %cst_52 {dimension_numbers = #tpu.dot_dimension_numbers<[1], [0], [0], [1], [0, 0, 1, 1], [], []>} : vector<28x32xf32>, vector<32x32xf32>, vector<28x32xf32> -> vector<28x32xf32>
    %78 = vector.extract_strided_slice %73 {offsets = [1, 0], sizes = [28, 32], strides = [1, 1]} : vector<30x32xf32> to vector<28x32xf32>
    %c1_53 = arith.constant 1 : index
    %c0_54 = arith.constant 0 : index
    %c0_55 = arith.constant 0 : index
    %79 = vector.load %arg7[%c1_53, %c0_54, %c0_55] : memref<3x32x32xf32, #tpu.memory_space<vmem>>, vector<1x32x32xf32>
    %80 = vector.shape_cast %79 : vector<1x32x32xf32> to vector<32x32xf32>
    %cst_56 = arith.constant dense<0.000000e+00> : vector<28x32xf32>
    %81 = tpu.matmul %78, %80, %cst_56 {dimension_numbers = #tpu.dot_dimension_numbers<[1], [0], [0], [1], [0, 0, 1, 1], [], []>} : vector<28x32xf32>, vector<32x32xf32>, vector<28x32xf32> -> vector<28x32xf32>
    %82 = arith.addf %77, %81 : vector<28x32xf32>
    %83 = vector.extract_strided_slice %73 {offsets = [2, 0], sizes = [28, 32], strides = [1, 1]} : vector<30x32xf32> to vector<28x32xf32>
    %c2_57 = arith.constant 2 : index
    %c0_58 = arith.constant 0 : index
    %c0_59 = arith.constant 0 : index
    %84 = vector.load %arg7[%c2_57, %c0_58, %c0_59] : memref<3x32x32xf32, #tpu.memory_space<vmem>>, vector<1x32x32xf32>
    %85 = vector.shape_cast %84 : vector<1x32x32xf32> to vector<32x32xf32>
    %cst_60 = arith.constant dense<0.000000e+00> : vector<28x32xf32>
    %86 = tpu.matmul %83, %85, %cst_60 {dimension_numbers = #tpu.dot_dimension_numbers<[1], [0], [0], [1], [0, 0, 1, 1], [], []>} : vector<28x32xf32>, vector<32x32xf32>, vector<28x32xf32> -> vector<28x32xf32>
    %87 = arith.addf %82, %86 : vector<28x32xf32>
    %88 = vector.broadcast %4 : vector<1x32xf32> to vector<28x32xf32>
    %89 = arith.addf %87, %88 : vector<28x32xf32>
    %cst_61 = arith.constant 0.000000e+00 : f32
    %90 = vector.broadcast %cst_61 : f32 to vector<28x32xf32>
    %91 = arith.maximumf %89, %90 : vector<28x32xf32>
    %92 = vector.extract_strided_slice %91 {offsets = [0, 0], sizes = [1, 32], strides = [1, 1]} : vector<28x32xf32> to vector<1x32xf32>
    %c0_62 = arith.constant 0 : index
    %c0_63 = arith.constant 0 : index
    %c0_64 = arith.constant 0 : index
    %93 = vector.load %arg8[%c0_62, %c0_63, %c0_64] : memref<28x32x128xf32, #tpu.memory_space<vmem>>, vector<1x32x128xf32>
    %94 = vector.shape_cast %93 : vector<1x32x128xf32> to vector<32x128xf32>
    %cst_65 = arith.constant dense<0.000000e+00> : vector<1x128xf32>
    %95 = tpu.matmul %92, %94, %cst_65 {dimension_numbers = #tpu.dot_dimension_numbers<[1], [0], [0], [1], [0, 0, 1, 1], [], []>} : vector<1x32xf32>, vector<32x128xf32>, vector<1x128xf32> -> vector<1x128xf32>
    %96 = vector.extract_strided_slice %91 {offsets = [1, 0], sizes = [1, 32], strides = [1, 1]} : vector<28x32xf32> to vector<1x32xf32>
    %c1_66 = arith.constant 1 : index
    %c0_67 = arith.constant 0 : index
    %c0_68 = arith.constant 0 : index
    %97 = vector.load %arg8[%c1_66, %c0_67, %c0_68] : memref<28x32x128xf32, #tpu.memory_space<vmem>>, vector<1x32x128xf32>
    %98 = vector.shape_cast %97 : vector<1x32x128xf32> to vector<32x128xf32>
    %cst_69 = arith.constant dense<0.000000e+00> : vector<1x128xf32>
    %99 = tpu.matmul %96, %98, %cst_69 {dimension_numbers = #tpu.dot_dimension_numbers<[1], [0], [0], [1], [0, 0, 1, 1], [], []>} : vector<1x32xf32>, vector<32x128xf32>, vector<1x128xf32> -> vector<1x128xf32>
    %100 = arith.addf %95, %99 : vector<1x128xf32>
    %101 = vector.extract_strided_slice %91 {offsets = [2, 0], sizes = [1, 32], strides = [1, 1]} : vector<28x32xf32> to vector<1x32xf32>
    %c2_70 = arith.constant 2 : index
    %c0_71 = arith.constant 0 : index
    %c0_72 = arith.constant 0 : index
    %102 = vector.load %arg8[%c2_70, %c0_71, %c0_72] : memref<28x32x128xf32, #tpu.memory_space<vmem>>, vector<1x32x128xf32>
    %103 = vector.shape_cast %102 : vector<1x32x128xf32> to vector<32x128xf32>
    %cst_73 = arith.constant dense<0.000000e+00> : vector<1x128xf32>
    %104 = tpu.matmul %101, %103, %cst_73 {dimension_numbers = #tpu.dot_dimension_numbers<[1], [0], [0], [1], [0, 0, 1, 1], [], []>} : vector<1x32xf32>, vector<32x128xf32>, vector<1x128xf32> -> vector<1x128xf32>
    %105 = arith.addf %100, %104 : vector<1x128xf32>
    %106 = vector.extract_strided_slice %91 {offsets = [3, 0], sizes = [1, 32], strides = [1, 1]} : vector<28x32xf32> to vector<1x32xf32>
    %c3_74 = arith.constant 3 : index
    %c0_75 = arith.constant 0 : index
    %c0_76 = arith.constant 0 : index
    %107 = vector.load %arg8[%c3_74, %c0_75, %c0_76] : memref<28x32x128xf32, #tpu.memory_space<vmem>>, vector<1x32x128xf32>
    %108 = vector.shape_cast %107 : vector<1x32x128xf32> to vector<32x128xf32>
    %cst_77 = arith.constant dense<0.000000e+00> : vector<1x128xf32>
    %109 = tpu.matmul %106, %108, %cst_77 {dimension_numbers = #tpu.dot_dimension_numbers<[1], [0], [0], [1], [0, 0, 1, 1], [], []>} : vector<1x32xf32>, vector<32x128xf32>, vector<1x128xf32> -> vector<1x128xf32>
    %110 = arith.addf %105, %109 : vector<1x128xf32>
    %111 = vector.extract_strided_slice %91 {offsets = [4, 0], sizes = [1, 32], strides = [1, 1]} : vector<28x32xf32> to vector<1x32xf32>
    %c4_78 = arith.constant 4 : index
    %c0_79 = arith.constant 0 : index
    %c0_80 = arith.constant 0 : index
    %112 = vector.load %arg8[%c4_78, %c0_79, %c0_80] : memref<28x32x128xf32, #tpu.memory_space<vmem>>, vector<1x32x128xf32>
    %113 = vector.shape_cast %112 : vector<1x32x128xf32> to vector<32x128xf32>
    %cst_81 = arith.constant dense<0.000000e+00> : vector<1x128xf32>
    %114 = tpu.matmul %111, %113, %cst_81 {dimension_numbers = #tpu.dot_dimension_numbers<[1], [0], [0], [1], [0, 0, 1, 1], [], []>} : vector<1x32xf32>, vector<32x128xf32>, vector<1x128xf32> -> vector<1x128xf32>
    %115 = arith.addf %110, %114 : vector<1x128xf32>
    %116 = vector.extract_strided_slice %91 {offsets = [5, 0], sizes = [1, 32], strides = [1, 1]} : vector<28x32xf32> to vector<1x32xf32>
    %c5 = arith.constant 5 : index
    %c0_82 = arith.constant 0 : index
    %c0_83 = arith.constant 0 : index
    %117 = vector.load %arg8[%c5, %c0_82, %c0_83] : memref<28x32x128xf32, #tpu.memory_space<vmem>>, vector<1x32x128xf32>
    %118 = vector.shape_cast %117 : vector<1x32x128xf32> to vector<32x128xf32>
    %cst_84 = arith.constant dense<0.000000e+00> : vector<1x128xf32>
    %119 = tpu.matmul %116, %118, %cst_84 {dimension_numbers = #tpu.dot_dimension_numbers<[1], [0], [0], [1], [0, 0, 1, 1], [], []>} : vector<1x32xf32>, vector<32x128xf32>, vector<1x128xf32> -> vector<1x128xf32>
    %120 = arith.addf %115, %119 : vector<1x128xf32>
    %121 = vector.extract_strided_slice %91 {offsets = [6, 0], sizes = [1, 32], strides = [1, 1]} : vector<28x32xf32> to vector<1x32xf32>
    %c6 = arith.constant 6 : index
    %c0_85 = arith.constant 0 : index
    %c0_86 = arith.constant 0 : index
    %122 = vector.load %arg8[%c6, %c0_85, %c0_86] : memref<28x32x128xf32, #tpu.memory_space<vmem>>, vector<1x32x128xf32>
    %123 = vector.shape_cast %122 : vector<1x32x128xf32> to vector<32x128xf32>
    %cst_87 = arith.constant dense<0.000000e+00> : vector<1x128xf32>
    %124 = tpu.matmul %121, %123, %cst_87 {dimension_numbers = #tpu.dot_dimension_numbers<[1], [0], [0], [1], [0, 0, 1, 1], [], []>} : vector<1x32xf32>, vector<32x128xf32>, vector<1x128xf32> -> vector<1x128xf32>
    %125 = arith.addf %120, %124 : vector<1x128xf32>
    %126 = vector.extract_strided_slice %91 {offsets = [7, 0], sizes = [1, 32], strides = [1, 1]} : vector<28x32xf32> to vector<1x32xf32>
    %c7 = arith.constant 7 : index
    %c0_88 = arith.constant 0 : index
    %c0_89 = arith.constant 0 : index
    %127 = vector.load %arg8[%c7, %c0_88, %c0_89] : memref<28x32x128xf32, #tpu.memory_space<vmem>>, vector<1x32x128xf32>
    %128 = vector.shape_cast %127 : vector<1x32x128xf32> to vector<32x128xf32>
    %cst_90 = arith.constant dense<0.000000e+00> : vector<1x128xf32>
    %129 = tpu.matmul %126, %128, %cst_90 {dimension_numbers = #tpu.dot_dimension_numbers<[1], [0], [0], [1], [0, 0, 1, 1], [], []>} : vector<1x32xf32>, vector<32x128xf32>, vector<1x128xf32> -> vector<1x128xf32>
    %130 = arith.addf %125, %129 : vector<1x128xf32>
    %131 = vector.extract_strided_slice %91 {offsets = [8, 0], sizes = [1, 32], strides = [1, 1]} : vector<28x32xf32> to vector<1x32xf32>
    %c8 = arith.constant 8 : index
    %c0_91 = arith.constant 0 : index
    %c0_92 = arith.constant 0 : index
    %132 = vector.load %arg8[%c8, %c0_91, %c0_92] : memref<28x32x128xf32, #tpu.memory_space<vmem>>, vector<1x32x128xf32>
    %133 = vector.shape_cast %132 : vector<1x32x128xf32> to vector<32x128xf32>
    %cst_93 = arith.constant dense<0.000000e+00> : vector<1x128xf32>
    %134 = tpu.matmul %131, %133, %cst_93 {dimension_numbers = #tpu.dot_dimension_numbers<[1], [0], [0], [1], [0, 0, 1, 1], [], []>} : vector<1x32xf32>, vector<32x128xf32>, vector<1x128xf32> -> vector<1x128xf32>
    %135 = arith.addf %130, %134 : vector<1x128xf32>
    %136 = vector.extract_strided_slice %91 {offsets = [9, 0], sizes = [1, 32], strides = [1, 1]} : vector<28x32xf32> to vector<1x32xf32>
    %c9 = arith.constant 9 : index
    %c0_94 = arith.constant 0 : index
    %c0_95 = arith.constant 0 : index
    %137 = vector.load %arg8[%c9, %c0_94, %c0_95] : memref<28x32x128xf32, #tpu.memory_space<vmem>>, vector<1x32x128xf32>
    %138 = vector.shape_cast %137 : vector<1x32x128xf32> to vector<32x128xf32>
    %cst_96 = arith.constant dense<0.000000e+00> : vector<1x128xf32>
    %139 = tpu.matmul %136, %138, %cst_96 {dimension_numbers = #tpu.dot_dimension_numbers<[1], [0], [0], [1], [0, 0, 1, 1], [], []>} : vector<1x32xf32>, vector<32x128xf32>, vector<1x128xf32> -> vector<1x128xf32>
    %140 = arith.addf %135, %139 : vector<1x128xf32>
    %141 = vector.extract_strided_slice %91 {offsets = [10, 0], sizes = [1, 32], strides = [1, 1]} : vector<28x32xf32> to vector<1x32xf32>
    %c10 = arith.constant 10 : index
    %c0_97 = arith.constant 0 : index
    %c0_98 = arith.constant 0 : index
    %142 = vector.load %arg8[%c10, %c0_97, %c0_98] : memref<28x32x128xf32, #tpu.memory_space<vmem>>, vector<1x32x128xf32>
    %143 = vector.shape_cast %142 : vector<1x32x128xf32> to vector<32x128xf32>
    %cst_99 = arith.constant dense<0.000000e+00> : vector<1x128xf32>
    %144 = tpu.matmul %141, %143, %cst_99 {dimension_numbers = #tpu.dot_dimension_numbers<[1], [0], [0], [1], [0, 0, 1, 1], [], []>} : vector<1x32xf32>, vector<32x128xf32>, vector<1x128xf32> -> vector<1x128xf32>
    %145 = arith.addf %140, %144 : vector<1x128xf32>
    %146 = vector.extract_strided_slice %91 {offsets = [11, 0], sizes = [1, 32], strides = [1, 1]} : vector<28x32xf32> to vector<1x32xf32>
    %c11 = arith.constant 11 : index
    %c0_100 = arith.constant 0 : index
    %c0_101 = arith.constant 0 : index
    %147 = vector.load %arg8[%c11, %c0_100, %c0_101] : memref<28x32x128xf32, #tpu.memory_space<vmem>>, vector<1x32x128xf32>
    %148 = vector.shape_cast %147 : vector<1x32x128xf32> to vector<32x128xf32>
    %cst_102 = arith.constant dense<0.000000e+00> : vector<1x128xf32>
    %149 = tpu.matmul %146, %148, %cst_102 {dimension_numbers = #tpu.dot_dimension_numbers<[1], [0], [0], [1], [0, 0, 1, 1], [], []>} : vector<1x32xf32>, vector<32x128xf32>, vector<1x128xf32> -> vector<1x128xf32>
    %150 = arith.addf %145, %149 : vector<1x128xf32>
    %151 = vector.extract_strided_slice %91 {offsets = [12, 0], sizes = [1, 32], strides = [1, 1]} : vector<28x32xf32> to vector<1x32xf32>
    %c12 = arith.constant 12 : index
    %c0_103 = arith.constant 0 : index
    %c0_104 = arith.constant 0 : index
    %152 = vector.load %arg8[%c12, %c0_103, %c0_104] : memref<28x32x128xf32, #tpu.memory_space<vmem>>, vector<1x32x128xf32>
    %153 = vector.shape_cast %152 : vector<1x32x128xf32> to vector<32x128xf32>
    %cst_105 = arith.constant dense<0.000000e+00> : vector<1x128xf32>
    %154 = tpu.matmul %151, %153, %cst_105 {dimension_numbers = #tpu.dot_dimension_numbers<[1], [0], [0], [1], [0, 0, 1, 1], [], []>} : vector<1x32xf32>, vector<32x128xf32>, vector<1x128xf32> -> vector<1x128xf32>
    %155 = arith.addf %150, %154 : vector<1x128xf32>
    %156 = vector.extract_strided_slice %91 {offsets = [13, 0], sizes = [1, 32], strides = [1, 1]} : vector<28x32xf32> to vector<1x32xf32>
    %c13 = arith.constant 13 : index
    %c0_106 = arith.constant 0 : index
    %c0_107 = arith.constant 0 : index
    %157 = vector.load %arg8[%c13, %c0_106, %c0_107] : memref<28x32x128xf32, #tpu.memory_space<vmem>>, vector<1x32x128xf32>
    %158 = vector.shape_cast %157 : vector<1x32x128xf32> to vector<32x128xf32>
    %cst_108 = arith.constant dense<0.000000e+00> : vector<1x128xf32>
    %159 = tpu.matmul %156, %158, %cst_108 {dimension_numbers = #tpu.dot_dimension_numbers<[1], [0], [0], [1], [0, 0, 1, 1], [], []>} : vector<1x32xf32>, vector<32x128xf32>, vector<1x128xf32> -> vector<1x128xf32>
    %160 = arith.addf %155, %159 : vector<1x128xf32>
    %161 = vector.extract_strided_slice %91 {offsets = [14, 0], sizes = [1, 32], strides = [1, 1]} : vector<28x32xf32> to vector<1x32xf32>
    %c14 = arith.constant 14 : index
    %c0_109 = arith.constant 0 : index
    %c0_110 = arith.constant 0 : index
    %162 = vector.load %arg8[%c14, %c0_109, %c0_110] : memref<28x32x128xf32, #tpu.memory_space<vmem>>, vector<1x32x128xf32>
    %163 = vector.shape_cast %162 : vector<1x32x128xf32> to vector<32x128xf32>
    %cst_111 = arith.constant dense<0.000000e+00> : vector<1x128xf32>
    %164 = tpu.matmul %161, %163, %cst_111 {dimension_numbers = #tpu.dot_dimension_numbers<[1], [0], [0], [1], [0, 0, 1, 1], [], []>} : vector<1x32xf32>, vector<32x128xf32>, vector<1x128xf32> -> vector<1x128xf32>
    %165 = arith.addf %160, %164 : vector<1x128xf32>
    %166 = vector.extract_strided_slice %91 {offsets = [15, 0], sizes = [1, 32], strides = [1, 1]} : vector<28x32xf32> to vector<1x32xf32>
    %c15 = arith.constant 15 : index
    %c0_112 = arith.constant 0 : index
    %c0_113 = arith.constant 0 : index
    %167 = vector.load %arg8[%c15, %c0_112, %c0_113] : memref<28x32x128xf32, #tpu.memory_space<vmem>>, vector<1x32x128xf32>
    %168 = vector.shape_cast %167 : vector<1x32x128xf32> to vector<32x128xf32>
    %cst_114 = arith.constant dense<0.000000e+00> : vector<1x128xf32>
    %169 = tpu.matmul %166, %168, %cst_114 {dimension_numbers = #tpu.dot_dimension_numbers<[1], [0], [0], [1], [0, 0, 1, 1], [], []>} : vector<1x32xf32>, vector<32x128xf32>, vector<1x128xf32> -> vector<1x128xf32>
    %170 = arith.addf %165, %169 : vector<1x128xf32>
    %171 = vector.extract_strided_slice %91 {offsets = [16, 0], sizes = [1, 32], strides = [1, 1]} : vector<28x32xf32> to vector<1x32xf32>
    %c16 = arith.constant 16 : index
    %c0_115 = arith.constant 0 : index
    %c0_116 = arith.constant 0 : index
    %172 = vector.load %arg8[%c16, %c0_115, %c0_116] : memref<28x32x128xf32, #tpu.memory_space<vmem>>, vector<1x32x128xf32>
    %173 = vector.shape_cast %172 : vector<1x32x128xf32> to vector<32x128xf32>
    %cst_117 = arith.constant dense<0.000000e+00> : vector<1x128xf32>
    %174 = tpu.matmul %171, %173, %cst_117 {dimension_numbers = #tpu.dot_dimension_numbers<[1], [0], [0], [1], [0, 0, 1, 1], [], []>} : vector<1x32xf32>, vector<32x128xf32>, vector<1x128xf32> -> vector<1x128xf32>
    %175 = arith.addf %170, %174 : vector<1x128xf32>
    %176 = vector.extract_strided_slice %91 {offsets = [17, 0], sizes = [1, 32], strides = [1, 1]} : vector<28x32xf32> to vector<1x32xf32>
    %c17 = arith.constant 17 : index
    %c0_118 = arith.constant 0 : index
    %c0_119 = arith.constant 0 : index
    %177 = vector.load %arg8[%c17, %c0_118, %c0_119] : memref<28x32x128xf32, #tpu.memory_space<vmem>>, vector<1x32x128xf32>
    %178 = vector.shape_cast %177 : vector<1x32x128xf32> to vector<32x128xf32>
    %cst_120 = arith.constant dense<0.000000e+00> : vector<1x128xf32>
    %179 = tpu.matmul %176, %178, %cst_120 {dimension_numbers = #tpu.dot_dimension_numbers<[1], [0], [0], [1], [0, 0, 1, 1], [], []>} : vector<1x32xf32>, vector<32x128xf32>, vector<1x128xf32> -> vector<1x128xf32>
    %180 = arith.addf %175, %179 : vector<1x128xf32>
    %181 = vector.extract_strided_slice %91 {offsets = [18, 0], sizes = [1, 32], strides = [1, 1]} : vector<28x32xf32> to vector<1x32xf32>
    %c18 = arith.constant 18 : index
    %c0_121 = arith.constant 0 : index
    %c0_122 = arith.constant 0 : index
    %182 = vector.load %arg8[%c18, %c0_121, %c0_122] : memref<28x32x128xf32, #tpu.memory_space<vmem>>, vector<1x32x128xf32>
    %183 = vector.shape_cast %182 : vector<1x32x128xf32> to vector<32x128xf32>
    %cst_123 = arith.constant dense<0.000000e+00> : vector<1x128xf32>
    %184 = tpu.matmul %181, %183, %cst_123 {dimension_numbers = #tpu.dot_dimension_numbers<[1], [0], [0], [1], [0, 0, 1, 1], [], []>} : vector<1x32xf32>, vector<32x128xf32>, vector<1x128xf32> -> vector<1x128xf32>
    %185 = arith.addf %180, %184 : vector<1x128xf32>
    %186 = vector.extract_strided_slice %91 {offsets = [19, 0], sizes = [1, 32], strides = [1, 1]} : vector<28x32xf32> to vector<1x32xf32>
    %c19 = arith.constant 19 : index
    %c0_124 = arith.constant 0 : index
    %c0_125 = arith.constant 0 : index
    %187 = vector.load %arg8[%c19, %c0_124, %c0_125] : memref<28x32x128xf32, #tpu.memory_space<vmem>>, vector<1x32x128xf32>
    %188 = vector.shape_cast %187 : vector<1x32x128xf32> to vector<32x128xf32>
    %cst_126 = arith.constant dense<0.000000e+00> : vector<1x128xf32>
    %189 = tpu.matmul %186, %188, %cst_126 {dimension_numbers = #tpu.dot_dimension_numbers<[1], [0], [0], [1], [0, 0, 1, 1], [], []>} : vector<1x32xf32>, vector<32x128xf32>, vector<1x128xf32> -> vector<1x128xf32>
    %190 = arith.addf %185, %189 : vector<1x128xf32>
    %191 = vector.extract_strided_slice %91 {offsets = [20, 0], sizes = [1, 32], strides = [1, 1]} : vector<28x32xf32> to vector<1x32xf32>
    %c20 = arith.constant 20 : index
    %c0_127 = arith.constant 0 : index
    %c0_128 = arith.constant 0 : index
    %192 = vector.load %arg8[%c20, %c0_127, %c0_128] : memref<28x32x128xf32, #tpu.memory_space<vmem>>, vector<1x32x128xf32>
    %193 = vector.shape_cast %192 : vector<1x32x128xf32> to vector<32x128xf32>
    %cst_129 = arith.constant dense<0.000000e+00> : vector<1x128xf32>
    %194 = tpu.matmul %191, %193, %cst_129 {dimension_numbers = #tpu.dot_dimension_numbers<[1], [0], [0], [1], [0, 0, 1, 1], [], []>} : vector<1x32xf32>, vector<32x128xf32>, vector<1x128xf32> -> vector<1x128xf32>
    %195 = arith.addf %190, %194 : vector<1x128xf32>
    %196 = vector.extract_strided_slice %91 {offsets = [21, 0], sizes = [1, 32], strides = [1, 1]} : vector<28x32xf32> to vector<1x32xf32>
    %c21 = arith.constant 21 : index
    %c0_130 = arith.constant 0 : index
    %c0_131 = arith.constant 0 : index
    %197 = vector.load %arg8[%c21, %c0_130, %c0_131] : memref<28x32x128xf32, #tpu.memory_space<vmem>>, vector<1x32x128xf32>
    %198 = vector.shape_cast %197 : vector<1x32x128xf32> to vector<32x128xf32>
    %cst_132 = arith.constant dense<0.000000e+00> : vector<1x128xf32>
    %199 = tpu.matmul %196, %198, %cst_132 {dimension_numbers = #tpu.dot_dimension_numbers<[1], [0], [0], [1], [0, 0, 1, 1], [], []>} : vector<1x32xf32>, vector<32x128xf32>, vector<1x128xf32> -> vector<1x128xf32>
    %200 = arith.addf %195, %199 : vector<1x128xf32>
    %201 = vector.extract_strided_slice %91 {offsets = [22, 0], sizes = [1, 32], strides = [1, 1]} : vector<28x32xf32> to vector<1x32xf32>
    %c22 = arith.constant 22 : index
    %c0_133 = arith.constant 0 : index
    %c0_134 = arith.constant 0 : index
    %202 = vector.load %arg8[%c22, %c0_133, %c0_134] : memref<28x32x128xf32, #tpu.memory_space<vmem>>, vector<1x32x128xf32>
    %203 = vector.shape_cast %202 : vector<1x32x128xf32> to vector<32x128xf32>
    %cst_135 = arith.constant dense<0.000000e+00> : vector<1x128xf32>
    %204 = tpu.matmul %201, %203, %cst_135 {dimension_numbers = #tpu.dot_dimension_numbers<[1], [0], [0], [1], [0, 0, 1, 1], [], []>} : vector<1x32xf32>, vector<32x128xf32>, vector<1x128xf32> -> vector<1x128xf32>
    %205 = arith.addf %200, %204 : vector<1x128xf32>
    %206 = vector.extract_strided_slice %91 {offsets = [23, 0], sizes = [1, 32], strides = [1, 1]} : vector<28x32xf32> to vector<1x32xf32>
    %c23 = arith.constant 23 : index
    %c0_136 = arith.constant 0 : index
    %c0_137 = arith.constant 0 : index
    %207 = vector.load %arg8[%c23, %c0_136, %c0_137] : memref<28x32x128xf32, #tpu.memory_space<vmem>>, vector<1x32x128xf32>
    %208 = vector.shape_cast %207 : vector<1x32x128xf32> to vector<32x128xf32>
    %cst_138 = arith.constant dense<0.000000e+00> : vector<1x128xf32>
    %209 = tpu.matmul %206, %208, %cst_138 {dimension_numbers = #tpu.dot_dimension_numbers<[1], [0], [0], [1], [0, 0, 1, 1], [], []>} : vector<1x32xf32>, vector<32x128xf32>, vector<1x128xf32> -> vector<1x128xf32>
    %210 = arith.addf %205, %209 : vector<1x128xf32>
    %211 = vector.extract_strided_slice %91 {offsets = [24, 0], sizes = [1, 32], strides = [1, 1]} : vector<28x32xf32> to vector<1x32xf32>
    %c24 = arith.constant 24 : index
    %c0_139 = arith.constant 0 : index
    %c0_140 = arith.constant 0 : index
    %212 = vector.load %arg8[%c24, %c0_139, %c0_140] : memref<28x32x128xf32, #tpu.memory_space<vmem>>, vector<1x32x128xf32>
    %213 = vector.shape_cast %212 : vector<1x32x128xf32> to vector<32x128xf32>
    %cst_141 = arith.constant dense<0.000000e+00> : vector<1x128xf32>
    %214 = tpu.matmul %211, %213, %cst_141 {dimension_numbers = #tpu.dot_dimension_numbers<[1], [0], [0], [1], [0, 0, 1, 1], [], []>} : vector<1x32xf32>, vector<32x128xf32>, vector<1x128xf32> -> vector<1x128xf32>
    %215 = arith.addf %210, %214 : vector<1x128xf32>
    %216 = vector.extract_strided_slice %91 {offsets = [25, 0], sizes = [1, 32], strides = [1, 1]} : vector<28x32xf32> to vector<1x32xf32>
    %c25 = arith.constant 25 : index
    %c0_142 = arith.constant 0 : index
    %c0_143 = arith.constant 0 : index
    %217 = vector.load %arg8[%c25, %c0_142, %c0_143] : memref<28x32x128xf32, #tpu.memory_space<vmem>>, vector<1x32x128xf32>
    %218 = vector.shape_cast %217 : vector<1x32x128xf32> to vector<32x128xf32>
    %cst_144 = arith.constant dense<0.000000e+00> : vector<1x128xf32>
    %219 = tpu.matmul %216, %218, %cst_144 {dimension_numbers = #tpu.dot_dimension_numbers<[1], [0], [0], [1], [0, 0, 1, 1], [], []>} : vector<1x32xf32>, vector<32x128xf32>, vector<1x128xf32> -> vector<1x128xf32>
    %220 = arith.addf %215, %219 : vector<1x128xf32>
    %221 = vector.extract_strided_slice %91 {offsets = [26, 0], sizes = [1, 32], strides = [1, 1]} : vector<28x32xf32> to vector<1x32xf32>
    %c26 = arith.constant 26 : index
    %c0_145 = arith.constant 0 : index
    %c0_146 = arith.constant 0 : index
    %222 = vector.load %arg8[%c26, %c0_145, %c0_146] : memref<28x32x128xf32, #tpu.memory_space<vmem>>, vector<1x32x128xf32>
    %223 = vector.shape_cast %222 : vector<1x32x128xf32> to vector<32x128xf32>
    %cst_147 = arith.constant dense<0.000000e+00> : vector<1x128xf32>
    %224 = tpu.matmul %221, %223, %cst_147 {dimension_numbers = #tpu.dot_dimension_numbers<[1], [0], [0], [1], [0, 0, 1, 1], [], []>} : vector<1x32xf32>, vector<32x128xf32>, vector<1x128xf32> -> vector<1x128xf32>
    %225 = arith.addf %220, %224 : vector<1x128xf32>
    %226 = vector.extract_strided_slice %91 {offsets = [27, 0], sizes = [1, 32], strides = [1, 1]} : vector<28x32xf32> to vector<1x32xf32>
    %c27 = arith.constant 27 : index
    %c0_148 = arith.constant 0 : index
    %c0_149 = arith.constant 0 : index
    %227 = vector.load %arg8[%c27, %c0_148, %c0_149] : memref<28x32x128xf32, #tpu.memory_space<vmem>>, vector<1x32x128xf32>
    %228 = vector.shape_cast %227 : vector<1x32x128xf32> to vector<32x128xf32>
    %cst_150 = arith.constant dense<0.000000e+00> : vector<1x128xf32>
    %229 = tpu.matmul %226, %228, %cst_150 {dimension_numbers = #tpu.dot_dimension_numbers<[1], [0], [0], [1], [0, 0, 1, 1], [], []>} : vector<1x32xf32>, vector<32x128xf32>, vector<1x128xf32> -> vector<1x128xf32>
    %230 = arith.addf %225, %229 : vector<1x128xf32>
    %231 = arith.addf %230, %5 : vector<1x128xf32>
    %cst_151 = arith.constant 0.000000e+00 : f32
    %232 = vector.broadcast %cst_151 : f32 to vector<1x128xf32>
    %233 = arith.maximumf %231, %232 : vector<1x128xf32>
    %c0_152 = arith.constant 0 : index
    %c0_153 = arith.constant 0 : index
    %234 = vector.load %arg9[%c0_152, %c0_153] : memref<128x1xf32, #tpu.memory_space<vmem>>, vector<128x1xf32>
    %cst_154 = arith.constant dense<0.000000e+00> : vector<1x1xf32>
    %235 = tpu.matmul %233, %234, %cst_154 {dimension_numbers = #tpu.dot_dimension_numbers<[1], [0], [0], [1], [0, 0, 1, 1], [], []>} : vector<1x128xf32>, vector<128x1xf32>, vector<1x1xf32> -> vector<1x1xf32>
    %236 = arith.addf %235, %6 : vector<1x1xf32>
    %237 = arith.negf %236 : vector<1x1xf32>
    %238 = math.exp %237 : vector<1x1xf32>
    %cst_155 = arith.constant 1.000000e+00 : f32
    %239 = vector.broadcast %cst_155 : f32 to vector<1x1xf32>
    %240 = arith.addf %239, %238 : vector<1x1xf32>
    %241 = arith.divf %239, %240 : vector<1x1xf32>
    %c0_156 = arith.constant 0 : index
    %c0_157 = arith.constant 0 : index
    %c0_158 = arith.constant 0 : index
    %242 = vector.load %arg11[%c0_156, %c0_157, %c0_158] : memref<1x1x1xf32, #tpu.memory_space<vmem>>, vector<1x1x1xf32>
    %243 = vector.shape_cast %242 : vector<1x1x1xf32> to vector<1x1xf32>
    %244 = vector.shape_cast %241 : vector<1x1xf32> to vector<1x1x1xf32>
    tpu.vector_store %arg11[%c0_156, %c0_157, %c0_158], %244 {strides = array<i32>} : memref<1x1x1xf32, #tpu.memory_space<vmem>>, vector<1x1x1xf32>,
    return
  }
  func.func @transform_0(%arg0: i32) -> (i32, i32, i32) {
    %c0_i32 = arith.constant 0 : i32
    %c0_i32_0 = arith.constant 0 : i32
    %c0_i32_1 = arith.constant 0 : i32
    return %arg0, %c0_i32, %c0_i32_0 : i32, i32, i32
  }
  func.func @transform_1(%arg0: i32) -> (i32, i32) {
    %c0_i32 = arith.constant 0 : i32
    %c0_i32_0 = arith.constant 0 : i32
    %c0_i32_1 = arith.constant 0 : i32
    return %c0_i32, %c0_i32_0 : i32, i32
  }
  func.func @transform_2(%arg0: i32) -> (i32, i32, i32) {
    %c0_i32 = arith.constant 0 : i32
    %c0_i32_0 = arith.constant 0 : i32
    %c0_i32_1 = arith.constant 0 : i32
    %c0_i32_2 = arith.constant 0 : i32
    return %c0_i32, %c0_i32_0, %c0_i32_1 : i32, i32, i32
  }
  func.func @transform_3(%arg0: i32) -> (i32, i32) {
    %c0_i32 = arith.constant 0 : i32
    %c0_i32_0 = arith.constant 0 : i32
    %c0_i32_1 = arith.constant 0 : i32
    return %c0_i32, %c0_i32_0 : i32, i32
  }
  func.func @transform_4(%arg0: i32) -> (i32, i32, i32) {
    %c0_i32 = arith.constant 0 : i32
    %c0_i32_0 = arith.constant 0 : i32
    %c0_i32_1 = arith.constant 0 : i32
    %c0_i32_2 = arith.constant 0 : i32
    return %c0_i32, %c0_i32_0, %c0_i32_1 : i32, i32, i32
  }
  func.func @transform_5(%arg0: i32) -> (i32, i32) {
    %c0_i32 = arith.constant 0 : i32
    %c0_i32_0 = arith.constant 0 : i32
    %c0_i32_1 = arith.constant 0 : i32
    return %c0_i32, %c0_i32_0 : i32, i32
  }
  func.func @transform_6(%arg0: i32) -> (i32, i32, i32) {
    %c0_i32 = arith.constant 0 : i32
    %c0_i32_0 = arith.constant 0 : i32
    %c0_i32_1 = arith.constant 0 : i32
    %c0_i32_2 = arith.constant 0 : i32
    return %c0_i32, %c0_i32_0, %c0_i32_1 : i32, i32, i32
  }
  func.func @transform_7(%arg0: i32) -> (i32, i32, i32) {
    %c0_i32 = arith.constant 0 : i32
    %c0_i32_0 = arith.constant 0 : i32
    %c0_i32_1 = arith.constant 0 : i32
    %c0_i32_2 = arith.constant 0 : i32
    return %c0_i32, %c0_i32_0, %c0_i32_1 : i32, i32, i32
  }
  func.func @transform_8(%arg0: i32) -> (i32, i32) {
    %c0_i32 = arith.constant 0 : i32
    %c0_i32_0 = arith.constant 0 : i32
    %c0_i32_1 = arith.constant 0 : i32
    return %c0_i32, %c0_i32_0 : i32, i32
  }
  func.func @transform_9(%arg0: i32) -> (i32, i32) {
    %c0_i32 = arith.constant 0 : i32
    %c0_i32_0 = arith.constant 0 : i32
    %c0_i32_1 = arith.constant 0 : i32
    return %c0_i32, %c0_i32_0 : i32, i32
  }
  func.func @transform_10(%arg0: i32) -> (i32, i32, i32) {
    %c0_i32 = arith.constant 0 : i32
    %c0_i32_0 = arith.constant 0 : i32
    %c0_i32_1 = arith.constant 0 : i32
    return %arg0, %c0_i32, %c0_i32_0 : i32, i32, i32
  }
}

</mosaic_0001>

<bundles_post_ra>
// kernel: eeg_model_forward.1
= control target key start
LH: loop header
LB: loop body
LE: loop exit
PB: predicated region body
PF: predicated region fallthrough
CT: control target
= control target key end

     0   :  { %s4473_s13 = smov 0   ;;  %s6389_s0 = inlined_call_operand.vmem [shape: f32[2,250,315], index: 0, kind: input, shape index: {}]   ;;  %s6390_s1 = inlined_call_operand.vmem [shape: f32[315,10], index: 1, kind: input, shape index: {}]   ;;  %s6391_s2 = inlined_call_operand.vmem [shape: f32[5,10,8], index: 2, kind: input, shape index: {}]   ;;  %s6392_s3 = inlined_call_operand.vmem [shape: f32[84,250], index: 3, kind: input, shape index: {}]   ;;  %s6393_s4 = inlined_call_operand.vmem [shape: f32[3,8,32], index: 4, kind: input, shape index: {}]   ;;  %s6394_s5 = inlined_call_operand.vmem [shape: f32[28,84], index: 5, kind: input, shape index: {}]   ;;  %s6395_s6 = inlined_call_operand.vmem [shape: f32[3,32,32], index: 6, kind: input, shape index: {}]   ;;  %s6396_s7 = inlined_call_operand.vmem [shape: f32[28,32,128], index: 7, kind: input, shape index: {}]   ;;  %s6397_s8 = inlined_call_operand.vmem [shape: f32[128,1], index: 8, kind: input, shape index: {}]   ;;  %s6398_s9 = inlined_call_operand.vmem [shape: f32[6,128], index: 9, kind: input, shape index: {}]   ;;  %s6399_s10 = inlined_call_operand.vmem [shape: f32[2,1,1], index: 10, kind: output, shape index: {}]  }
   0x1 LB: > { %s3964_s14 = sadd.s32 4294967295, %s4416_s13   ;;  %p3968_p0 = scmp.ge.s32.totalorder %s4416_s13, 1  ;;  %s4416_s13 = sphi %s4473_s13, %s20_s13  }
   0x2   : > { %p312_p1 = scmp.lt.s32.totalorder %s4416_s13, 3 }
   0x4   : > { %p313_p2 = pnand %p3968_p0, %p312_p1 }
   0x6   : > { %316 = sbr.rel (%p313_p2) target bundleno = 1909 (0x775), region = 60 }
   0xb   : > { %v468_v0 = vld [vmem:[%s6390_s1 + $0x78] sm:$0xff]  ;;  %vm591_vm0 = vcmask 1042432   ;;  %p348_p3 = scmp.lt.s32.totalorder %s3964_s14, 1  ;;  %v467_v3 = vld [vmem:[%s6390_s1 + $0x70] sm:$0xff]  ;;  %v466_v6 = vld [vmem:[%s6390_s1 + $0x68] sm:$0xff]  ;;  %vm494_vm1 = vcmask 482304  }
   0xc   : > { %v484_v1 = vld [vmem:[%s6390_s1 + $0xf8] sm:$0xff]  ;;  %595 = vmatpush.msra.mxu0 %v468_v0  ;;  %v483_v4 = vld [vmem:[%s6390_s1 + $0xf0] sm:$0xff]  ;;  %v482_v7 = vld [vmem:[%s6390_s1 + $0xe8] sm:$0xff]  ;;  %vm998_vm2 = vcmask 1041408   ;;  %vm1074_vm3 = vcmask 1046528   ;;  %vm1138_vm4 = vcmask 80896  }
   0xd   : > { %v492_v2 = vld [vmem:[%s6390_s1 + $0x138] sm:$0x7]  ;;  %708 = vmatpush.msra.mxu1 %v484_v1  ;;  %v491_v5 = vld [vmem:[%s6390_s1 + $0x130] sm:$0xff]  ;;  %v490_v8 = vld [vmem:[%s6390_s1 + $0x128] sm:$0xff]  ;;  %s6523_s14 = smov (!%p348_p3, %s3964_s14), 1  ;;  %vm1502_vm5 = vcmask 1045504  }
   0xe   : > { %3970 = vmatpush.msk.msra.mxu2 %vm591_vm0, %v492_v2  ;;  %596 = vmatpush.msra.mxu0 %v467_v3  ;;  %v465_v9 = vld [vmem:[%s6390_s1 + $0x60] sm:$0xff]  ;;  %v464_v12 = vld [vmem:[%s6390_s1 + $0x58] sm:$0xff]  ;;  %s4395_s27 = smul.u32 768, %s6523_s14  ;;  %v463_v15 = vld [vmem:[%s6390_s1 + $0x50] sm:$0xff]  ;;  %vm1781_vm6 = vcmask 1044480   ;;  %vm1065_vm7 = vcmask 1043456   ;;  %s355_s17 = scalar_lea.vmem %s6399_s10, %s6523_s14 }
   0xf   : > { %709 = vmatpush.msra.mxu1 %v483_v4  ;;  %v481_v10 = vld [vmem:[%s6390_s1 + $0xe0] sm:$0xff]  ;;  %v480_v13 = vld [vmem:[%s6390_s1 + $0xd8] sm:$0xff]  ;;  %v479_v16 = vld [vmem:[%s6390_s1 + $0xd0] sm:$0xff]  ;;  %vm2358_vm8 = vcmask 998400   ;;  %vm2517_vm9 = vcmask 1040384   ;;  %vm2569_vm10 = vcmask 64512  }
  0x10   : > { %830 = vmatpush.msra.mxu2 %v491_v5  ;;  %597 = vmatpush.msra.mxu0 %v466_v6  ;;  %v489_v11 = vld [vmem:[%s6390_s1 + $0x120] sm:$0xff]  ;;  %v488_v14 = vld [vmem:[%s6390_s1 + $0x118] sm:$0xff]  ;;  %v487_v17 = vld [vmem:[%s6390_s1 + $0x110] sm:$0xff]  ;;  %s4550_s24 = scalar_lea.vmem %s6389_s0, %s4395_s27  ;;  %vm2825_vm11 = vcmask 687104   ;;  %vm2907_vm12 = vcmask 261120   ;;  %vm3915_vm0 = vcmask 0  }
  0x11   : > { %710 = vmatpush.msra.mxu1 %v482_v7  ;;  %v462_v18 = vld [vmem:[%s6390_s1 + $0x48] sm:$0xff]  ;;  %v461_v21 = vld [vmem:[%s6390_s1 + $0x40] sm:$0xff]  ;;  %v359_v24 = vld [vmem:[%s4550_s24 + $0x10] sm:$0xff] }
  0x12   : > { %831 = vmatpush.msra.mxu2 %v490_v8  ;;  %598 = vmatpush.msra.mxu0 %v465_v9  ;;  %v478_v19 = vld [vmem:[%s6390_s1 + $0xc8] sm:$0xff]  ;;  %v477_v22 = vld [vmem:[%s6390_s1 + $0xc0] sm:$0xff]  ;;  %v460_v25 = vld [vmem:[%s6390_s1 + $0x38] sm:$0xff] }
  0x13   : > { %711 = vmatpush.msra.mxu1 %v481_v10  ;;  %v486_v20 = vld [vmem:[%s6390_s1 + $0x108] sm:$0xff]  ;;  %v485_v23 = vld [vmem:[%s6390_s1 + $0x100] sm:$0xff]  ;;  %v476_v26 = vld [vmem:[%s6390_s1 + $0xb8] sm:$0xff] }
  0x14   : > { %832 = vmatpush.msra.mxu2 %v489_v11  ;;  %599 = vmatpush.msra.mxu0 %v464_v12  ;;  %v459_v27 = vld [vmem:[%s6390_s1 + $0x30] sm:$0xff]  ;;  %v458_v29 = vld [vmem:[%s6390_s1 + $0x28] sm:$0xff]  ;;  %v457_v31 = vld [vmem:[%s6390_s1 + $0x20] sm:$0xff] }
  0x15   : > { %712 = vmatpush.msra.mxu1 %v480_v13  ;;  %v475_v28 = vld [vmem:[%s6390_s1 + $0xb0] sm:$0xff]  ;;  %v474_v30 = vld [vmem:[%s6390_s1 + $0xa8] sm:$0xff]  ;;  %v473_v32 = vld [vmem:[%s6390_s1 + $0xa0] sm:$0xff] }
  0x16   : > { %833 = vmatpush.msra.mxu2 %v488_v14  ;;  %600 = vmatpush.msra.mxu0 %v463_v15  ;;  %v362_v33 = vld [vmem:[%s4550_s24 + $0x28] sm:$0xff]  ;;  %v456_v34 = vld [vmem:[%s6390_s1 + $0x18] sm:$0xff]  ;;  %v455_v36 = vld [vmem:[%s6390_s1 + $0x10] sm:$0xff] }
  0x17   : > { %713 = vmatpush.msra.mxu1 %v479_v16  ;;  %v472_v35 = vld [vmem:[%s6390_s1 + $0x98] sm:$0xff]  ;;  %v471_v37 = vld [vmem:[%s6390_s1 + $0x90] sm:$0xff]  ;;  %v454_v38 = vld [vmem:[%s6390_s1 + $0x8] sm:$0xff] }
  0x18   : > { %834 = vmatpush.msra.mxu2 %v487_v17  ;;  %601 = vmatpush.msra.mxu0 %v462_v18  ;;  %v470_v39 = vld [vmem:[%s6390_s1 + $0x88] sm:$0xff]  ;;  %v453_v40 = vld [vmem:[%s6390_s1] sm:$0xff]  ;;  %v360_v45 = vld [vmem:[%s4550_s24 + $0x18] sm:$0xff] }
  0x19   : > { %714 = vmatpush.msra.mxu1 %v478_v19  ;;  %v469_v41 = vld [vmem:[%s6390_s1 + $0x80] sm:$0xff]  ;;  %v358_v43 = vld [vmem:[%s4550_s24 + $0x8] sm:$0xff]  ;;  %v368_v47 = vld [vmem:[%s4550_s24 + $0x58] sm:$0xff] }
  0x1a   : > { %835 = vmatpush.msra.mxu2 %v486_v20  ;;  %602 = vmatpush.msra.mxu0 %v461_v21  ;;  %v357_v42 = vld [vmem:[%s4550_s24] sm:$0xff]  ;;  %v363_v48 = vld [vmem:[%s4550_s24 + $0x30] sm:$0xff]  ;;  %v364_v49 = vld [vmem:[%s4550_s24 + $0x38] sm:$0xff] }
  0x1b   : > { %715 = vmatpush.msra.mxu1 %v477_v22  ;;  %v365_v44 = vld [vmem:[%s4550_s24 + $0x40] sm:$0xff]  ;;  %v371_v50 = vld [vmem:[%s4550_s24 + $0x70] sm:$0xff]  ;;  %v366_v51 = vld [vmem:[%s4550_s24 + $0x48] sm:$0xff] }
  0x1c   : > { %836 = vmatpush.msra.mxu2 %v485_v23  ;;  %603 = vmatpush.msra.mxu0 %v460_v25  ;;  %v361_v46 = vld [vmem:[%s4550_s24 + $0x20] sm:$0xff]  ;;  %v367_v52 = vld [vmem:[%s4550_s24 + $0x50] sm:$0xff]  ;;  %v374_v53 = vld [vmem:[%s4550_s24 + $0x88] sm:$0xff] }
  0x1d   : > { %3971 = vmatmul.msk.f32.vlgmr.msra.gmra.mxu2 %vm494_vm1, %v359_v24  ;;  %716 = vmatpush.msra.mxu1 %v476_v26  ;;  %v369_v54 = vld [vmem:[%s4550_s24 + $0x60] sm:$0xff]  ;;  %v370_v55 = vld [vmem:[%s4550_s24 + $0x68] sm:$0xff]  ;;  %v372_v57 = vld [vmem:[%s4550_s24 + $0x78] sm:$0xff] }
  0x1e   : > { %604 = vmatpush.msra.mxu0 %v459_v27  ;;  %v377_v56 = vld [vmem:[%s4550_s24 + $0xa0] sm:$0xff]  ;;  %v380_v59 = vld [vmem:[%s4550_s24 + $0xb8] sm:$0xff]  ;;  %v375_v60 = vld [vmem:[%s4550_s24 + $0x90] sm:$0xff] }
  0x1f   : > { %717 = vmatpush.msra.mxu1 %v475_v28  ;;  %v373_v58 = vld [vmem:[%s4550_s24 + $0x80] sm:$0xff]  ;;  %v376_v61 = vld [vmem:[%s4550_s24 + $0x98] sm:$0xff]  ;;  %v383_v62 = vld [vmem:[%s4550_s24 + $0xd0] sm:$0xff] }
  0x20   : > { %605 = vmatpush.msra.mxu0 %v458_v29  ;;  %v378_v63 = vld [vmem:[%s4550_s24 + $0xa8] sm:$0xff]  ;;  %v379_v0 = vld [vmem:[%s4550_s24 + $0xb0] sm:$0xff]  ;;  %v381_v2 = vld [vmem:[%s4550_s24 + $0xc0] sm:$0xff] }
  0x21   : > { %718 = vmatpush.msra.mxu1 %v474_v30  ;;  %v386_v1 = vld [vmem:[%s4550_s24 + $0xe8] sm:$0xff]  ;;  %v389_v4 = vld [vmem:[%s4550_s24 + $0x100] sm:$0xff]  ;;  %v384_v5 = vld [vmem:[%s4550_s24 + $0xd8] sm:$0xff] }
  0x22   : > { %606 = vmatpush.msra.mxu0 %v457_v31  ;;  %v382_v3 = vld [vmem:[%s4550_s24 + $0xc8] sm:$0xff]  ;;  %v385_v6 = vld [vmem:[%s4550_s24 + $0xe0] sm:$0xff]  ;;  %v392_v7 = vld [vmem:[%s4550_s24 + $0x118] sm:$0xff] }
  0x23   : > { %719 = vmatpush.msra.mxu1 %v473_v32  ;;  %v387_v8 = vld [vmem:[%s4550_s24 + $0xf0] sm:$0xff]  ;;  %v388_v9 = vld [vmem:[%s4550_s24 + $0xf8] sm:$0xff]  ;;  %v390_v11 = vld [vmem:[%s4550_s24 + $0x108] sm:$0xff] }
  0x24   : > { %607 = vmatpush.msra.mxu0 %v456_v34  ;;  %v395_v10 = vld [vmem:[%s4550_s24 + $0x130] sm:$0xff]  ;;  %v398_v13 = vld [vmem:[%s4550_s24 + $0x148] sm:$0xff]  ;;  %v393_v14 = vld [vmem:[%s4550_s24 + $0x120] sm:$0xff] }
  0x25   : > { %3972 = vmatmul.msk.f32.gmra.mxu2 %vm494_vm1, %v362_v33  ;;  %720 = vmatpush.msra.mxu1 %v472_v35  ;;  %v391_v12 = vld [vmem:[%s4550_s24 + $0x110] sm:$0xff]  ;;  %v394_v15 = vld [vmem:[%s4550_s24 + $0x128] sm:$0xff]  ;;  %v401_v16 = vld [vmem:[%s4550_s24 + $0x160] sm:$0xff] }
  0x26   : > { %608 = vmatpush.msra.mxu0 %v455_v36  ;;  %v396_v17 = vld [vmem:[%s4550_s24 + $0x138] sm:$0xff]  ;;  %v397_v18 = vld [vmem:[%s4550_s24 + $0x140] sm:$0xff]  ;;  %v399_v20 = vld [vmem:[%s4550_s24 + $0x150] sm:$0xff] }
  0x27   : > { %721 = vmatpush.msra.mxu1 %v471_v37  ;;  %v404_v19 = vld [vmem:[%s4550_s24 + $0x178] sm:$0xff]  ;;  %v407_v22 = vld [vmem:[%s4550_s24 + $0x190] sm:$0xff]  ;;  %v402_v26 = vld [vmem:[%s4550_s24 + $0x168] sm:$0xff] }
  0x28   : > { %609 = vmatpush.msra.mxu0 %v454_v38  ;;  %v400_v21 = vld [vmem:[%s4550_s24 + $0x158] sm:$0xff]  ;;  %v4003_v24 = vld [vmem:[%s6391_s2 + $0x10] sm:$0xff]  ;;  %v410_v28 = vld [vmem:[%s4550_s24 + $0x1a8] sm:$0xff] }
  0x29   : > { %722 = vmatpush.msra.mxu1 %v470_v39  ;;  %v4004_v23 = vld [vmem:[%s6391_s2 + $0x18] sm:$0x3]  ;;  %v403_v27 = vld [vmem:[%s4550_s24 + $0x170] sm:$0xff]  ;;  %v356_v29 = vld [vmem:[%s6398_s9] sm:$0x3f] }
  0x2a   : > { %610 = vmatpush.msra.mxu0 %v453_v40  ;;  %4005 = vmatpush.msk.msra.mxu3 %vm998_vm2, %v4004_v23  ;;  %v4687_v30 = vperm.slane %v356_v29, 0  ;;  %v405_v33 = vld [vmem:[%s4550_s24 + $0x180] sm:$0xff]  ;;  %v406_v36 = vld [vmem:[%s4550_s24 + $0x188] sm:$0xff] }
  0x2b   : > { %723 = vmatpush.msra.mxu1 %v469_v41  ;;  %611 = vmatmul.f32.vlgmr.msra.gmra.mxu0 %v357_v42  ;;  %v413_v37 = vld [vmem:[%s4550_s24 + $0x1c0] sm:$0xff]  ;;  %v408_v42 = vld [vmem:[%s4550_s24 + $0x198] sm:$0xff] }
  0x2c   : > { %724 = vmatmul.f32.vlgmr.msra.gmra.mxu1 %v358_v43  ;;  %1221 = vmatpush.msra.mxu3 %v4003_v24  ;;  %v418_v24 = vld [vmem:[%s4550_s24 + $0x1e8] sm:$0xff] }
  0x2d   : > { %3973 = vmatmul.msk.f32.gmra.mxu2 %vm494_vm1, %v365_v44 }
  0x33   : > { %614 = vmatmul.f32.gmra.mxu0 %v360_v45 }
  0x34   : > { %727 = vmatmul.f32.gmra.mxu1 %v361_v46  ;;  %v409_v46 = vld [vmem:[%s4550_s24 + $0x1a0] sm:$0xff] }
  0x35   : > { %3974 = vmatmul.msk.f32.gmra.mxu2 %vm494_vm1, %v368_v47  ;;  %v416_v47 = vld [vmem:[%s4550_s24 + $0x1d8] sm:$0xff] }
  0x3b   : > { %617 = vmatmul.f32.gmra.mxu0 %v363_v48 }
  0x3c   : > { %730 = vmatmul.f32.gmra.mxu1 %v364_v49 }
  0x3d   : > { %3975 = vmatmul.msk.f32.gmra.mxu2 %vm494_vm1, %v371_v50 }
  0x43   : > { %620 = vmatmul.f32.gmra.mxu0 %v366_v51 }
  0x44   : > { %733 = vmatmul.f32.gmra.mxu1 %v367_v52 }
  0x45   : > { %3976 = vmatmul.msk.f32.gmra.mxu2 %vm494_vm1, %v374_v53 }
  0x4b   : > { %623 = vmatmul.f32.gmra.mxu0 %v369_v54  ;;  %v411_v54 = vld [vmem:[%s4550_s24 + $0x1b0] sm:$0xff] }
  0x4c   : > { %736 = vmatmul.f32.gmra.mxu1 %v370_v55 }
  0x4d   : > { %3977 = vmatmul.msk.f32.gmra.mxu2 %vm494_vm1, %v377_v56 }
  0x53   : > { %626 = vmatmul.f32.gmra.mxu0 %v372_v57 }
  0x54   : > { %739 = vmatmul.f32.gmra.mxu1 %v373_v58 }
  0x55   : > { %3978 = vmatmul.msk.f32.gmra.mxu2 %vm494_vm1, %v380_v59  ;;  %v412_v59 = vld [vmem:[%s4550_s24 + $0x1b8] sm:$0xff] }
  0x5b   : > { %629 = vmatmul.f32.gmra.mxu0 %v375_v60  ;;  %v419_v60 = vld [vmem:[%s4550_s24 + $0x1f0] sm:$0xff] }
  0x5c   : > { %742 = vmatmul.f32.gmra.mxu1 %v376_v61 }
  0x5d   : > { %3979 = vmatmul.msk.f32.gmra.mxu2 %vm494_vm1, %v383_v62 }
  0x63   : > { %632 = vmatmul.f32.gmra.mxu0 %v378_v63 }
  0x64   : > { %745 = vmatmul.f32.gmra.mxu1 %v379_v0 }
  0x65   : > { %3980 = vmatmul.msk.f32.gmra.mxu2 %vm494_vm1, %v386_v1 }
  0x6b   : > { %635 = vmatmul.f32.gmra.mxu0 %v381_v2 }
  0x6c   : > { %748 = vmatmul.f32.gmra.mxu1 %v382_v3 }
  0x6d   : > { %3981 = vmatmul.msk.f32.gmra.mxu2 %vm494_vm1, %v389_v4 }
  0x73   : > { %638 = vmatmul.f32.gmra.mxu0 %v384_v5 }
  0x74   : > { %751 = vmatmul.f32.gmra.mxu1 %v385_v6  ;;  %v414_v6 = vld [vmem:[%s4550_s24 + $0x1c8] sm:$0xff] }
  0x75   : > { %3982 = vmatmul.msk.f32.gmra.mxu2 %vm494_vm1, %v392_v7 }
  0x7b   : > { %641 = vmatmul.f32.gmra.mxu0 %v387_v8 }
  0x7c   : > { %754 = vmatmul.f32.gmra.mxu1 %v388_v9 }
  0x7d   : > { %3983 = vmatmul.msk.f32.gmra.mxu2 %vm494_vm1, %v395_v10  ;;  %v415_v10 = vld [vmem:[%s4550_s24 + $0x1d0] sm:$0xff] }
  0x83   : > { %644 = vmatmul.f32.gmra.mxu0 %v390_v11  ;;  %v422_v11 = vld [vmem:[%s4550_s24 + $0x208] sm:$0xff] }
  0x84   : > { %757 = vmatmul.f32.gmra.mxu1 %v391_v12 }
  0x85   : > { %3984 = vmatmul.msk.f32.gmra.mxu2 %vm494_vm1, %v398_v13 }
  0x8b   : > { %647 = vmatmul.f32.gmra.mxu0 %v393_v14 }
  0x8c   : > { %760 = vmatmul.f32.gmra.mxu1 %v394_v15 }
  0x8d   : > { %3985 = vmatmul.msk.f32.gmra.mxu2 %vm494_vm1, %v401_v16 }
  0x93   : > { %650 = vmatmul.f32.gmra.mxu0 %v396_v17 }
  0x94   : > { %763 = vmatmul.f32.gmra.mxu1 %v397_v18 }
  0x95   : > { %3986 = vmatmul.msk.f32.gmra.mxu2 %vm494_vm1, %v404_v19 }
  0x9b   : > { %653 = vmatmul.f32.gmra.mxu0 %v399_v20  ;;  %v417_v20 = vld [vmem:[%s4550_s24 + $0x1e0] sm:$0xff] }
  0x9c   : > { %766 = vmatmul.f32.gmra.mxu1 %v400_v21 }
  0x9d   : > { %3987 = vmatmul.msk.f32.gmra.mxu2 %vm494_vm1, %v407_v22 }
  0xa0   : > { %v838_v25 = vpop.f32.mrf.mxu2 }
  0xa3   : > { %656 = vmatmul.f32.gmra.mxu0 %v402_v26 }
  0xa4   : > { %769 = vmatmul.f32.gmra.mxu1 %v403_v27 }
  0xa5   : > { %3988 = vmatmul.msk.f32.gmra.mxu2 %vm494_vm1, %v410_v28 }
  0xa8   : > { %v841_v31 = vpop.f32.mrf.mxu2  ;;  %v612_v32 = vpop.f32.mrf.mxu0 }
  0xa9   : > { %v613_v34 = vadd.f32 %v612_v32, %v4687_v30  ;;  %v725_v35 = vpop.f32.mrf.mxu1 }
  0xab   : > { %v726_v38 = vadd.f32 %v725_v35, %v613_v34  ;;  %659 = vmatmul.f32.gmra.mxu0 %v405_v33  ;;  %v420_v35 = vld [vmem:[%s4550_s24 + $0x1f8] sm:$0xff] }
  0xac   : > { %772 = vmatmul.f32.gmra.mxu1 %v406_v36 }
  0xad   : > { %3989 = vmatmul.msk.f32.gmra.mxu2 %vm494_vm1, %v413_v37  ;;  %v839_v39 = vadd.f32 %v838_v25, %v726_v38  ;;  %v425_v25 = vld [vmem:[%s4550_s24 + $0x220] sm:$0xff] }
  0xaf   : > { %v934_v43 = vmax.f32 %v839_v39, 0.0  ;;  %v421_v39 = vld [vmem:[%s4550_s24 + $0x200] sm:$0xff] }
  0xb0   : > { %v844_v40 = vpop.f32.mrf.mxu2  ;;  %v615_v41 = vpop.f32.mrf.mxu0 }
  0xb1   : > { %v616_v44 = vadd.f32 %v615_v41, %v4687_v30  ;;  %v728_v45 = vpop.f32.mrf.mxu1  ;;  %v999_v49 = vrot.slane %v934_v43, 6 }
  0xb3   : > { %v729_v48 = vadd.f32 %v728_v45, %v616_v44  ;;  %662 = vmatmul.f32.gmra.mxu0 %v408_v42  ;;  %v4701_v55 = vsel %vm998_vm2, 0.0, %v999_v49 }
  0xb4   : > { %775 = vmatmul.f32.gmra.mxu1 %v409_v46  ;;  %v1075_v63 = vrot.slane %v4701_v55, 1 }
  0xb5   : > { %3990 = vmatmul.msk.f32.gmra.mxu2 %vm494_vm1, %v416_v47  ;;  %v842_v50 = vadd.f32 %v841_v31, %v729_v48 }
  0xb7   : > { %v935_v51 = vmax.f32 %v842_v50, 0.0 }
  0xb8   : > { %v847_v52 = vpop.f32.mrf.mxu2  ;;  %v618_v53 = vpop.f32.mrf.mxu0 }
  0xb9   : > { %v1000_v56 = vrot.slane %v935_v51, 6  ;;  %v619_v57 = vadd.f32 %v618_v53, %v4687_v30  ;;  %v731_v58 = vpop.f32.mrf.mxu1  ;;  %v424_v53 = vld [vmem:[%s4550_s24 + $0x218] sm:$0xff] }
  0xbb   : > { %v4707_v61 = vsel %vm998_vm2, %v999_v49, %v1000_v56  ;;  %v732_v62 = vadd.f32 %v731_v58, %v619_v57  ;;  %665 = vmatmul.f32.gmra.mxu0 %v411_v54  ;;  %v423_v49 = vld [vmem:[%s4550_s24 + $0x210] sm:$0xff] }
  0xbc   : > { %778 = vmatmul.f32.gmra.mxu1 %v412_v59  ;;  %v1076_v0 = vrot.slane %v4707_v61, 1  ;;  %v431_v54 = vld [vmem:[%s4550_s24 + $0x250] sm:$0xff] }
  0xbd   : > { %3991 = vmatmul.msk.f32.gmra.mxu2 %vm494_vm1, %v419_v60  ;;  %v845_v1 = vadd.f32 %v844_v40, %v732_v62  ;;  %v428_v40 = vld [vmem:[%s4550_s24 + $0x238] sm:$0xff] }
  0xbe   : > { %v1077_v2 = vsel %vm1074_vm3, %v1075_v63, %v1076_v0 }
  0xbf   : > { %v936_v3 = vmax.f32 %v845_v1, 0.0  ;;  %4006 = vmatmul.msk.f32.vlgmr.msra.gmra.mxu3 %vm1138_vm4, %v1077_v2  ;;  %v426_v1 = vld [vmem:[%s4550_s24 + $0x228] sm:$0xff] }
  0xc0   : > { %v850_v4 = vpop.f32.mrf.mxu2  ;;  %v621_v5 = vpop.f32.mrf.mxu0 }
  0xc1   : > { %v1002_v7 = vrot.slane %v936_v3, 6  ;;  %v622_v8 = vadd.f32 %v621_v5, %v4687_v30  ;;  %v734_v9 = vpop.f32.mrf.mxu1  ;;  %v427_v5 = vld [vmem:[%s4550_s24 + $0x230] sm:$0xff] }
  0xc3   : > { %v4719_v12 = vsel %vm998_vm2, %v1000_v56, %v1002_v7  ;;  %v735_v13 = vadd.f32 %v734_v9, %v622_v8  ;;  %668 = vmatmul.f32.gmra.mxu0 %v414_v6  ;;  %v434_v6 = vld [vmem:[%s4550_s24 + $0x268] sm:$0xff] }
  0xc4   : > { %781 = vmatmul.f32.gmra.mxu1 %v415_v10  ;;  %v1078_v14 = vrot.slane %v4719_v12, 1 }
  0xc5   : > { %3992 = vmatmul.msk.f32.gmra.mxu2 %vm494_vm1, %v422_v11  ;;  %v848_v15 = vadd.f32 %v847_v52, %v735_v13 }
  0xc6   : > { %v1079_v16 = vsel %vm1074_vm3, %v1076_v0, %v1078_v14 }
  0xc7   : > { %v937_v17 = vmax.f32 %v848_v15, 0.0  ;;  %4007 = vmatmul.msk.f32.gmra.mxu3 %vm1138_vm4, %v1079_v16  ;;  %v429_v16 = vld [vmem:[%s4550_s24 + $0x240] sm:$0xff] }
  0xc8   : > { %v853_v18 = vpop.f32.mrf.mxu2  ;;  %v624_v19 = vpop.f32.mrf.mxu0 }
  0xc9   : > { %v1004_v21 = vrot.slane %v937_v17, 6  ;;  %v625_v22 = vadd.f32 %v624_v19, %v4687_v30  ;;  %v737_v23 = vpop.f32.mrf.mxu1 }
  0xcb   : > { %v4730_v26 = vsel %vm998_vm2, %v1002_v7, %v1004_v21  ;;  %v738_v27 = vadd.f32 %v737_v23, %v625_v22  ;;  %671 = vmatmul.f32.gmra.mxu0 %v417_v20  ;;  %v430_v20 = vld [vmem:[%s4550_s24 + $0x248] sm:$0xff] }
  0xcc   : > { %784 = vmatmul.f32.gmra.mxu1 %v418_v24  ;;  %v1080_v28 = vrot.slane %v4730_v26, 1 }
  0xcd   : > { %3993 = vmatmul.msk.f32.gmra.mxu2 %vm494_vm1, %v425_v25  ;;  %v851_v29 = vadd.f32 %v850_v4, %v738_v27 }
  0xce   : > { %v1081_v31 = vsel %vm1074_vm3, %v1078_v14, %v1080_v28 }
  0xcf   : > { %v938_v32 = vmax.f32 %v851_v29, 0.0  ;;  %4008 = vmatmul.msk.f32.gmra.mxu3 %vm1138_vm4, %v1081_v31 }
  0xd0   : > { %v856_v33 = vpop.f32.mrf.mxu2  ;;  %v627_v34 = vpop.f32.mrf.mxu0 }
  0xd1   : > { %v1006_v36 = vrot.slane %v938_v32, 6  ;;  %v628_v37 = vadd.f32 %v627_v34, %v4687_v30  ;;  %v740_v38 = vpop.f32.mrf.mxu1  ;;  %v432_v32 = vld [vmem:[%s4550_s24 + $0x258] sm:$0xff] }
  0xd3   : > { %v4741_v41 = vsel %vm998_vm2, %v1004_v21, %v1006_v36  ;;  %v741_v42 = vadd.f32 %v740_v38, %v628_v37  ;;  %674 = vmatmul.f32.gmra.mxu0 %v420_v35  ;;  %v437_v21 = vld [vmem:[%s4550_s24 + $0x280] sm:$0xff]  ;;  %v440_v37 = vld [vmem:[%s4550_s24 + $0x298] sm:$0xff] }
  0xd4   : > { %787 = vmatmul.f32.gmra.mxu1 %v421_v39  ;;  %v1082_v43 = vrot.slane %v4741_v41, 1 }
  0xd5   : > { %3994 = vmatmul.msk.f32.gmra.mxu2 %vm494_vm1, %v428_v40  ;;  %v854_v44 = vadd.f32 %v853_v18, %v741_v42 }
  0xd6   : > { %v1083_v45 = vsel %vm1074_vm3, %v1080_v28, %v1082_v43 }
  0xd7   : > { %v939_v46 = vmax.f32 %v854_v44, 0.0  ;;  %4009 = vmatmul.msk.f32.gmra.mxu3 %vm1138_vm4, %v1083_v45 }
  0xd8   : > { %v859_v47 = vpop.f32.mrf.mxu2  ;;  %v630_v48 = vpop.f32.mrf.mxu0 }
  0xd9   : > { %v1008_v50 = vrot.slane %v939_v46, 6  ;;  %v631_v51 = vadd.f32 %v630_v48, %v4687_v30  ;;  %v743_v52 = vpop.f32.mrf.mxu1  ;;  %v4072_v48 = vld [vmem:[%s6391_s2 + $0x28] sm:$0x3] }
  0xda   : > { %4073 = vmatpush.msk.msrb.mxu2 %vm998_vm2, %v4072_v48 }
  0xdb   : > { %v4752_v56 = vsel %vm998_vm2, %v1006_v36, %v1008_v50  ;;  %v744_v57 = vadd.f32 %v743_v52, %v631_v51  ;;  %677 = vmatmul.f32.gmra.mxu0 %v423_v49  ;;  %v433_v36 = vld [vmem:[%s4550_s24 + $0x260] sm:$0xff]  ;;  %v436_v52 = vld [vmem:[%s4550_s24 + $0x278] sm:$0xff] }
  0xdc   : > { %790 = vmatmul.f32.gmra.mxu1 %v424_v53  ;;  %v1084_v58 = vrot.slane %v4752_v56, 1  ;;  %v443_v53 = vld [vmem:[%s4550_s24 + $0x2b0] sm:$0xff] }
  0xdd   : > { %3995 = vmatmul.msk.f32.gmra.mxu2 %vm494_vm1, %v431_v54  ;;  %v857_v59 = vadd.f32 %v856_v33, %v744_v57  ;;  %v4071_v54 = vld [vmem:[%s6391_s2 + $0x20] sm:$0xff] }
  0xde   : > { %v1085_v60 = vsel %vm1074_vm3, %v1082_v43, %v1084_v58  ;;  %1648 = vmatpush.msrb.mxu2 %v4071_v54  ;;  %v1504_v54 = vrot.slane %v4707_v61, 2 }
  0xdf   : > { %v940_v62 = vmax.f32 %v857_v59, 0.0  ;;  %4010 = vmatmul.msk.f32.gmra.mxu3 %vm1138_vm4, %v1085_v60 }
  0xe0   : > { %v862_v63 = vpop.f32.mrf.mxu2  ;;  %v633_v0 = vpop.f32.mrf.mxu0 }
  0xe1   : > { %v1010_v2 = vrot.slane %v940_v62, 6  ;;  %v634_v3 = vadd.f32 %v633_v0, %v4687_v30  ;;  %v746_v4 = vpop.f32.mrf.mxu1 }
  0xe3   : > { %v4763_v7 = vsel %vm998_vm2, %v1008_v50, %v1010_v2  ;;  %v747_v8 = vadd.f32 %v746_v4, %v634_v3  ;;  %680 = vmatmul.f32.gmra.mxu0 %v426_v1 }
  0xe4   : > { %793 = vmatmul.f32.gmra.mxu1 %v427_v5  ;;  %v1086_v9 = vrot.slane %v4763_v7, 1 }
  0xe5   : > { %3996 = vmatmul.msk.f32.gmra.mxu2 %vm494_vm1, %v434_v6  ;;  %v860_v10 = vadd.f32 %v859_v47, %v747_v8  ;;  %v435_v47 = vld [vmem:[%s4550_s24 + $0x270] sm:$0xff]  ;;  %v446_v8 = vld [vmem:[%s4550_s24 + $0x2c8] sm:$0xff] }
  0xe6   : > { %v1087_v11 = vsel %vm1074_vm3, %v1084_v58, %v1086_v9  ;;  %v439_v6 = vld [vmem:[%s4550_s24 + $0x290] sm:$0xff] }
  0xe7   : > { %v941_v13 = vmax.f32 %v860_v10, 0.0  ;;  %4011 = vmatmul.msk.f32.gmra.mxu3 %vm1138_vm4, %v1087_v11 }
  0xe8   : > { %v865_v14 = vpop.f32.mrf.mxu2  ;;  %v636_v15 = vpop.f32.mrf.mxu0 }
  0xe9   : > { %v1012_v17 = vrot.slane %v941_v13, 6  ;;  %v637_v18 = vadd.f32 %v636_v15, %v4687_v30  ;;  %v749_v19 = vpop.f32.mrf.mxu1 }
  0xeb   : > { %v4774_v22 = vsel %vm998_vm2, %v1010_v2, %v1012_v17  ;;  %v750_v23 = vadd.f32 %v749_v19, %v637_v18  ;;  %683 = vmatmul.f32.gmra.mxu0 %v429_v16  ;;  %v438_v2 = vld [vmem:[%s4550_s24 + $0x288] sm:$0xff]  ;;  %v441_v18 = vld [vmem:[%s4550_s24 + $0x2a0] sm:$0xff]  ;;  %v4107_v19 = vld [vmem:[%s6391_s2 + $0x38] sm:$0x3] }
  0xec   : > { %796 = vmatmul.f32.gmra.mxu1 %v430_v20  ;;  %v1088_v24 = vrot.slane %v4774_v22, 1  ;;  %v4142_v20 = vld [vmem:[%s6391_s2 + $0x48] sm:$0x3]  ;;  %4108 = vmatpush.msk.msrb.mxu0 %vm998_vm2, %v4107_v19  ;;  %v451_v19 = vld [vmem:[%s4550_s24 + $0x2f0] sm:$0x3] }
  0xed   : > { %3997 = vmatmul.msk.f32.gmra.mxu2 %vm494_vm1, %v437_v21  ;;  %v863_v25 = vadd.f32 %v862_v63, %v750_v23  ;;  %4143 = vmatpush.msk.msrb.mxu1 %vm998_vm2, %v4142_v20 }
  0xee   : > { %v1089_v27 = vsel %vm1074_vm3, %v1086_v9, %v1088_v24 }
  0xef   : > { %v942_v28 = vmax.f32 %v863_v25, 0.0  ;;  %4012 = vmatmul.msk.f32.gmra.mxu3 %vm1138_vm4, %v1089_v27  ;;  %v442_v25 = vld [vmem:[%s4550_s24 + $0x2a8] sm:$0xff]  ;;  %v449_v27 = vld [vmem:[%s4550_s24 + $0x2e0] sm:$0xff] }
  0xf0   : > { %v868_v29 = vpop.f32.mrf.mxu2  ;;  %v639_v31 = vpop.f32.mrf.mxu0 }
  0xf1   : > { %v1014_v33 = vrot.slane %v942_v28, 6  ;;  %v640_v34 = vadd.f32 %v639_v31, %v4687_v30  ;;  %v752_v35 = vpop.f32.mrf.mxu1  ;;  %v4106_v28 = vld [vmem:[%s6391_s2 + $0x30] sm:$0xff] }
  0xf2   : > { %1927 = vmatpush.msrb.mxu0 %v4106_v28  ;;  %v1783_v28 = vrot.slane %v4707_v61, 3 }
  0xf3   : > { %v4785_v38 = vsel %vm998_vm2, %v1012_v17, %v1014_v33  ;;  %v753_v39 = vadd.f32 %v752_v35, %v640_v34  ;;  %686 = vmatmul.f32.gmra.mxu0 %v432_v32 }
  0xf4   : > { %799 = vmatmul.f32.gmra.mxu1 %v433_v36  ;;  %v1090_v40 = vrot.slane %v4785_v38, 1 }
  0xf5   : > { %3998 = vmatmul.msk.f32.gmra.mxu2 %vm494_vm1, %v440_v37  ;;  %v866_v42 = vadd.f32 %v865_v14, %v753_v39 }
  0xf6   : > { %v1091_v43 = vsel %vm1074_vm3, %v1088_v24, %v1090_v40 }
  0xf7   : > { %v943_v44 = vmax.f32 %v866_v42, 0.0  ;;  %4013 = vmatmul.msk.f32.gmra.mxu3 %vm1138_vm4, %v1091_v43 }
  0xf8   : > { %v871_v45 = vpop.f32.mrf.mxu2  ;;  %v642_v46 = vpop.f32.mrf.mxu0 }
  0xf9   : > { %v1016_v49 = vrot.slane %v943_v44, 6  ;;  %v643_v50 = vadd.f32 %v642_v46, %v4687_v30  ;;  %v755_v51 = vpop.f32.mrf.mxu1  ;;  %v452_v46 = vld [vmem:[%s4550_s24 + $0x2f8] sm:$0x3] }
  0xfb   : > { %v4803_v57 = vsel %vm998_vm2, %v1014_v33, %v1016_v49  ;;  %v756_v58 = vadd.f32 %v755_v51, %v643_v50  ;;  %689 = vmatmul.f32.gmra.mxu0 %v435_v47 }
  0xfc   : > { %802 = vmatmul.f32.gmra.mxu1 %v436_v52  ;;  %v1092_v59 = vrot.slane %v4803_v57, 1 }
  0xfd   : > { %3999 = vmatmul.msk.f32.gmra.mxu2 %vm494_vm1, %v443_v53  ;;  %v869_v60 = vadd.f32 %v868_v29, %v756_v58  ;;  %v4141_v29 = vld [vmem:[%s6391_s2 + $0x40] sm:$0xff] }
  0xfe   : > { %v1093_v62 = vsel %vm1074_vm3, %v1090_v40, %v1092_v59  ;;  %2205 = vmatpush.msrb.mxu1 %v4141_v29  ;;  %v444_v40 = vld [vmem:[%s4550_s24 + $0x2b8] sm:$0xff] }
  0xff   : > { %v944_v63 = vmax.f32 %v869_v60, 0.0  ;;  %4014 = vmatmul.msk.f32.gmra.mxu3 %vm1138_vm4, %v1093_v62 }
 0x100   : > { %v874_v0 = vpop.f32.mrf.mxu2  ;;  %v645_v1 = vpop.f32.mrf.mxu0 }
 0x101   : > { %v1018_v3 = vrot.slane %v944_v63, 6  ;;  %v646_v4 = vadd.f32 %v645_v1, %v4687_v30  ;;  %v758_v5 = vpop.f32.mrf.mxu1  ;;  %v1503_v1 = vrot.slane %v4701_v55, 2 }
 0x103   : > { %v4814_v9 = vsel %vm998_vm2, %v1016_v49, %v1018_v3  ;;  %v759_v10 = vadd.f32 %v758_v5, %v646_v4  ;;  %692 = vmatmul.f32.gmra.mxu0 %v438_v2  ;;  %v1505_v4 = vsel %vm1502_vm5, %v1503_v1, %v1504_v54 }
 0x104   : > { %805 = vmatmul.f32.gmra.mxu1 %v439_v6  ;;  %v1094_v11 = vrot.slane %v4814_v9, 1 }
 0x105   : > { %4000 = vmatmul.msk.f32.gmra.mxu2 %vm494_vm1, %v446_v8  ;;  %v872_v13 = vadd.f32 %v871_v45, %v759_v10  ;;  %v445_v45 = vld [vmem:[%s4550_s24 + $0x2c0] sm:$0xff] }
 0x106   : > { %v1095_v14 = vsel %vm1074_vm3, %v1092_v59, %v1094_v11  ;;  %v447_v59 = vld [vmem:[%s4550_s24 + $0x2d0] sm:$0xff] }
 0x107   : > { %v945_v15 = vmax.f32 %v872_v13, 0.0  ;;  %4015 = vmatmul.msk.f32.gmra.mxu3 %vm1138_vm4, %v1095_v14  ;;  %v1506_v13 = vrot.slane %v4719_v12, 2 }
 0x108   : > { %v877_v16 = vpop.f32.mrf.mxu2  ;;  %v648_v17 = vpop.f32.mrf.mxu0 }
 0x109   : > { %v1020_v21 = vrot.slane %v945_v15, 6  ;;  %v649_v23 = vadd.f32 %v648_v17, %v4687_v30  ;;  %v761_v24 = vpop.f32.mrf.mxu1  ;;  %v450_v15 = vld [vmem:[%s4550_s24 + $0x2e8] sm:$0x3] }
 0x10b   : > { %v4839_v31 = vsel %vm998_vm2, %v1018_v3, %v1020_v21  ;;  %v762_v32 = vadd.f32 %v761_v24, %v649_v23  ;;  %695 = vmatmul.f32.gmra.mxu0 %v441_v18  ;;  %v1507_v23 = vsel %vm1502_vm5, %v1504_v54, %v1506_v13 }
 0x10c   : > { %808 = vmatmul.f32.gmra.mxu1 %v442_v25  ;;  %v1096_v33 = vrot.slane %v4839_v31, 1 }
 0x10d   : > { %4001 = vmatmul.msk.f32.gmra.mxu2 %vm494_vm1, %v449_v27  ;;  %v875_v34 = vadd.f32 %v874_v0, %v762_v32  ;;  %v448_v0 = vld [vmem:[%s4550_s24 + $0x2d8] sm:$0xff] }
 0x10e   : > { %v1097_v35 = vsel %vm1074_vm3, %v1094_v11, %v1096_v33 }
 0x10f   : > { %v946_v36 = vmax.f32 %v875_v34, 0.0  ;;  %4016 = vmatmul.msk.f32.gmra.mxu3 %vm1138_vm4, %v1097_v35  ;;  %v2061_v34 = vrot.slane %v4707_v61, 4 }
 0x110   : > { %v880_v37 = vpop.f32.mrf.mxu2  ;;  %v651_v39 = vpop.f32.mrf.mxu0 }
 0x111   : > { %v1022_v42 = vrot.slane %v946_v36, 6  ;;  %v652_v43 = vadd.f32 %v651_v39, %v4687_v30  ;;  %v764_v44 = vpop.f32.mrf.mxu1  ;;  %v1782_v36 = vrot.slane %v4701_v55, 3 }
 0x113   : > { %v4850_v47 = vsel %vm998_vm2, %v1020_v21, %v1022_v42  ;;  %v765_v48 = vadd.f32 %v764_v44, %v652_v43  ;;  %698 = vmatmul.f32.gmra.mxu0 %v444_v40  ;;  %v1784_v43 = vsel %vm1781_vm6, %v1782_v36, %v1783_v28 }
 0x114   : > { %811 = vmatmul.f32.gmra.mxu1 %v445_v45  ;;  %v1098_v49 = vrot.slane %v4850_v47, 1 }
 0x115   : > { %4002 = vmatmul.msk.f32.gmra.mxu2 %vm494_vm1, %v452_v46  ;;  %v878_v50 = vadd.f32 %v877_v16, %v765_v48 }
 0x116   : > { %v1099_v51 = vsel %vm1074_vm3, %v1096_v33, %v1098_v49  ;;  %v1508_v33 = vrot.slane %v4730_v26, 2 }
 0x117   : > { %v947_v52 = vmax.f32 %v878_v50, 0.0  ;;  %4017 = vmatmul.msk.f32.gmra.mxu3 %vm1138_vm4, %v1099_v51 }
 0x118   : > { %v883_v53 = vpop.f32.mrf.mxu2  ;;  %v654_v58 = vpop.f32.mrf.mxu0  ;;  %v1509_v46 = vsel %vm1502_vm5, %v1506_v13, %v1508_v33  ;;  %v1787_v13 = vrot.slane %v4730_v26, 3 }
 0x119   : > { %v1024_v60 = vrot.slane %v947_v52, 6  ;;  %v655_v62 = vadd.f32 %v654_v58, %v4687_v30  ;;  %v767_v63 = vpop.f32.mrf.mxu1  ;;  %v1785_v52 = vrot.slane %v4719_v12, 3  ;;  %v1510_v58 = vrot.slane %v4741_v41, 2 }
 0x11b   : > { %v4862_v2 = vsel %vm998_vm2, %v1022_v42, %v1024_v60  ;;  %v768_v3 = vadd.f32 %v767_v63, %v655_v62  ;;  %701 = vmatmul.f32.gmra.mxu0 %v447_v59  ;;  %v2060_v42 = vrot.slane %v4701_v55, 4  ;;  %v2063_v59 = vrot.slane %v4719_v12, 4 }
 0x11c   : > { %814 = vmatmul.f32.gmra.mxu1 %v448_v0  ;;  %v1100_v5 = vrot.slane %v4862_v2, 1  ;;  %v1786_v1 = vsel %vm1781_vm6, %v1783_v28, %v1785_v52 }
 0x11d   : > { %4074 = vmatmul.msk.f32.vlgmr.msrb.gmra.mxu2 %vm1138_vm4, %v1505_v4  ;;  %v881_v6 = vadd.f32 %v880_v37, %v768_v3  ;;  %v2062_v48 = vsel %vm1065_vm7, %v2060_v42, %v2061_v34 }
 0x11e   : > { %v1101_v8 = vsel %vm1074_vm3, %v1098_v49, %v1100_v5 }
 0x11f   : > { %v948_v10 = vmax.f32 %v881_v6, 0.0  ;;  %4018 = vmatmul.msk.f32.gmra.mxu3 %vm1138_vm4, %v1101_v8  ;;  %v2064_v6 = vsel %vm1065_vm7, %v2061_v34, %v2063_v59 }
 0x120   : > { %v886_v11 = vpop.f32.mrf.mxu2  ;;  %v657_v14 = vpop.f32.mrf.mxu0 }
 0x121   : > { %v1026_v16 = vrot.slane %v948_v10, 6  ;;  %v658_v17 = vadd.f32 %v657_v14, %v4687_v30  ;;  %v770_v18 = vpop.f32.mrf.mxu1 }
 0x123   : > { %v4874_v20 = vsel %vm998_vm2, %v1024_v60, %v1026_v16  ;;  %v771_v21 = vadd.f32 %v770_v18, %v658_v17  ;;  %704 = vmatmul.f32.gmra.mxu0 %v450_v15  ;;  %v2065_v17 = vrot.slane %v4730_v26, 4 }
 0x124   : > { %817 = vmatmul.f32.gmra.mxu1 %v451_v19  ;;  %v1102_v24 = vrot.slane %v4874_v20, 1 }
 0x125   : > { %4075 = vmatmul.msk.f32.gmra.mxu2 %vm1138_vm4, %v1507_v23  ;;  %v884_v25 = vadd.f32 %v883_v53, %v771_v21 }
 0x126   : > { %v1103_v27 = vsel %vm1074_vm3, %v1100_v5, %v1102_v24  ;;  %v1511_v5 = vsel %vm1502_vm5, %v1508_v33, %v1510_v58 }
 0x127   : > { %v949_v29 = vmax.f32 %v884_v25, 0.0  ;;  %4019 = vmatmul.msk.f32.gmra.mxu3 %vm1138_vm4, %v1103_v27 }
 0x128   : > { %v889_v32 = vpop.f32.mrf.mxu2  ;;  %v660_v35 = vpop.f32.mrf.mxu0 }
 0x129   : > { %v1028_v37 = vrot.slane %v949_v29, 6  ;;  %v661_v39 = vadd.f32 %v660_v35, %v4687_v30  ;;  %v773_v40 = vpop.f32.mrf.mxu1  ;;  %v2066_v29 = vsel %vm1065_vm7, %v2063_v59, %v2065_v17  ;;  %v1789_v35 = vrot.slane %v4741_v41, 3 }
 0x12b   : > { %v4889_v44 = vsel %vm998_vm2, %v1026_v16, %v1028_v37  ;;  %v774_v45 = vadd.f32 %v773_v40, %v661_v39  ;;  %4109 = vmatmul.msk.f32.vlgmr.msrb.gmra.mxu0 %vm1138_vm4, %v1784_v43  ;;  %v1512_v16 = vrot.slane %v4752_v56, 2  ;;  %v1514_v39 = vrot.slane %v4763_v7, 2 }
 0x12c   : > { %4144 = vmatmul.msk.f32.vlgmr.msrb.gmra.mxu1 %vm1138_vm4, %v2062_v48  ;;  %v1104_v49 = vrot.slane %v4889_v44, 1  ;;  %v2067_v40 = vrot.slane %v4741_v41, 4 }
 0x12d   : > { %4076 = vmatmul.msk.f32.gmra.mxu2 %vm1138_vm4, %v1509_v46  ;;  %v887_v50 = vadd.f32 %v886_v11, %v774_v45  ;;  %v1513_v28 = vsel %vm1502_vm5, %v1510_v58, %v1512_v16 }
 0x12e   : > { %v1105_v51 = vsel %vm1074_vm3, %v1102_v24, %v1104_v49  ;;  %v1788_v24 = vsel %vm1781_vm6, %v1785_v52, %v1787_v13  ;;  %v1515_v52 = vsel %vm1502_vm5, %v1512_v16, %v1514_v39 }
 0x12f   : > { %v950_v53 = vmax.f32 %v887_v50, 0.0  ;;  %4020 = vmatmul.msk.f32.gmra.mxu3 %vm1138_vm4, %v1105_v51 }
 0x130   : > { %v892_v54 = vpop.f32.mrf.mxu2  ;;  %v663_v60 = vpop.f32.mrf.mxu0 }
 0x131   : > { %v1030_v62 = vrot.slane %v950_v53, 6  ;;  %v664_v63 = vadd.f32 %v663_v60, %v4687_v30  ;;  %v776_v0 = vpop.f32.mrf.mxu1  ;;  %v2068_v53 = vsel %vm1065_vm7, %v2065_v17, %v2067_v40  ;;  %v1791_v60 = vrot.slane %v4752_v56, 3 }
 0x133   : > { %v4905_v3 = vsel %vm998_vm2, %v1028_v37, %v1030_v62  ;;  %v777_v4 = vadd.f32 %v776_v0, %v664_v63  ;;  %4110 = vmatmul.msk.f32.gmra.mxu0 %vm1138_vm4, %v1786_v1  ;;  %v1516_v0 = vrot.slane %v4774_v22, 2  ;;  %v2069_v1 = vrot.slane %v4752_v56, 4 }
 0x134   : > { %4145 = vmatmul.msk.f32.gmra.mxu1 %vm1138_vm4, %v2064_v6  ;;  %v1106_v8 = vrot.slane %v4905_v3, 1 }
 0x135   : > { %4077 = vmatmul.msk.f32.gmra.mxu2 %vm1138_vm4, %v1511_v5  ;;  %v890_v10 = vadd.f32 %v889_v32, %v777_v4  ;;  %v2070_v16 = vsel %vm1065_vm7, %v2067_v40, %v2069_v1 }
 0x136   : > { %v1107_v11 = vsel %vm1074_vm3, %v1104_v49, %v1106_v8  ;;  %v1790_v49 = vsel %vm1781_vm6, %v1787_v13, %v1789_v35 }
 0x137   : > { %v951_v14 = vmax.f32 %v890_v10, 0.0  ;;  %4021 = vmatmul.msk.f32.gmra.mxu3 %vm1138_vm4, %v1107_v11  ;;  %v1792_v11 = vsel %vm1781_vm6, %v1789_v35, %v1791_v60 }
 0x138   : > { %v895_v15 = vpop.f32.mrf.mxu2  ;;  %v666_v18 = vpop.f32.mrf.mxu0 }
 0x139   : > { %v1032_v19 = vrot.slane %v951_v14, 6  ;;  %v667_v21 = vadd.f32 %v666_v18, %v4687_v30  ;;  %v779_v23 = vpop.f32.mrf.mxu1 }
 0x13b   : > { %v4921_v25 = vsel %vm998_vm2, %v1030_v62, %v1032_v19  ;;  %v780_v27 = vadd.f32 %v779_v23, %v667_v21  ;;  %4111 = vmatmul.msk.f32.gmra.mxu0 %vm1138_vm4, %v1788_v24  ;;  %v1793_v21 = vrot.slane %v4763_v7, 3 }
 0x13c   : > { %4146 = vmatmul.msk.f32.gmra.mxu1 %vm1138_vm4, %v2066_v29  ;;  %v1108_v32 = vrot.slane %v4921_v25, 1 }
 0x13d   : > { %4078 = vmatmul.msk.f32.gmra.mxu2 %vm1138_vm4, %v1513_v28  ;;  %v893_v33 = vadd.f32 %v892_v54, %v780_v27  ;;  %v1518_v27 = vrot.slane %v4785_v38, 2  ;;  %v2071_v28 = vrot.slane %v4763_v7, 4 }
 0x13e   : > { %v1109_v34 = vsel %vm1074_vm3, %v1106_v8, %v1108_v32 }
 0x13f   : > { %v952_v36 = vmax.f32 %v893_v33, 0.0  ;;  %4022 = vmatmul.msk.f32.gmra.mxu3 %vm1138_vm4, %v1109_v34  ;;  %v1519_v40 = vsel %vm1502_vm5, %v1516_v0, %v1518_v27 }
 0x140   : > { %v898_v37 = vpop.f32.mrf.mxu2  ;;  %v669_v42 = vpop.f32.mrf.mxu0 }
 0x141   : > { %v1034_v43 = vrot.slane %v952_v36, 6  ;;  %v670_v45 = vadd.f32 %v669_v42, %v4687_v30  ;;  %v782_v46 = vpop.f32.mrf.mxu1  ;;  %v1794_v36 = vsel %vm1781_vm6, %v1791_v60, %v1793_v21  ;;  %v2072_v42 = vsel %vm1065_vm7, %v2069_v1, %v2071_v28 }
 0x142   : > { %v4935_v48 = vpop.f32.mrf.mxu3 }
 0x143   : > { %6400 = vst [vmem:[#allocation2_spill] sm:$0xff] %v4935_v48  ;;  %v4939_v50 = vsel %vm998_vm2, %v1032_v19, %v1034_v43  ;;  %v783_v51 = vadd.f32 %v782_v46, %v670_v45  ;;  %4112 = vmatmul.msk.f32.gmra.mxu0 %vm1138_vm4, %v1790_v49  ;;  %v1795_v49 = vrot.slane %v4774_v22, 3 }
 0x144   : > { %4147 = vmatmul.msk.f32.gmra.mxu1 %vm1138_vm4, %v2068_v53  ;;  %v1110_v54 = vrot.slane %v4939_v50, 1  ;;  %v1520_v53 = vrot.slane %v4803_v57, 2 }
 0x145   : > { %4079 = vmatmul.msk.f32.gmra.mxu2 %vm1138_vm4, %v1515_v52  ;;  %v896_v58 = vadd.f32 %v895_v15, %v783_v51  ;;  %v1517_v15 = vsel %vm1502_vm5, %v1514_v39, %v1516_v0 }
 0x146   : > { %v1111_v59 = vsel %vm1074_vm3, %v1108_v32, %v1110_v54 }
 0x147   : > { %v953_v62 = vmax.f32 %v896_v58, 0.0  ;;  %4023 = vmatmul.msk.f32.gmra.mxu3 %vm1138_vm4, %v1111_v59 }
 0x148   : > { %v901_v63 = vpop.f32.mrf.mxu2  ;;  %v672_v4 = vpop.f32.mrf.mxu0 }
 0x149   : > { %v1036_v5 = vrot.slane %v953_v62, 6  ;;  %v673_v6 = vadd.f32 %v672_v4, %v4687_v30  ;;  %v785_v8 = vpop.f32.mrf.mxu1 }
 0x14a   : > { %v4953_v10 = vpop.f32.mrf.mxu3 }
 0x14b   : > { %6401 = vst [vmem:[#allocation3_spill] sm:$0xff] %v4953_v10  ;;  %v4957_v13 = vsel %vm998_vm2, %v1034_v43, %v1036_v5  ;;  %v786_v14 = vadd.f32 %v785_v8, %v673_v6  ;;  %4113 = vmatmul.msk.f32.gmra.mxu0 %vm1138_vm4, %v1792_v11 }
 0x14c   : > { %4148 = vmatmul.msk.f32.gmra.mxu1 %vm1138_vm4, %v2070_v16  ;;  %v1112_v17 = vrot.slane %v4957_v13, 1 }
 0x14d   : > { %4080 = vmatmul.msk.f32.gmra.mxu2 %vm1138_vm4, %v1517_v15  ;;  %v899_v18 = vadd.f32 %v898_v37, %v786_v14  ;;  %v1797_v15 = vrot.slane %v4785_v38, 3 }
 0x14e   : > { %v1113_v19 = vsel %vm1074_vm3, %v1110_v54, %v1112_v17  ;;  %v2073_v54 = vrot.slane %v4774_v22, 4 }
 0x14f   : > { %v954_v23 = vmax.f32 %v899_v18, 0.0  ;;  %4024 = vmatmul.msk.f32.gmra.mxu3 %vm1138_vm4, %v1113_v19  ;;  %v1522_v18 = vrot.slane %v4814_v9, 2  ;;  %v2075_v19 = vrot.slane %v4785_v38, 4 }
 0x150   : > { %v904_v24 = vpop.f32.mrf.mxu2  ;;  %v675_v29 = vpop.f32.mrf.mxu0  ;;  %v2074_v6 = vsel %vm1065_vm7, %v2071_v28, %v2073_v54 }
 0x151   : > { %v1038_v32 = vrot.slane %v954_v23, 6  ;;  %v676_v33 = vadd.f32 %v675_v29, %v4687_v30  ;;  %v788_v34 = vpop.f32.mrf.mxu1 }
 0x152   : > { %v4971_v35 = vpop.f32.mrf.mxu3 }
 0x153   : > { %6402 = vst [vmem:[#allocation4_spill] sm:$0xff] %v4971_v35  ;;  %v4975_v37 = vsel %vm998_vm2, %v1036_v5, %v1038_v32  ;;  %v789_v39 = vadd.f32 %v788_v34, %v676_v33  ;;  %4114 = vmatmul.msk.f32.gmra.mxu0 %vm1138_vm4, %v1794_v36  ;;  %v1521_v5 = vsel %vm1502_vm5, %v1518_v27, %v1520_v53 }
 0x154   : > { %4149 = vmatmul.msk.f32.gmra.mxu1 %vm1138_vm4, %v2072_v42  ;;  %v1114_v43 = vrot.slane %v4975_v37, 1  ;;  %v1523_v34 = vsel %vm1502_vm5, %v1520_v53, %v1522_v18  ;;  %v2076_v36 = vsel %vm1065_vm7, %v2073_v54, %v2075_v19 }
 0x155   : > { %4081 = vmatmul.msk.f32.gmra.mxu2 %vm1138_vm4, %v1519_v40  ;;  %v902_v45 = vadd.f32 %v901_v63, %v789_v39  ;;  %v1796_v63 = vsel %vm1781_vm6, %v1793_v21, %v1795_v49 }
 0x156   : > { %v1115_v46 = vsel %vm1074_vm3, %v1112_v17, %v1114_v43 }
 0x157   : > { %v955_v51 = vmax.f32 %v902_v45, 0.0  ;;  %4025 = vmatmul.msk.f32.gmra.mxu3 %vm1138_vm4, %v1115_v46  ;;  %v1524_v46 = vrot.slane %v4839_v31, 2 }
 0x158   : > { %v907_v52 = vpop.f32.mrf.mxu2  ;;  %v678_v58 = vpop.f32.mrf.mxu0 }
 0x159   : > { %v1040_v59 = vrot.slane %v955_v51, 6  ;;  %v679_v60 = vadd.f32 %v678_v58, %v4687_v30  ;;  %v791_v62 = vpop.f32.mrf.mxu1 }
 0x15a   : > { %v4989_v0 = vpop.f32.mrf.mxu3 }
 0x15b   : > { %v4993_v1 = vsel %vm998_vm2, %v1038_v32, %v1040_v59  ;;  %v792_v4 = vadd.f32 %v791_v62, %v679_v60  ;;  %4115 = vmatmul.msk.f32.gmra.mxu0 %vm1138_vm4, %v1796_v63 }
 0x15c   : > { %4150 = vmatmul.msk.f32.gmra.mxu1 %vm1138_vm4, %v2074_v6  ;;  %v1116_v8 = vrot.slane %v4993_v1, 1 }
 0x15d   : > { %4082 = vmatmul.msk.f32.gmra.mxu2 %vm1138_vm4, %v1521_v5  ;;  %v905_v11 = vadd.f32 %v904_v24, %v792_v4  ;;  %v1798_v24 = vsel %vm1781_vm6, %v1795_v49, %v1797_v15  ;;  %v2077_v49 = vrot.slane %v4803_v57, 4  ;;  %v1525_v4 = vsel %vm1502_vm5, %v1522_v18, %v1524_v46 }
 0x15e   : > { %v1117_v14 = vsel %vm1074_vm3, %v1114_v43, %v1116_v8  ;;  %v1799_v43 = vrot.slane %v4803_v57, 3  ;;  %v2079_v18 = vrot.slane %v4814_v9, 4 }
 0x15f   : > { %v956_v16 = vmax.f32 %v905_v11, 0.0  ;;  %4026 = vmatmul.msk.f32.gmra.mxu3 %vm1138_vm4, %v1117_v14  ;;  %v2078_v5 = vsel %vm1065_vm7, %v2075_v19, %v2077_v49  ;;  %v1801_v14 = vrot.slane %v4814_v9, 3 }
 0x160   : > { %v910_v17 = vpop.f32.mrf.mxu2  ;;  %v681_v21 = vpop.f32.mrf.mxu0 }
 0x161   : > { %v1042_v23 = vrot.slane %v956_v16, 6  ;;  %v682_v27 = vadd.f32 %v681_v21, %v4687_v30  ;;  %v794_v28 = vpop.f32.mrf.mxu1  ;;  %v1526_v16 = vrot.slane %v4850_v47, 2 }
 0x162   : > { %v5007_v29 = vpop.f32.mrf.mxu3 }
 0x163   : > { %v5011_v32 = vsel %vm998_vm2, %v1040_v59, %v1042_v23  ;;  %v795_v33 = vadd.f32 %v794_v28, %v682_v27  ;;  %4116 = vmatmul.msk.f32.gmra.mxu0 %vm1138_vm4, %v1798_v24 }
 0x164   : > { %4151 = vmatmul.msk.f32.gmra.mxu1 %vm1138_vm4, %v2076_v36  ;;  %v1118_v39 = vrot.slane %v5011_v32, 1  ;;  %v1527_v36 = vsel %vm1502_vm5, %v1524_v46, %v1526_v16  ;;  %v1528_v46 = vrot.slane %v4862_v2, 2 }
 0x165   : > { %4083 = vmatmul.msk.f32.gmra.mxu2 %vm1138_vm4, %v1523_v34  ;;  %v908_v40 = vadd.f32 %v907_v52, %v795_v33  ;;  %v1800_v52 = vsel %vm1781_vm6, %v1797_v15, %v1799_v43 }
 0x166   : > { %v1119_v42 = vsel %vm1074_vm3, %v1116_v8, %v1118_v39 }
 0x167   : > { %v957_v45 = vmax.f32 %v908_v40, 0.0  ;;  %4027 = vmatmul.msk.f32.gmra.mxu3 %vm1138_vm4, %v1119_v42 }
 0x168   : > { %v913_v51 = vpop.f32.mrf.mxu2  ;;  %v684_v53 = vpop.f32.mrf.mxu0 }
 0x169   : > { %v1044_v54 = vrot.slane %v957_v45, 6  ;;  %v685_v58 = vadd.f32 %v684_v53, %v4687_v30  ;;  %v797_v59 = vpop.f32.mrf.mxu1 }
 0x16a   : > { %v5025_v60 = vpop.f32.mrf.mxu3 }
 0x16b   : > { %v5029_v62 = vsel %vm998_vm2, %v1042_v23, %v1044_v54  ;;  %v798_v63 = vadd.f32 %v797_v59, %v685_v58  ;;  %4117 = vmatmul.msk.f32.gmra.mxu0 %vm1138_vm4, %v1800_v52 }
 0x16c   : > { %4152 = vmatmul.msk.f32.gmra.mxu1 %vm1138_vm4, %v2078_v5  ;;  %v1120_v6 = vrot.slane %v5029_v62, 1 }
 0x16d   : > { %4084 = vmatmul.msk.f32.gmra.mxu2 %vm1138_vm4, %v1525_v4  ;;  %v911_v8 = vadd.f32 %v910_v17, %v798_v63  ;;  %v1802_v17 = vsel %vm1781_vm6, %v1799_v43, %v1801_v14  ;;  %v1803_v43 = vrot.slane %v4839_v31, 3 }
 0x16e   : > { %v1121_v11 = vsel %vm1074_vm3, %v1118_v39, %v1120_v6  ;;  %v2080_v39 = vsel %vm1065_vm7, %v2077_v49, %v2079_v18 }
 0x16f   : > { %v958_v15 = vmax.f32 %v911_v8, 0.0  ;;  %4028 = vmatmul.msk.f32.gmra.mxu3 %vm1138_vm4, %v1121_v11 }
 0x170   : > { %v687_v21 = vpop.f32.mrf.mxu0  ;;  %v916_v28 = vpop.f32.mrf.mxu2 }
 0x171   : > { %v1046_v19 = vrot.slane %v958_v15, 6  ;;  %v688_v23 = vadd.f32 %v687_v21, %v4687_v30  ;;  %v800_v27 = vpop.f32.mrf.mxu1 }
 0x172   : > { %v5043_v24 = vpop.f32.mrf.mxu3 }
 0x173   : > { %v5047_v33 = vsel %vm998_vm2, %v1044_v54, %v1046_v19  ;;  %v801_v34 = vadd.f32 %v800_v27, %v688_v23  ;;  %4118 = vmatmul.msk.f32.gmra.mxu0 %vm1138_vm4, %v1802_v17  ;;  %v2081_v54 = vrot.slane %v4839_v31, 4  ;;  %v2083_v27 = vrot.slane %v4850_v47, 4 }
 0x174   : > { %4153 = vmatmul.msk.f32.gmra.mxu1 %vm1138_vm4, %v2080_v39  ;;  %v1122_v40 = vrot.slane %v5047_v33, 1 }
 0x175   : > { %4085 = vmatmul.msk.f32.gmra.mxu2 %vm1138_vm4, %v1527_v36  ;;  %v914_v42 = vadd.f32 %v913_v51, %v801_v34  ;;  %v1804_v51 = vsel %vm1781_vm6, %v1801_v14, %v1803_v43  ;;  %v2082_v8 = vsel %vm1065_vm7, %v2079_v18, %v2081_v54 }
 0x176   : > { %v1123_v45 = vsel %vm1074_vm3, %v1120_v6, %v1122_v40  ;;  %v1529_v6 = vsel %vm1502_vm5, %v1526_v16, %v1528_v46  ;;  %v1530_v16 = vrot.slane %v4874_v20, 2 }
 0x177   : > { %v959_v53 = vmax.f32 %v914_v42, 0.0  ;;  %4029 = vmatmul.msk.f32.gmra.mxu3 %vm1138_vm4, %v1123_v45 }
 0x178   : > { %v690_v58 = vpop.f32.mrf.mxu0  ;;  %v919_v11 = vpop.f32.mrf.mxu2  ;;  %v1531_v45 = vsel %vm1502_vm5, %v1528_v46, %v1530_v16  ;;  %v1532_v46 = vrot.slane %v4889_v44, 2 }
 0x179   : > { %v1048_v49 = vrot.slane %v959_v53, 6  ;;  %v691_v59 = vadd.f32 %v690_v58, %v4687_v30  ;;  %v803_v52 = vpop.f32.mrf.mxu1  ;;  %v2084_v53 = vsel %vm1065_vm7, %v2081_v54, %v2083_v27 }
 0x17a   : > { %v5061_v63 = vpop.f32.mrf.mxu3 }
 0x17b   : > { %v5065_v4 = vsel %vm998_vm2, %v1046_v19, %v1048_v49  ;;  %v804_v5 = vadd.f32 %v803_v52, %v691_v59  ;;  %4119 = vmatmul.msk.f32.gmra.mxu0 %vm1138_vm4, %v1804_v51  ;;  %v1805_v19 = vrot.slane %v4850_v47, 3 }
 0x17c   : > { %4154 = vmatmul.msk.f32.gmra.mxu1 %vm1138_vm4, %v2082_v8  ;;  %v1124_v15 = vrot.slane %v5065_v4, 1 }
 0x17d   : > { %4086 = vmatmul.msk.f32.gmra.mxu2 %vm1138_vm4, %v1529_v6  ;;  %v917_v21 = vadd.f32 %v916_v28, %v804_v5  ;;  %v1806_v28 = vsel %vm1781_vm6, %v1803_v43, %v1805_v19  ;;  %v2085_v5 = vrot.slane %v4862_v2, 4 }
 0x17e   : > { %v1125_v14 = vsel %vm1074_vm3, %v1122_v40, %v1124_v15 }
 0x17f   : > { %v960_v23 = vmax.f32 %v917_v21, 0.0  ;;  %4030 = vmatmul.msk.f32.gmra.mxu3 %vm1138_vm4, %v1125_v14 }
 0x180   : > { %v693_v18 = vpop.f32.mrf.mxu0  ;;  %v922_v52 = vpop.f32.mrf.mxu2 }
 0x181   : > { %v1050_v17 = vrot.slane %v960_v23, 6  ;;  %v694_v34 = vadd.f32 %v693_v18, %v4687_v30  ;;  %v806_v36 = vpop.f32.mrf.mxu1  ;;  %v1533_v18 = vsel %vm1502_vm5, %v1530_v16, %v1532_v46  ;;  %v1809_v16 = vrot.slane %v4874_v20, 3 }
 0x182   : > { %v5079_v39 = vpop.f32.mrf.mxu3 }
 0x183   : > { %v5083_v40 = vsel %vm998_vm2, %v1048_v49, %v1050_v17  ;;  %v807_v42 = vadd.f32 %v806_v36, %v694_v34  ;;  %4120 = vmatmul.msk.f32.gmra.mxu0 %vm1138_vm4, %v1806_v28  ;;  %v1807_v49 = vrot.slane %v4862_v2, 3  ;;  %v2086_v34 = vsel %vm1065_vm7, %v2083_v27, %v2085_v5 }
 0x184   : > { %4155 = vmatmul.msk.f32.gmra.mxu1 %vm1138_vm4, %v2084_v53  ;;  %v1126_v58 = vrot.slane %v5083_v40, 1  ;;  %v1534_v27 = vrot.slane %v4905_v3, 2 }
 0x185   : > { %4087 = vmatmul.msk.f32.gmra.mxu2 %vm1138_vm4, %v1531_v45  ;;  %v920_v59 = vadd.f32 %v919_v11, %v807_v42  ;;  %v1808_v11 = vsel %vm1781_vm6, %v1805_v19, %v1807_v49  ;;  %v1068_v19 = vld [vmem:[%s6391_s2 + $0x8] sm:$0x3]  ;;  %v2087_v45 = vrot.slane %v4874_v20, 4 }
 0x186   : > { %v1127_v43 = vsel %vm1074_vm3, %v1124_v15, %v1126_v58  ;;  %4038 = vmatpush.msk.msrb.mxu3 %vm998_vm2, %v1068_v19 }
 0x187   : > { %v961_v51 = vmax.f32 %v920_v59, 0.0  ;;  %4031 = vmatmul.msk.f32.gmra.mxu3 %vm1138_vm4, %v1127_v43 }
 0x188   : > { %v696_v54 = vpop.f32.mrf.mxu0  ;;  %v925_v53 = vpop.f32.mrf.mxu2 }
 0x189   : > { %v1052_v6 = vrot.slane %v961_v51, 6  ;;  %v697_v8 = vadd.f32 %v696_v54, %v4687_v30  ;;  %v809_v21 = vpop.f32.mrf.mxu1 }
 0x18a   : > { %v5097_v14 = vpop.f32.mrf.mxu3 }
 0x18b   : > { %v5101_v15 = vsel %vm998_vm2, %v1050_v17, %v1052_v6  ;;  %v810_v23 = vadd.f32 %v809_v21, %v697_v8  ;;  %4121 = vmatmul.msk.f32.gmra.mxu0 %vm1138_vm4, %v1808_v11  ;;  %v1810_v8 = vsel %vm1781_vm6, %v1807_v49, %v1809_v16  ;;  %v1535_v11 = vsel %vm1502_vm5, %v1532_v46, %v1534_v27 }
 0x18c   : > { %4156 = vmatmul.msk.f32.gmra.mxu1 %vm1138_vm4, %v2086_v34  ;;  %v1128_v36 = vrot.slane %v5101_v15, 1  ;;  %v1811_v49 = vrot.slane %v4889_v44, 3  ;;  %v1536_v46 = vrot.slane %v4921_v25, 2 }
 0x18d   : > { %4088 = vmatmul.msk.f32.gmra.mxu2 %vm1138_vm4, %v1533_v18  ;;  %v923_v28 = vadd.f32 %v922_v52, %v810_v23  ;;  %v2088_v23 = vsel %vm1065_vm7, %v2085_v5, %v2087_v45 }
 0x18e   : > { %v1129_v17 = vsel %vm1074_vm3, %v1126_v58, %v1128_v36 }
 0x18f   : > { %v962_v42 = vmax.f32 %v923_v28, 0.0  ;;  %4032 = vmatmul.msk.f32.gmra.mxu3 %vm1138_vm4, %v1129_v17  ;;  %v2089_v28 = vrot.slane %v4889_v44, 4 }
 0x190   : > { %v699_v59 = vpop.f32.mrf.mxu0 }
 0x191   : > { %v1054_v43 = vrot.slane %v962_v42, 6  ;;  %v700_v51 = vadd.f32 %v699_v59, %v4687_v30  ;;  %v812_v54 = vpop.f32.mrf.mxu1 }
 0x192   : > { %v5119_v52 = vpop.f32.mrf.mxu3 }
 0x193   : > { %v5123_v58 = vsel %vm998_vm2, %v1052_v6, %v1054_v43  ;;  %v813_v21 = vadd.f32 %v812_v54, %v700_v51  ;;  %4122 = vmatmul.msk.f32.gmra.mxu0 %vm1138_vm4, %v1810_v8  ;;  %v928_v51 = vpop.f32.mrf.mxu2 }
 0x194   : > { %4157 = vmatmul.msk.f32.gmra.mxu1 %vm1138_vm4, %v2088_v23  ;;  %v1130_v18 = vrot.slane %v5123_v58, 1 }
 0x195   : > { %4089 = vmatmul.msk.f32.gmra.mxu2 %vm1138_vm4, %v1535_v11  ;;  %v926_v34 = vadd.f32 %v925_v53, %v813_v21  ;;  %v1812_v53 = vsel %vm1781_vm6, %v1809_v16, %v1811_v49  ;;  %v1537_v21 = vsel %vm1502_vm5, %v1534_v27, %v1536_v46  ;;  %v2090_v11 = vsel %vm1065_vm7, %v2087_v45, %v2089_v28  ;;  %v1067_v45 = vld [vmem:[%s6391_s2] sm:$0xff] }
 0x196   : > { %v1131_v19 = vsel %vm1074_vm3, %v1128_v36, %v1130_v18  ;;  %v1813_v16 = vrot.slane %v4905_v3, 3  ;;  %v1538_v27 = vrot.slane %v4939_v50, 2  ;;  %1401 = vmatpush.msrb.mxu3 %v1067_v45 }
 0x197   : > { %v963_v6 = vmax.f32 %v926_v34, 0.0  ;;  %4033 = vmatmul.msk.f32.gmra.mxu3 %vm1138_vm4, %v1131_v19 }
 0x198   : > { %v702_v17 = vpop.f32.mrf.mxu0 }
 0x199   : > { %v1056_v5 = vrot.slane %v963_v6, 6  ;;  %v703_v42 = vadd.f32 %v702_v17, %v4687_v30  ;;  %v815_v59 = vpop.f32.mrf.mxu1  ;;  %v2091_v6 = vrot.slane %v4905_v3, 4 }
 0x19a   : > { %v5137_v54 = vpop.f32.mrf.mxu3 }
 0x19b   : > { %v5141_v36 = vsel %vm998_vm2, %v1054_v43, %v1056_v5  ;;  %v816_v8 = vadd.f32 %v815_v59, %v703_v42  ;;  %4123 = vmatmul.msk.f32.gmra.mxu0 %vm1138_vm4, %v1812_v53  ;;  %v1814_v53 = vsel %vm1781_vm6, %v1811_v49, %v1813_v16 }
 0x19c   : > { %4158 = vmatmul.msk.f32.gmra.mxu1 %vm1138_vm4, %v2090_v11  ;;  %v1132_v23 = vrot.slane %v5141_v36, 1  ;;  %v1539_v11 = vsel %vm1502_vm5, %v1536_v46, %v1538_v27  ;;  %v1540_v46 = vrot.slane %v4957_v13, 2 }
 0x19d   : > { %4090 = vmatmul.msk.f32.gmra.mxu2 %vm1138_vm4, %v1537_v21  ;;  %v929_v34 = vadd.f32 %v928_v51, %v816_v8 }
 0x19e   : > { %v1133_v19 = vsel %vm1074_vm3, %v1130_v18, %v1132_v23 }
 0x19f   : > { %v964_v43 = vmax.f32 %v929_v34, 0.0  ;;  %4034 = vmatmul.msk.f32.gmra.mxu3 %vm1138_vm4, %v1133_v19  ;;  %v2092_v34 = vsel %vm1065_vm7, %v2089_v28, %v2091_v6  ;;  %v931_v19 = vpop.f32.mrf.mxu2 }
 0x1a0   : > { %v705_v17 = vpop.f32.mrf.mxu0 }
 0x1a1   : > { %v1058_v42 = vrot.slane %v964_v43, 6  ;;  %v706_v59 = vadd.f32 %v705_v17, %v4687_v30  ;;  %v818_v51 = vpop.f32.mrf.mxu1  ;;  %v2093_v17 = vrot.slane %v4921_v25, 4 }
 0x1a2   : > { %v5158_v18 = vpop.f32.mrf.mxu3 }
 0x1a3   : > { %v5162_v8 = vsel %vm998_vm2, %v1056_v5, %v1058_v42  ;;  %v819_v21 = vadd.f32 %v818_v51, %v706_v59  ;;  %4124 = vmatmul.msk.f32.gmra.mxu0 %vm1138_vm4, %v1814_v53  ;;  %v1815_v5 = vrot.slane %v4921_v25, 3 }
 0x1a4   : > { %4159 = vmatmul.msk.f32.gmra.mxu1 %vm1138_vm4, %v2092_v34  ;;  %v1134_v30 = vrot.slane %v5162_v8, 1 }
 0x1a5   : > { %4091 = vmatmul.msk.f32.gmra.mxu2 %vm1138_vm4, %v1539_v11  ;;  %v932_v43 = vadd.f32 %v931_v19, %v819_v21  ;;  %v1816_v51 = vsel %vm1781_vm6, %v1813_v16, %v1815_v5  ;;  %v1541_v21 = vsel %vm1502_vm5, %v1538_v27, %v1540_v46  ;;  %v1817_v19 = vrot.slane %v4939_v50, 3 }
 0x1a6   : > { %v1135_v49 = vsel %vm1074_vm3, %v1132_v23, %v1134_v30  ;;  %v2094_v23 = vsel %vm1065_vm7, %v2091_v6, %v2093_v17  ;;  %v2095_v27 = vrot.slane %v4939_v50, 4 }
 0x1a7   : > { %v965_v45 = vmax.f32 %v932_v43, 0.0  ;;  %4035 = vmatmul.msk.f32.gmra.mxu3 %vm1138_vm4, %v1135_v49  ;;  %v1818_v43 = vsel %vm1781_vm6, %v1815_v5, %v1817_v19 }
 0x1a9   : > { %v1060_v28 = vrot.slane %v965_v45, 6  ;;  %v2096_v45 = vsel %vm1065_vm7, %v2093_v17, %v2095_v27 }
 0x1aa   : > { %v5175_v59 = vpop.f32.mrf.mxu3 }
 0x1ab   : > { %v1061_v53 = vsel %vm998_vm2, %v1058_v42, %v1060_v28  ;;  %4125 = vmatmul.msk.f32.gmra.mxu0 %vm1138_vm4, %v1816_v51  ;;  %v1542_v42 = vrot.slane %v4975_v37, 2  ;;  %v1544_v28 = vrot.slane %v4993_v1, 2  ;;  %v2097_v51 = vrot.slane %v4957_v13, 4 }
 0x1ac   : > { %v5183_v11 = vsel %vm1065_vm7, %v1061_v53, 0.0  ;;  %4160 = vmatmul.msk.f32.gmra.mxu1 %vm1138_vm4, %v2094_v23  ;;  %v1546_v23 = vrot.slane %v5011_v32, 2 }
 0x1ad   : > { %4092 = vmatmul.msk.f32.gmra.mxu2 %vm1138_vm4, %v1541_v21  ;;  %v1136_v34 = vrot.slane %v5183_v11, 1  ;;  %v1543_v49 = vsel %vm1502_vm5, %v1540_v46, %v1542_v42  ;;  %v1545_v46 = vsel %vm1502_vm5, %v1542_v42, %v1544_v28  ;;  %v2098_v17 = vsel %vm1065_vm7, %v2095_v27, %v2097_v51 }
 0x1ae   : > { %v1821_v21 = vrot.slane %v4975_v37, 3  ;;  %v1547_v42 = vsel %vm1502_vm5, %v1544_v28, %v1546_v23 }
 0x1af   : > { %v1137_v16 = vsel %vm1074_vm3, %v1134_v30, %v1136_v34  ;;  %v1819_v30 = vrot.slane %v4957_v13, 3 }
 0x1b0   : > { %4036 = vmatmul.msk.f32.gmra.mxu3 %vm1138_vm4, %v1137_v16 }
 0x1b1   : > { %v1820_v5 = vsel %vm1781_vm6, %v1817_v19, %v1819_v30  ;;  %v1822_v16 = vsel %vm1781_vm6, %v1819_v30, %v1821_v21 }
 0x1b2   : > { %v5193_v6 = vpop.f32.mrf.mxu3 }
 0x1b3   : > { %4126 = vmatmul.msk.f32.gmra.mxu0 %vm1138_vm4, %v1818_v43  ;;  %v1823_v43 = vrot.slane %v4993_v1, 3 }
 0x1b4   : > { %4161 = vmatmul.msk.f32.gmra.mxu1 %vm1138_vm4, %v2096_v45 }
 0x1b5   : > { %4093 = vmatmul.msk.f32.gmra.mxu2 %vm1138_vm4, %v1543_v49  ;;  %v1548_v49 = vrot.slane %v5029_v62, 2  ;;  %v1824_v30 = vsel %vm1781_vm6, %v1821_v21, %v1823_v43 }
 0x1b7   : > { %v1549_v28 = vsel %vm1502_vm5, %v1546_v23, %v1548_v49 }
 0x1b8   : > { %4037 = vmatmul.msk.f32.gmra.mxu3 %vm1138_vm4, %v1136_v34  ;;  %v2099_v34 = vrot.slane %v4975_v37, 4 }
 0x1ba   : > { %v5205_v53 = vpop.f32.mrf.mxu3  ;;  %v2100_v27 = vsel %vm1065_vm7, %v2097_v51, %v2099_v34 }
 0x1bb   : > { %4127 = vmatmul.msk.f32.gmra.mxu0 %vm1138_vm4, %v1820_v5  ;;  %v5239_v5 = vpop.f32.mrf.mxu2 }
 0x1bc   : > { %4162 = vmatmul.msk.f32.gmra.mxu1 %vm1138_vm4, %v2098_v17  ;;  %6405 = vst [vmem:[#allocation7_spill] sm:$0xff] %v5239_v5  ;;  %v2103_v17 = vrot.slane %v5011_v32, 4 }
 0x1bd   : > { %4094 = vmatmul.msk.f32.gmra.mxu2 %vm1138_vm4, %v1545_v46  ;;  %v1825_v46 = vrot.slane %v5011_v32, 3 }
 0x1bf   : > { %v1826_v23 = vsel %vm1781_vm6, %v1823_v43, %v1825_v46 }
 0x1c0   : > { %4039 = vmatmul.msk.f32.vlgmr.msrb.gmra.mxu3 %vm1138_vm4, %v4701_v55  ;;  %v2101_v55 = vrot.slane %v4993_v1, 4 }
 0x1c2   : > { %v5218_v19 = vpop.f32.mrf.mxu3  ;;  %v2102_v51 = vsel %vm1065_vm7, %v2099_v34, %v2101_v55 }
 0x1c3   : > { %6403 = vst [vmem:[#allocation5_spill] sm:$0xff] %v5218_v19  ;;  %4128 = vmatmul.msk.f32.gmra.mxu0 %vm1138_vm4, %v1822_v16  ;;  %v2104_v16 = vsel %vm1065_vm7, %v2101_v55, %v2103_v17 }
 0x1c4   : > { %4163 = vmatmul.msk.f32.gmra.mxu1 %vm1138_vm4, %v2100_v27  ;;  %v1552_v27 = vrot.slane %v5065_v4, 2 }
 0x1c5   : > { %4095 = vmatmul.msk.f32.gmra.mxu2 %vm1138_vm4, %v1547_v42  ;;  %v1827_v42 = vrot.slane %v5029_v62, 3 }
 0x1c8   : > { %4040 = vmatmul.msk.f32.gmra.mxu3 %vm1138_vm4, %v4707_v61  ;;  %v1550_v61 = vrot.slane %v5047_v33, 2 }
 0x1ca   : > { %v5231_v45 = vpop.f32.mrf.mxu3  ;;  %v1551_v34 = vsel %vm1502_vm5, %v1548_v49, %v1550_v61  ;;  %v1828_v49 = vsel %vm1781_vm6, %v1825_v46, %v1827_v42  ;;  %v1553_v55 = vsel %vm1502_vm5, %v1550_v61, %v1552_v27  ;;  %v2107_v46 = vrot.slane %v5047_v33, 4 }
 0x1cb   : > { %6404 = vst [vmem:[#allocation6_spill] sm:$0xff] %v5231_v45  ;;  %4129 = vmatmul.msk.f32.gmra.mxu0 %vm1138_vm4, %v1824_v30  ;;  %v5257_v30 = vpop.f32.mrf.mxu2  ;;  %v2109_v45 = vrot.slane %v5065_v4, 4 }
 0x1cc   : > { %4164 = vmatmul.msk.f32.gmra.mxu1 %vm1138_vm4, %v2102_v51  ;;  %6407 = vst [vmem:[#allocation9_spill] sm:$0xff] %v5257_v30  ;;  %v5269_v51 = vpop.f32.mrf.mxu0 }
 0x1cd   : > { %4096 = vmatmul.msk.f32.gmra.mxu2 %vm1138_vm4, %v1549_v28  ;;  %6409 = vst [vmem:[#allocation11_spill] sm:$0xff] %v5269_v51 }
 0x1d0   : > { %4041 = vmatmul.msk.f32.gmra.mxu3 %vm1138_vm4, %v4719_v12  ;;  %v2105_v12 = vrot.slane %v5029_v62, 4 }
 0x1d2   : > { %v5246_v21 = vpop.f32.mrf.mxu3  ;;  %v2106_v28 = vsel %vm1065_vm7, %v2103_v17, %v2105_v12 }
 0x1d3   : > { %6406 = vst [vmem:[#allocation8_spill] sm:$0xff] %v5246_v21  ;;  %4130 = vmatmul.msk.f32.gmra.mxu0 %vm1138_vm4, %v1826_v23  ;;  %v5271_v23 = vpop.f32.mrf.mxu1  ;;  %v5278_v61 = vpop.f32.mrf.mxu2 }
 0x1d4   : > { %4165 = vmatmul.msk.f32.gmra.mxu1 %vm1138_vm4, %v2104_v16  ;;  %6410 = vst [vmem:[#allocation12_spill] sm:$0xff] %v5271_v23  ;;  %v5289_v19 = vpop.f32.mrf.mxu0 }
 0x1d5   : > { %4097 = vmatmul.msk.f32.gmra.mxu2 %vm1138_vm4, %v1551_v34  ;;  %v1554_v34 = vrot.slane %v5083_v40, 2  ;;  %6411 = vst [vmem:[#allocation13_spill] sm:$0xff] %v5278_v61 }
 0x1d6   : > { %6413 = vst [vmem:[#allocation15_spill] sm:$0xff] %v5289_v19 }
 0x1d8   : > { %4042 = vmatmul.msk.f32.gmra.mxu3 %vm1138_vm4, %v4730_v26  ;;  %v1829_v26 = vrot.slane %v5047_v33, 3 }
 0x1da   : > { %v5261_v43 = vpop.f32.mrf.mxu3  ;;  %v1830_v16 = vsel %vm1781_vm6, %v1827_v42, %v1829_v26 }
 0x1db   : > { %6408 = vst [vmem:[#allocation10_spill] sm:$0xff] %v5261_v43  ;;  %4131 = vmatmul.msk.f32.gmra.mxu0 %vm1138_vm4, %v1828_v49  ;;  %v1555_v49 = vsel %vm1502_vm5, %v1552_v27, %v1554_v34  ;;  %v5293_v21 = vpop.f32.mrf.mxu1  ;;  %v2111_v43 = vrot.slane %v5083_v40, 4 }
 0x1dc   : > { %4166 = vmatmul.msk.f32.gmra.mxu1 %vm1138_vm4, %v2106_v28  ;;  %v1831_v28 = vrot.slane %v5065_v4, 3  ;;  %6414 = vst [vmem:[#allocation16_spill] sm:$0xff] %v5293_v21 }
 0x1dd   : > { %4098 = vmatmul.msk.f32.gmra.mxu2 %vm1138_vm4, %v1553_v55  ;;  %v2108_v55 = vsel %vm1065_vm7, %v2105_v12, %v2107_v46 }
 0x1de   : > { %v1832_v27 = vsel %vm1781_vm6, %v1829_v26, %v1831_v28  ;;  %v5312_v26 = vpop.f32.mrf.mxu0 }
 0x1df   : > { %6417 = vst [vmem:[#allocation19_spill] sm:$0xff] %v5312_v26 }
 0x1e0   : > { %4043 = vmatmul.msk.f32.gmra.mxu3 %vm1138_vm4, %v4741_v41  ;;  %v1556_v41 = vrot.slane %v5101_v15, 2 }
 0x1e2   : > { %v5280_v17 = vpop.f32.mrf.mxu3  ;;  %v1557_v12 = vsel %vm1502_vm5, %v1554_v34, %v1556_v41 }
 0x1e3   : > { %6412 = vst [vmem:[#allocation14_spill] sm:$0xff] %v5280_v17  ;;  %4132 = vmatmul.msk.f32.gmra.mxu0 %vm1138_vm4, %v1830_v16  ;;  %v2110_v16 = vsel %vm1065_vm7, %v2107_v46, %v2109_v45  ;;  %v5314_v34 = vpop.f32.mrf.mxu1 }
 0x1e4   : > { %4167 = vmatmul.msk.f32.gmra.mxu1 %vm1138_vm4, %v2108_v55  ;;  %v1833_v55 = vrot.slane %v5083_v40, 3  ;;  %6418 = vst [vmem:[#allocation20_spill] sm:$0xff] %v5314_v34  ;;  %v1841_v34 = vrot.slane %v5162_v8, 3 }
 0x1e5   : > { %4099 = vmatmul.msk.f32.gmra.mxu2 %vm1138_vm4, %v1555_v49  ;;  %v5303_v49 = vpop.f32.mrf.mxu2 }
 0x1e6   : > { %6416 = vst [vmem:[#allocation18_spill] sm:$0xff] %v5303_v49 }
 0x1e8   : > { %4044 = vmatmul.msk.f32.gmra.mxu3 %vm1138_vm4, %v4752_v56  ;;  %v1558_v56 = vrot.slane %v5123_v58, 2 }
 0x1ea   : > { %v5297_v42 = vpop.f32.mrf.mxu3 }
 0x1eb   : > { %6415 = vst [vmem:[#allocation17_spill] sm:$0xff] %v5297_v42  ;;  %4133 = vmatmul.msk.f32.gmra.mxu0 %vm1138_vm4, %v1832_v27  ;;  %v1834_v27 = vsel %vm1781_vm6, %v1831_v28, %v1833_v55  ;;  %v1560_v42 = vrot.slane %v5141_v36, 2 }
 0x1ec   : > { %4168 = vmatmul.msk.f32.gmra.mxu1 %vm1138_vm4, %v2110_v16  ;;  %v2112_v16 = vsel %vm1065_vm7, %v2109_v45, %v2111_v43  ;;  %v5334_v45 = vpop.f32.mrf.mxu0 }
 0x1ed   : > { %4100 = vmatmul.msk.f32.gmra.mxu2 %vm1138_vm4, %v1557_v12  ;;  %v1559_v12 = vsel %vm1502_vm5, %v1556_v41, %v1558_v56  ;;  %v5324_v17 = vpop.f32.mrf.mxu2  ;;  %6422 = vst [vmem:[#allocation24_spill] sm:$0xff] %v5334_v45 }
 0x1ee   : > { %6420 = vst [vmem:[#allocation22_spill] sm:$0xff] %v5324_v17 }
 0x1f0   : > { %4045 = vmatmul.msk.f32.gmra.mxu3 %vm1138_vm4, %v4763_v7  ;;  %v1835_v7 = vrot.slane %v5101_v15, 3 }
 0x1f2   : > { %v5316_v46 = vpop.f32.mrf.mxu3  ;;  %v1836_v41 = vsel %vm1781_vm6, %v1833_v55, %v1835_v7  ;;  %v2115_v55 = vrot.slane %v5123_v58, 4 }
 0x1f3   : > { %6419 = vst [vmem:[#allocation21_spill] sm:$0xff] %v5316_v46  ;;  %4134 = vmatmul.msk.f32.gmra.mxu0 %vm1138_vm4, %v1834_v27  ;;  %v2113_v46 = vrot.slane %v5101_v15, 4  ;;  %v1561_v27 = vsel %vm1502_vm5, %v1558_v56, %v1560_v42 }
 0x1f4   : > { %4169 = vmatmul.msk.f32.gmra.mxu1 %vm1138_vm4, %v2112_v16  ;;  %v5339_v16 = vpop.f32.mrf.mxu1 }
 0x1f5   : > { %4101 = vmatmul.msk.f32.gmra.mxu2 %vm1138_vm4, %v1559_v12  ;;  %v2114_v12 = vsel %vm1065_vm7, %v2111_v43, %v2113_v46  ;;  %6423 = vst [vmem:[#allocation25_spill] sm:$0xff] %v5339_v16  ;;  %v5346_v23 = vpop.f32.mrf.mxu2 }
 0x1f8   : > { %4046 = vmatmul.msk.f32.gmra.mxu3 %vm1138_vm4, %v4774_v22  ;;  %v1837_v22 = vrot.slane %v5123_v58, 3 }
 0x1fa   : > { %v5331_v28 = vpop.f32.mrf.mxu3  ;;  %v1838_v43 = vsel %vm1781_vm6, %v1835_v7, %v1837_v22  ;;  %v2117_v7 = vrot.slane %v5141_v36, 4 }
 0x1fb   : > { %6421 = vst [vmem:[#allocation23_spill] sm:$0xff] %v5331_v28  ;;  %4135 = vmatmul.msk.f32.gmra.mxu0 %vm1138_vm4, %v1836_v41  ;;  %v1562_v28 = vrot.slane %v5162_v8, 2 }
 0x1fc   : > { %4170 = vmatmul.msk.f32.gmra.mxu1 %vm1138_vm4, %v2114_v12  ;;  %v5358_v12 = vpop.f32.mrf.mxu0  ;;  %v5360_v21 = vpop.f32.mrf.mxu1 }
 0x1fd   : > { %4102 = vmatmul.msk.f32.gmra.mxu2 %vm1138_vm4, %v1561_v27  ;;  %v1563_v41 = vsel %vm1502_vm5, %v1560_v42, %v1562_v28  ;;  %v2116_v27 = vsel %vm1065_vm7, %v2113_v46, %v2115_v55  ;;  %6425 = vst [vmem:[#allocation27_spill] sm:$0xff] %v5358_v12  ;;  %v5367_v42 = vpop.f32.mrf.mxu2 }
 0x1fe   : > { %6426 = vst [vmem:[#allocation28_spill] sm:$0xff] %v5360_v21 }
 0x200   : > { %4047 = vmatmul.msk.f32.gmra.mxu3 %vm1138_vm4, %v4785_v38  ;;  %v1839_v38 = vrot.slane %v5141_v36, 3 }
 0x202   : > { %v5350_v56 = vpop.f32.mrf.mxu3 }
 0x203   : > { %6424 = vst [vmem:[#allocation26_spill] sm:$0xff] %v5350_v56  ;;  %4136 = vmatmul.msk.f32.gmra.mxu0 %vm1138_vm4, %v1838_v43  ;;  %v1564_v56 = vrot.slane %v5183_v11, 2  ;;  %v1840_v43 = vsel %vm1781_vm6, %v1837_v22, %v1839_v38  ;;  %v1842_v22 = vsel %vm1781_vm6, %v1839_v38, %v1841_v34 }
 0x204   : > { %4171 = vmatmul.msk.f32.gmra.mxu1 %vm1138_vm4, %v2116_v27  ;;  %v2118_v27 = vsel %vm1065_vm7, %v2115_v55, %v2117_v7  ;;  %v5378_v51 = vpop.f32.mrf.mxu0  ;;  %v5381_v16 = vpop.f32.mrf.mxu1 }
 0x205   : > { %4103 = vmatmul.msk.f32.gmra.mxu2 %vm1138_vm4, %v1563_v41  ;;  %v1565_v41 = vsel %vm1502_vm5, %v1562_v28, %v1564_v56  ;;  %6428 = vst [vmem:[#allocation30_spill] sm:$0xff] %v5378_v51 }
 0x206   : > { %6429 = vst [vmem:[#allocation31_spill] sm:$0xff] %v5381_v16 }
 0x208   : > { %4048 = vmatmul.msk.f32.gmra.mxu3 %vm1138_vm4, %v4803_v57  ;;  %v2119_v57 = vrot.slane %v5162_v8, 4 }
 0x20a   : > { %v5369_v46 = vpop.f32.mrf.mxu3  ;;  %v2120_v55 = vsel %vm1065_vm7, %v2117_v7, %v2119_v57 }
 0x20b   : > { %6427 = vst [vmem:[#allocation29_spill] sm:$0xff] %v5369_v46  ;;  %4137 = vmatmul.msk.f32.gmra.mxu0 %vm1138_vm4, %v1840_v43  ;;  %v5390_v43 = vpop.f32.mrf.mxu2 }
 0x20c   : > { %4172 = vmatmul.msk.f32.gmra.mxu1 %vm1138_vm4, %v2118_v27  ;;  %v2121_v27 = vrot.slane %v5183_v11, 4  ;;  %v5400_v38 = vpop.f32.mrf.mxu1 }
 0x20d   : > { %4104 = vmatmul.msk.f32.gmra.mxu2 %vm1138_vm4, %v1565_v41  ;;  %v1843_v41 = vrot.slane %v5183_v11, 3  ;;  %6432 = vst [vmem:[#allocation34_spill] sm:$0xff] %v5400_v38 }
 0x20f   : > { %v1844_v7 = vsel %vm1781_vm6, %v1841_v34, %v1843_v41 }
 0x210   : > { %4049 = vmatmul.msk.f32.gmra.mxu3 %vm1138_vm4, %v4814_v9  ;;  %v5398_v9 = vpop.f32.mrf.mxu0 }
 0x211   : > { %6431 = vst [vmem:[#allocation33_spill] sm:$0xff] %v5398_v9 }
 0x212   : > { %v5385_v28 = vpop.f32.mrf.mxu3 }
 0x213   : > { %6430 = vst [vmem:[#allocation32_spill] sm:$0xff] %v5385_v28  ;;  %4138 = vmatmul.msk.f32.gmra.mxu0 %vm1138_vm4, %v1842_v22 }
 0x214   : > { %4173 = vmatmul.msk.f32.gmra.mxu1 %vm1138_vm4, %v2120_v55  ;;  %v5415_v46 = vpop.f32.mrf.mxu1 }
 0x215   : > { %4105 = vmatmul.msk.f32.gmra.mxu2 %vm1138_vm4, %v1564_v56  ;;  %v2122_v56 = vsel %vm1065_vm7, %v2119_v57, %v2121_v27  ;;  %6435 = vst [vmem:[#allocation37_spill] sm:$0xff] %v5415_v46 }
 0x218   : > { %4050 = vmatmul.msk.f32.gmra.mxu3 %vm1138_vm4, %v4839_v31  ;;  %v5412_v31 = vpop.f32.mrf.mxu0 }
 0x21a   : > { %v5402_v22 = vpop.f32.mrf.mxu3 }
 0x21b   : > { %6433 = vst [vmem:[#allocation35_spill] sm:$0xff] %v5402_v22  ;;  %4139 = vmatmul.msk.f32.gmra.mxu0 %vm1138_vm4, %v1844_v7 }
 0x21c   : > { %4174 = vmatmul.msk.f32.gmra.mxu1 %vm1138_vm4, %v2122_v56 }
 0x220   : > { %4051 = vmatmul.msk.f32.gmra.mxu3 %vm1138_vm4, %v4850_v47 }
 0x222   : > { %v5410_v55 = vpop.f32.mrf.mxu3 }
 0x223   : > { %6434 = vst [vmem:[#allocation36_spill] sm:$0xff] %v5410_v55  ;;  %4140 = vmatmul.msk.f32.gmra.mxu0 %vm1138_vm4, %v1843_v41 }
 0x224   : > { %4175 = vmatmul.msk.f32.gmra.mxu1 %vm1138_vm4, %v2121_v27  ;;  %v5442_v27 = vpop.f32.mrf.mxu2 }
 0x228   : > { %4052 = vmatmul.msk.f32.gmra.mxu3 %vm1138_vm4, %v4862_v2 }
 0x22a   : > { %v5420_v34 = vpop.f32.mrf.mxu3 }
 0x22b   : > { %6436 = vst [vmem:[#allocation38_spill] sm:$0xff] %v5420_v34 }
 0x230   : > { %4053 = vmatmul.msk.f32.gmra.mxu3 %vm1138_vm4, %v4874_v20 }
 0x233   : > { %v5424_v57 = vpop.f32.mrf.mxu3 }
 0x234   : > { %6437 = vst [vmem:[#allocation39_spill] sm:$0xff] %v5424_v57 }
 0x238   : > { %4054 = vmatmul.msk.f32.gmra.mxu3 %vm1138_vm4, %v4889_v44  ;;  %v5446_v44 = vpop.f32.mrf.mxu0 }
 0x23b   : > { %v5428_v47 = vpop.f32.mrf.mxu3 }
 0x23c   : > { %6438 = vst [vmem:[#allocation40_spill] sm:$0xff] %v5428_v47 }
 0x240   : > { %4055 = vmatmul.msk.f32.gmra.mxu3 %vm1138_vm4, %v4905_v3  ;;  %v5448_v3 = vpop.f32.mrf.mxu1  ;;  %v5456_v56 = vpop.f32.mrf.mxu0 }
 0x241   : > { %6442 = vst [vmem:[#allocation44_spill] sm:$0xff] %v5448_v3 }
 0x243   : > { %v5432_v41 = vpop.f32.mrf.mxu3 }
 0x244   : > { %6439 = vst [vmem:[#allocation41_spill] sm:$0xff] %v5432_v41 }
 0x248   : > { %4056 = vmatmul.msk.f32.gmra.mxu3 %vm1138_vm4, %v4921_v25  ;;  %v5454_v25 = vpop.f32.mrf.mxu2  ;;  %v5460_v28 = vpop.f32.mrf.mxu1 }
 0x249   : > { %6443 = vst [vmem:[#allocation45_spill] sm:$0xff] %v5460_v28  ;;  %v5468_v47 = vpop.f32.mrf.mxu0 }
 0x24b   : > { %v5436_v2 = vpop.f32.mrf.mxu3 }
 0x24c   : > { %6440 = vst [vmem:[#allocation42_spill] sm:$0xff] %v5436_v2 }
 0x250   : > { %4057 = vmatmul.msk.f32.gmra.mxu3 %vm1138_vm4, %v4939_v50  ;;  %v5470_v55 = vpop.f32.mrf.mxu1 }
 0x251   : > { %v5476_v57 = vpop.f32.mrf.mxu0 }
 0x253   : > { %v5440_v20 = vpop.f32.mrf.mxu3 }
 0x254   : > { %6441 = vst [vmem:[#allocation43_spill] sm:$0xff] %v5440_v20 }
 0x258   : > { %4058 = vmatmul.msk.f32.gmra.mxu3 %vm1138_vm4, %v4957_v13  ;;  %v5464_v13 = vpop.f32.mrf.mxu2 }
 0x259   : > { %v1965_v26 = vpop.f32.mrf.mxu0 }
 0x25b   : > { %v5450_v7 = vpop.f32.mrf.mxu3 }
 0x260   : > { %4059 = vmatmul.msk.f32.gmra.mxu3 %vm1138_vm4, %v4975_v37  ;;  %v1683_v34 = vpop.f32.mrf.mxu2 }
 0x261   : > { %v1968_v45 = vpop.f32.mrf.mxu0 }
 0x263   : > { %v5458_v50 = vpop.f32.mrf.mxu3 }
 0x268   : > { %4060 = vmatmul.msk.f32.gmra.mxu3 %vm1138_vm4, %v4993_v1  ;;  %v5480_v1 = vpop.f32.mrf.mxu1  ;;  %v1686_v21 = vpop.f32.mrf.mxu2 }
 0x269   : > { %v1971_v61 = vpop.f32.mrf.mxu0 }
 0x26b   : > { %v5466_v22 = vpop.f32.mrf.mxu3 }
 0x270   : > { %4061 = vmatmul.msk.f32.gmra.mxu3 %vm1138_vm4, %v5011_v32  ;;  %v5484_v5 = vpop.f32.mrf.mxu1  ;;  %v1689_v32 = vpop.f32.mrf.mxu2 }
 0x271   : > { %v1974_v46 = vpop.f32.mrf.mxu0 }
 0x273   : > { %v5474_v37 = vpop.f32.mrf.mxu3 }
 0x278   : > { %4062 = vmatmul.msk.f32.gmra.mxu3 %vm1138_vm4, %v5029_v62  ;;  %v2246_v38 = vpop.f32.mrf.mxu1  ;;  %v1692_v62 = vpop.f32.mrf.mxu2 }
 0x27b   : > { %v1424_v19 = vpop.f32.mrf.mxu3 }
 0x280   : > { %4063 = vmatmul.msk.f32.gmra.mxu3 %vm1138_vm4, %v5047_v33  ;;  %v2249_v41 = vpop.f32.mrf.mxu1  ;;  %v1695_v48 = vpop.f32.mrf.mxu2 }
 0x283   : > { %v1427_v16 = vpop.f32.mrf.mxu3 }
 0x288   : > { %4064 = vmatmul.msk.f32.gmra.mxu3 %vm1138_vm4, %v5065_v4  ;;  %v2252_v4 = vpop.f32.mrf.mxu1  ;;  %v5494_v49 = vpop.f32.mrf.mxu2 }
 0x289   : > { %6444 = vst [vmem:[#allocation46_spill] sm:$0xff] %v5494_v49 }
 0x28b   : > { %v1430_v30 = vpop.f32.mrf.mxu3 }
 0x290   : > { %4065 = vmatmul.msk.f32.gmra.mxu3 %vm1138_vm4, %v5083_v40  ;;  %v5498_v40 = vpop.f32.mrf.mxu0  ;;  %v5500_v2 = vpop.f32.mrf.mxu1 }
 0x291   : > { %6445 = vst [vmem:[#allocation47_spill] sm:$0xff] %v5498_v40 }
 0x292   : > { %6446 = vst [vmem:[#allocation48_spill] sm:$0xff] %v5500_v2 }
 0x293   : > { %v1433_v12 = vpop.f32.mrf.mxu3 }
 0x298   : > { %4066 = vmatmul.msk.f32.gmra.mxu3 %vm1138_vm4, %v5101_v15  ;;  %v5504_v15 = vpop.f32.mrf.mxu2  ;;  %v5506_v3 = vpop.f32.mrf.mxu0 }
 0x299   : > { %6447 = vst [vmem:[#allocation49_spill] sm:$0xff] %v5504_v15  ;;  %v5508_v9 = vpop.f32.mrf.mxu1 }
 0x29a   : > { %6448 = vst [vmem:[#allocation50_spill] sm:$0xff] %v5506_v3 }
 0x29b   : > { %v1436_v33 = vpop.f32.mrf.mxu3  ;;  %6449 = vst [vmem:[#allocation51_spill] sm:$0xff] %v5508_v9 }
 0x29c   : > { %v1437_v3 = vadd.f32 %v1436_v33, %v5137_v54 }
 0x29e   : > { %v1757_v28 = vadd.f32 %v1683_v34, %v1437_v3 }
 0x2a0   : > { %4067 = vmatmul.msk.f32.gmra.mxu3 %vm1138_vm4, %v5123_v58  ;;  %v5514_v40 = vpop.f32.mrf.mxu2  ;;  %v5518_v20 = vpop.f32.mrf.mxu0 }
 0x2a1   : > { %6450 = vst [vmem:[#allocation52_spill] sm:$0xff] %v5514_v40  ;;  %v1431_v40 = vadd.f32 %v1430_v30, %v5097_v14  ;;  %v2036_v14 = vadd.f32 %v5476_v57, %v1757_v28 }
 0x2a2   : > { %6451 = vst [vmem:[#allocation53_spill] sm:$0xff] %v5518_v20 }
 0x2a3   : > { %v1439_v51 = vpop.f32.mrf.mxu3 }
 0x2a4   : > { %v1440_v17 = vadd.f32 %v1439_v51, %v5158_v18 }
 0x2a8   : > { %4068 = vmatmul.msk.f32.gmra.mxu3 %vm1138_vm4, %v5141_v36  ;;  %v5534_v30 = vpop.f32.mrf.mxu0 }
 0x2a9   : > { %6454 = vst [vmem:[#allocation56_spill] sm:$0xff] %v5534_v30  ;;  %v6494_v30 = vld [vmem:[#allocation32_spill] sm:$0xff] }
 0x2ab   : > { %v1442_v10 = vpop.f32.mrf.mxu3 }
 0x2ac   : > { %v1443_v36 = vadd.f32 %v1442_v10, %v5175_v59 }
 0x2ae   : > { %v1759_v9 = vadd.f32 %v1689_v32, %v1443_v36  ;;  %v5529_v32 = vpop.f32.mrf.mxu2 }
 0x2b0   : > { %4069 = vmatmul.msk.f32.gmra.mxu3 %vm1138_vm4, %v5162_v8  ;;  %v2038_v18 = vadd.f32 %v1968_v45, %v1759_v9 }
 0x2b3   : > { %v1445_v58 = vpop.f32.mrf.mxu3 }
 0x2b4   : > { %v1446_v49 = vadd.f32 %v1445_v58, %v5193_v6  ;;  %v5521_v6 = vpop.f32.mrf.mxu1  ;;  %v1758_v58 = vadd.f32 %v1686_v21, %v1440_v17  ;;  %v2316_v21 = vadd.f32 %v2246_v38, %v2038_v18 }
 0x2b5   : > { %6452 = vst [vmem:[#allocation54_spill] sm:$0xff] %v5521_v6  ;;  %v6493_v6 = vld [vmem:[#allocation35_spill] sm:$0xff] }
 0x2b6   : > { %v1760_v8 = vadd.f32 %v1692_v62, %v1446_v49  ;;  %v5560_v57 = vpop.f32.mrf.mxu2 }
 0x2b8   : > { %4070 = vmatmul.msk.f32.gmra.mxu3 %vm1138_vm4, %v5183_v11  ;;  %v1434_v11 = vadd.f32 %v1433_v12, %v5119_v52  ;;  %v2039_v10 = vadd.f32 %v1971_v61, %v1760_v8  ;;  %v1425_v52 = vadd.f32 %v1424_v19, %v5061_v63  ;;  %v1419_v63 = vadd.f32 %v5466_v22, %v5025_v60  ;;  %v6456_v22 = vld [vmem:[#allocation45_spill] sm:$0xff] }
 0x2b9   : > { %v2314_v12 = vadd.f32 %v5480_v1, %v2036_v14  ;;  %v1413_v60 = vadd.f32 %v5450_v7, %v4989_v0  ;;  %v5567_v0 = vpop.f32.mrf.mxu0  ;;  %v6464_v7 = vld [vmem:[#allocation42_spill] sm:$0xff]  ;;  %v6467_v1 = vld [vmem:[#allocation37_spill] sm:$0xff] }
 0x2ba   : > { %v1756_v54 = vadd.f32 %v5464_v13, %v1434_v11  ;;  %v1753_v19 = vadd.f32 %v5390_v43, %v1425_v52  ;;  %v1751_v43 = vadd.f32 %v5346_v23, %v1419_v63  ;;  %6462 = vst [vmem:[#allocation45_spill] sm:$0xff] %v5567_v0  ;;  %v6463_v23 = vld [vmem:[#allocation3_spill] sm:$0xff]  ;;  %v6466_v13 = vld [vmem:[#allocation30_spill] sm:$0xff]  ;;  %v6471_v8 = vld [vmem:[#allocation13_spill] sm:$0xff] }
 0x2bb   : > { %v1448_v2 = vpop.f32.mrf.mxu3  ;;  %v6480_v63 = vld [vmem:[#allocation15_spill] sm:$0xff] }
 0x2bc   : > { %v1449_v15 = vadd.f32 %v1448_v2, %v5205_v53  ;;  %v1428_v53 = vadd.f32 %v1427_v16, %v5079_v39  ;;  %v2037_v2 = vadd.f32 %v1965_v26, %v1758_v58  ;;  %v1422_v39 = vadd.f32 %v5474_v37, %v5043_v24  ;;  %v5541_v45 = vpop.f32.mrf.mxu1  ;;  %v6472_v58 = vld [vmem:[#allocation27_spill] sm:$0xff] }
 0x2bd   : > { %v2035_v17 = vadd.f32 %v5468_v47, %v1756_v54  ;;  %6455 = vst [vmem:[#allocation57_spill] sm:$0xff] %v5541_v45  ;;  %v2032_v38 = vadd.f32 %v5412_v31, %v1753_v19  ;;  %v6458_v47 = vld [vmem:[#allocation43_spill] sm:$0xff]  ;;  %v1407_v31 = vadd.f32 %v6464_v7, %v6463_v23  ;;  %v2030_v37 = vadd.f32 %v6466_v13, %v1751_v43  ;;  %v6475_v54 = vld [vmem:[#allocation24_spill] sm:$0xff] }
 0x2be   : > { %v1761_v35 = vadd.f32 %v1695_v48, %v1449_v15  ;;  %v2317_v48 = vadd.f32 %v2249_v41, %v2039_v10  ;;  %v1754_v61 = vadd.f32 %v5442_v27, %v1428_v53  ;;  %v2315_v26 = vadd.f32 %v5484_v5, %v2037_v2  ;;  %v6459_v41 = vld [vmem:[#allocation22_spill] sm:$0xff]  ;;  %v6470_v15 = vld [vmem:[#allocation41_spill] sm:$0xff] }
 0x2bf   : > { %v1752_v28 = vadd.f32 %v5367_v42, %v1422_v39  ;;  %v2313_v9 = vadd.f32 %v5470_v55, %v2035_v17  ;;  %v6461_v55 = vld [vmem:[#allocation44_spill] sm:$0xff]  ;;  %v2310_v62 = vadd.f32 %v6467_v1, %v2032_v38 }
 0x2c0   : > { %v2040_v59 = vadd.f32 %v1974_v46, %v1761_v35  ;;  %v1755_v35 = vadd.f32 %v5454_v25, %v1431_v40  ;;  %v1416_v46 = vadd.f32 %v5458_v50, %v5007_v29  ;;  %v2033_v5 = vadd.f32 %v5446_v44, %v1754_v61  ;;  %v6457_v29 = vld [vmem:[#allocation4_spill] sm:$0xff]  ;;  %v6460_v44 = vld [vmem:[#allocation33_spill] sm:$0xff]  ;;  %v6469_v40 = vld [vmem:[#allocation2_spill] sm:$0xff] }
 0x2c1   : > { %v1410_v42 = vadd.f32 %v6458_v47, %v6457_v29  ;;  %v2031_v3 = vadd.f32 %v6460_v44, %v1752_v28  ;;  %v1404_v36 = vadd.f32 %v6470_v15, %v6469_v40  ;;  %v6479_v61 = vld [vmem:[#allocation28_spill] sm:$0xff] }
 0x2c2   : > { %v2318_v51 = vadd.f32 %v2252_v4, %v2040_v59  ;;  %v2034_v16 = vadd.f32 %v5456_v56, %v1755_v35  ;;  %v1750_v27 = vadd.f32 %v6459_v41, %v1416_v46  ;;  %v2311_v25 = vadd.f32 %v6461_v55, %v2033_v5  ;;  %v6465_v56 = vld [vmem:[#allocation18_spill] sm:$0xff]  ;;  %v6477_v35 = vld [vmem:[#allocation7_spill] sm:$0xff]  ;;  %v5593_v46 = vpop.f32.mrf.mxu0  ;;  %v6486_v29 = vld [vmem:[#allocation12_spill] sm:$0xff] }
 0x2c3   : > { %v5525_v49 = vpop.f32.mrf.mxu3  ;;  %v1749_v50 = vadd.f32 %v6465_v56, %v1413_v60  ;;  %v1748_v11 = vadd.f32 %v6471_v8, %v1410_v42  ;;  %v6473_v59 = vld [vmem:[#allocation34_spill] sm:$0xff]  ;;  %v1746_v14 = vadd.f32 %v6477_v35, %v1404_v36  ;;  %v6482_v5 = vld [vmem:[#allocation11_spill] sm:$0xff]  ;;  %v6483_v60 = vld [vmem:[#allocation20_spill] sm:$0xff] }
 0x2c4   : > { %6453 = vst [vmem:[#allocation55_spill] sm:$0xff] %v5525_v49  ;;  %2395 = vmatpush.msra.mxu3 %v2318_v51  ;;  %v2312_v34 = vadd.f32 %v6456_v22, %v2034_v16  ;;  %v5574_v33 = vpop.f32.mrf.mxu1  ;;  %v2029_v10 = vadd.f32 %v6472_v58, %v1750_v27  ;;  %v2309_v18 = vadd.f32 %v6473_v59, %v2031_v3  ;;  %v6474_v51 = vld [vmem:[#allocation9_spill] sm:$0xff]  ;;  %v6485_v22 = vld [vmem:[#allocation16_spill] sm:$0xff] }
 0x2c5   : > { %6468 = vst [vmem:[#allocation4_spill] sm:$0xff] %v5574_v33  ;;  %v1747_v53 = vadd.f32 %v6474_v51, %v1407_v31  ;;  %v2028_v2 = vadd.f32 %v6475_v54, %v1749_v50  ;;  %v6481_v16 = vld [vmem:[#allocation25_spill] sm:$0xff] }
 0x2c6   : > { %2396 = vmatpush.msra.mxu3 %v2317_v48  ;;  %v6476_v48 = vld [vmem:[#allocation31_spill] sm:$0xff]  ;;  %v2307_v17 = vadd.f32 %v6479_v61, %v2029_v10 }
 0x2c7   : > { %v2308_v52 = vadd.f32 %v6476_v48, %v2030_v37  ;;  %v2026_v19 = vadd.f32 %v6480_v63, %v1747_v53 }
 0x2c8   : > { %2397 = vmatpush.msra.mxu3 %v2316_v21  ;;  %v6478_v21 = vld [vmem:[#allocation19_spill] sm:$0xff] }
 0x2c9   : > { %v2027_v39 = vadd.f32 %v6478_v21, %v1748_v11 }
 0x2ca   : > { %2398 = vmatpush.msra.mxu3 %v2315_v26  ;;  %v5589_v26 = vpop.f32.mrf.mxu2  ;;  %v5607_v27 = vpop.f32.mrf.mxu0 }
 0x2cb   : > { %v5548_v24 = vpop.f32.mrf.mxu3  ;;  %v2305_v43 = vadd.f32 %v6483_v60, %v2027_v39  ;;  %v6491_v60 = vld [vmem:[#allocation36_spill] sm:$0xff] }
 0x2cc   : > { %2399 = vmatpush.msra.mxu3 %v2314_v12  ;;  %v2306_v12 = vadd.f32 %v6481_v16, %v2028_v2  ;;  %v5599_v38 = vpop.f32.mrf.mxu1 }
 0x2cd   : > { %6484 = vst [vmem:[#allocation43_spill] sm:$0xff] %v5599_v38 }
 0x2ce   : > { %2400 = vmatpush.msra.mxu3 %v2313_v9  ;;  %v2025_v9 = vadd.f32 %v6482_v5, %v1746_v14 }
 0x2d0   : > { %2401 = vmatpush.msra.mxu3 %v2312_v34  ;;  %v2304_v34 = vadd.f32 %v6485_v22, %v2026_v19  ;;  %v2303_v47 = vadd.f32 %v6486_v29, %v2025_v9  ;;  %v6489_v19 = vld [vmem:[#allocation39_spill] sm:$0xff] }
 0x2d2   : > { %2402 = vmatpush.msra.mxu3 %v2311_v25  ;;  %v5603_v42 = vpop.f32.mrf.mxu2  ;;  %v5615_v25 = vpop.f32.mrf.mxu0 }
 0x2d3   : > { %v5576_v4 = vpop.f32.mrf.mxu3 }
 0x2d4   : > { %2403 = vmatpush.msra.mxu3 %v2310_v62  ;;  %v5609_v44 = vpop.f32.mrf.mxu1 }
 0x2d5   : > { %6487 = vst [vmem:[#allocation22_spill] sm:$0xff] %v5609_v44 }
 0x2d6   : > { %2404 = vmatpush.msra.mxu3 %v2309_v18 }
 0x2d8   : > { %2405 = vmatpush.msra.mxu3 %v2308_v52 }
 0x2da   : > { %2406 = vmatpush.msra.mxu3 %v2307_v17  ;;  %v5613_v55 = vpop.f32.mrf.mxu2  ;;  %v5623_v56 = vpop.f32.mrf.mxu0 }
 0x2db   : > { %v5595_v28 = vpop.f32.mrf.mxu3 }
 0x2dc   : > { %2407 = vmatpush.msra.mxu3 %v2306_v12  ;;  %v5617_v23 = vpop.f32.mrf.mxu1  ;;  %v6490_v12 = vld [vmem:[#allocation38_spill] sm:$0xff] }
 0x2dd   : > { %6488 = vst [vmem:[#allocation33_spill] sm:$0xff] %v5617_v23 }
 0x2de   : > { %2408 = vmatpush.msra.mxu3 %v2305_v43 }
 0x2e0   : > { %2409 = vmatpush.msra.mxu3 %v2304_v34  ;;  %v6492_v34 = vld [vmem:[#allocation40_spill] sm:$0xff] }
 0x2e2   : > { %2410 = vmatpush.msra.mxu3 %v2303_v47  ;;  %v5621_v31 = vpop.f32.mrf.mxu2  ;;  %v5627_v1 = vpop.f32.mrf.mxu0 }
 0x2e3   : > { %v5605_v41 = vpop.f32.mrf.mxu3 }
 0x2e4   : > { %v5625_v50 = vpop.f32.mrf.mxu1 }
 0x2ea   : > { %v1725_v37 = vpop.f32.mrf.mxu2  ;;  %v2007_v8 = vpop.f32.mrf.mxu0 }
 0x2eb   : > { %v5611_v3 = vpop.f32.mrf.mxu3 }
 0x2ec   : > { %v5629_v40 = vpop.f32.mrf.mxu1 }
 0x2f2   : > { %v1728_v15 = vpop.f32.mrf.mxu2  ;;  %v2010_v59 = vpop.f32.mrf.mxu0 }
 0x2f3   : > { %v5619_v7 = vpop.f32.mrf.mxu3 }
 0x2f4   : > { %v5631_v11 = vpop.f32.mrf.mxu1 }
 0x2fa   : > { %v1731_v10 = vpop.f32.mrf.mxu2  ;;  %v2013_v54 = vpop.f32.mrf.mxu0 }
 0x2fb   : > { %v1472_v13 = vpop.f32.mrf.mxu3 }
 0x2fc   : > { %v2288_v18 = vpop.f32.mrf.mxu1 }
 0x302   : > { %v1734_v53 = vpop.f32.mrf.mxu2  ;;  %v2016_v35 = vpop.f32.mrf.mxu0 }
 0x303   : > { %v1475_v62 = vpop.f32.mrf.mxu3 }
 0x304   : > { %v2291_v2 = vpop.f32.mrf.mxu1 }
 0x30a   : > { %v1737_v52 = vpop.f32.mrf.mxu2  ;;  %v2019_v17 = vpop.f32.mrf.mxu0 }
 0x30b   : > { %v1478_v36 = vpop.f32.mrf.mxu3 }
 0x30c   : > { %v2294_v21 = vpop.f32.mrf.mxu1 }
 0x312   : > { %v1740_v39 = vpop.f32.mrf.mxu2  ;;  %v2022_v38 = vpop.f32.mrf.mxu0 }
 0x313   : > { %v1481_v58 = vpop.f32.mrf.mxu3 }
 0x314   : > { %v2297_v63 = vpop.f32.mrf.mxu1  ;;  %v1482_v44 = vadd.f32 %v1481_v58, %v6494_v30  ;;  %v6497_v58 = vld [vmem:[#allocation23_spill] sm:$0xff] }
 0x31a   : > { %v1743_v47 = vpop.f32.mrf.mxu2 }
 0x31b   : > { %v1484_v51 = vpop.f32.mrf.mxu3 }
 0x31c   : > { %v1485_v45 = vadd.f32 %v1484_v51, %v6493_v6  ;;  %v6496_v6 = vld [vmem:[#allocation26_spill] sm:$0xff] }
 0x31d   : > { %v1476_v51 = vadd.f32 %v1475_v62, %v6496_v6 }
 0x31f   : > { %v1770_v62 = vadd.f32 %v5621_v31, %v1476_v51  ;;  %v6516_v51 = vld [vmem:[#allocation50_spill] sm:$0xff] }
 0x321   : > { %v2049_v31 = vadd.f32 %v5623_v56, %v1770_v62 }
 0x323   : > { %v1487_v48 = vpop.f32.mrf.mxu3 }
 0x324   : > { %v1488_v43 = vadd.f32 %v1487_v48, %v6491_v60  ;;  %v6495_v48 = vld [vmem:[#allocation29_spill] sm:$0xff] }
 0x326   : > { %v1774_v0 = vadd.f32 %v1734_v53, %v1488_v43 }
 0x32b   : > { %v1490_v14 = vpop.f32.mrf.mxu3 }
 0x32c   : > { %v1491_v5 = vadd.f32 %v1490_v14, %v6490_v12  ;;  %v2335_v14 = vld [vmem:[%s6392_s3] sm:$0xff] }
 0x32d   : > { %2411 = vmatmul.f32.vlgmr.msra.gmra.mxu3 %v2335_v14  ;;  %v2341_v14 = vld [vmem:[%s6392_s3 + $0x30] sm:$0xff] }
 0x32e   : > { %v1775_v33 = vadd.f32 %v1737_v52, %v1491_v5  ;;  %v1772_v52 = vadd.f32 %v1728_v15, %v1482_v44  ;;  %v2053_v5 = vadd.f32 %v2013_v54, %v1774_v0  ;;  %v6499_v15 = vld [vmem:[#allocation17_spill] sm:$0xff]  ;;  %v6501_v54 = vld [vmem:[#allocation10_spill] sm:$0xff] }
 0x330   : > { %v2051_v44 = vadd.f32 %v2007_v8, %v1772_v52  ;;  %v2331_v0 = vadd.f32 %v2291_v2, %v2053_v5  ;;  %v6517_v5 = vld [vmem:[#allocation57_spill] sm:$0xff] }
 0x332   : > { %v2329_v8 = vadd.f32 %v5631_v11, %v2051_v44  ;;  %v2336_v44 = vld [vmem:[%s6392_s3 + $0x8] sm:$0xff] }
 0x333   : > { %v1493_v61 = vpop.f32.mrf.mxu3 }
 0x334   : > { %v1494_v16 = vadd.f32 %v1493_v61, %v6489_v19  ;;  %v2300_v61 = vpop.f32.mrf.mxu1  ;;  %v1773_v19 = vadd.f32 %v1731_v10, %v1485_v45  ;;  %v2337_v45 = vld [vmem:[%s6392_s3 + $0x10] sm:$0xff]  ;;  %v6500_v10 = vld [vmem:[#allocation14_spill] sm:$0xff] }
 0x335   : > { %2414 = vmatmul.f32.gmra.mxu3 %v2337_v45 }
 0x336   : > { %v1776_v22 = vadd.f32 %v1740_v39, %v1494_v16  ;;  %v1479_v39 = vadd.f32 %v1478_v36, %v6495_v48  ;;  %v2054_v16 = vadd.f32 %v2016_v35, %v1775_v33  ;;  %v2052_v53 = vadd.f32 %v2010_v59, %v1773_v19  ;;  %v6498_v33 = vld [vmem:[#allocation21_spill] sm:$0xff]  ;;  %v6513_v48 = vld [vmem:[#allocation46_spill] sm:$0xff] }
 0x337   : > { %v1464_v59 = vadd.f32 %v5605_v41, %v6500_v10  ;;  %v2339_v41 = vld [vmem:[%s6392_s3 + $0x20] sm:$0xff]  ;;  %v6514_v19 = vld [vmem:[#allocation53_spill] sm:$0xff] }
 0x338   : > { %v2055_v49 = vadd.f32 %v2019_v17, %v1776_v22  ;;  %v2332_v17 = vadd.f32 %v2294_v21, %v2054_v16  ;;  %v2330_v36 = vadd.f32 %v2288_v18, %v2052_v53  ;;  %v6504_v21 = vld [vmem:[#allocation33_spill] sm:$0xff]  ;;  %v2351_v10 = vld [vmem:[%s6392_s3 + $0x80] sm:$0xff] }
 0x339   : > { %v1766_v2 = vadd.f32 %v5560_v57, %v1464_v59  ;;  %v6507_v57 = vld [vmem:[#allocation52_spill] sm:$0xff]  ;;  %v2344_v59 = vld [vmem:[%s6392_s3 + $0x48] sm:$0xff] }
 0x33a   : > { %v2333_v30 = vadd.f32 %v2297_v63, %v2055_v49  ;;  %v1467_v49 = vadd.f32 %v5611_v3, %v6499_v15  ;;  %v1461_v3 = vadd.f32 %v5595_v28, %v6501_v54  ;;  %v2327_v28 = vadd.f32 %v5625_v50, %v2049_v31  ;;  %v6509_v50 = vld [vmem:[#allocation22_spill] sm:$0xff]  ;;  %v2338_v15 = vld [vmem:[%s6392_s3 + $0x18] sm:$0xff]  ;;  %v2348_v54 = vld [vmem:[%s6392_s3 + $0x68] sm:$0xff] }
 0x33b   : > { %v1496_v9 = vpop.f32.mrf.mxu3  ;;  %v2346_v31 = vld [vmem:[%s6392_s3 + $0x58] sm:$0xff] }
 0x33c   : > { %v1497_v29 = vadd.f32 %v1496_v9, %v6492_v34  ;;  %v1765_v35 = vadd.f32 %v5529_v32, %v1461_v3  ;;  %v6505_v9 = vld [vmem:[#allocation5_spill] sm:$0xff]  ;;  %v4188_v3 = vld [vmem:[%s6393_s4 + $0x8] sm:$0xff] }
 0x33d   : > { %2417 = vmatmul.f32.gmra.mxu3 %v2339_v41  ;;  %2607 = vmatpush.msra.mxu0 %v4188_v3  ;;  %v2354_v41 = vld [vmem:[%s6392_s3 + $0x98] sm:$0xff] }
 0x33e   : > { %v1777_v20 = vadd.f32 %v1743_v47, %v1497_v29  ;;  %v6510_v29 = vld [vmem:[#allocation49_spill] sm:$0xff]  ;;  %v6511_v47 = vld [vmem:[#allocation56_spill] sm:$0xff] }
 0x33f   : > { %v2044_v32 = vadd.f32 %v6511_v47, %v1765_v35 }
 0x340   : > { %v2056_v23 = vadd.f32 %v2022_v38, %v1777_v20  ;;  %v1473_v20 = vadd.f32 %v1472_v13, %v6497_v58  ;;  %v1771_v38 = vadd.f32 %v1725_v37, %v1479_v39  ;;  %v6518_v58 = vld [vmem:[#allocation47_spill] sm:$0xff] }
 0x342   : > { %v2334_v12 = vadd.f32 %v2300_v61, %v2056_v23  ;;  %v1470_v23 = vadd.f32 %v5619_v7, %v6498_v33  ;;  %v1769_v13 = vadd.f32 %v5613_v55, %v1473_v20  ;;  %v2050_v37 = vadd.f32 %v5627_v1, %v1771_v38  ;;  %v6519_v38 = vld [vmem:[#allocation54_spill] sm:$0xff] }
 0x343   : > { %v1767_v55 = vadd.f32 %v5589_v26, %v1467_v49  ;;  %v6503_v26 = vld [vmem:[#allocation6_spill] sm:$0xff] }
 0x344   : > { %4176 = vmatpush.msk.msra.mxu2 %vm998_vm2, %v2334_v12  ;;  %v1768_v7 = vadd.f32 %v5603_v42, %v1470_v23  ;;  %v2048_v1 = vadd.f32 %v5615_v25, %v1769_v13  ;;  %v2328_v18 = vadd.f32 %v5629_v40, %v2050_v37  ;;  %v6502_v42 = vld [vmem:[#allocation8_spill] sm:$0xff]  ;;  %v1455_v25 = vadd.f32 %v5548_v24, %v6503_v26  ;;  %v2343_v33 = vld [vmem:[%s6392_s3 + $0x40] sm:$0xff]  ;;  %v2340_v13 = vld [vmem:[%s6392_s3 + $0x28] sm:$0xff] }
 0x345   : > { %v1458_v56 = vadd.f32 %v5576_v4, %v6502_v42  ;;  %v2046_v40 = vadd.f32 %v5593_v46, %v1767_v55  ;;  %v6506_v4 = vld [vmem:[#allocation55_spill] sm:$0xff]  ;;  %v6515_v12 = vld [vmem:[#allocation4_spill] sm:$0xff]  ;;  %2420 = vmatmul.f32.gmra.mxu3 %v2341_v14  ;;  %v2347_v49 = vld [vmem:[%s6392_s3 + $0x60] sm:$0xff] }
 0x346   : > { %2446 = vmatpush.msra.mxu2 %v2333_v30  ;;  %v2047_v11 = vadd.f32 %v5607_v27, %v1768_v7  ;;  %v2326_v63 = vadd.f32 %v6504_v21, %v2048_v1  ;;  %v1452_v60 = vadd.f32 %v6506_v4, %v6505_v9  ;;  %v6508_v27 = vld [vmem:[#allocation45_spill] sm:$0xff]  ;;  %v1763_v24 = vadd.f32 %v6510_v29, %v1455_v25  ;;  %v6512_v46 = vld [vmem:[#allocation43_spill] sm:$0xff]  ;;  %v6521_v23 = vld [vmem:[#allocation48_spill] sm:$0xff] }
 0x347   : > { %v1764_v43 = vadd.f32 %v6507_v57, %v1458_v56  ;;  %v2045_v22 = vadd.f32 %v6508_v27, %v1766_v2  ;;  %v2324_v61 = vadd.f32 %v6512_v46, %v2046_v40  ;;  %v2322_v30 = vadd.f32 %v6517_v5, %v2044_v32  ;;  %v2349_v37 = vld [vmem:[%s6392_s3 + $0x70] sm:$0xff]  ;;  %v2543_v55 = vld [vmem:[%s6393_s4] sm:$0xff]  ;;  %v2350_v1 = vld [vmem:[%s6392_s3 + $0x78] sm:$0xff] }
 0x348   : > { %2447 = vmatpush.msra.mxu2 %v2332_v17  ;;  %v2325_v34 = vadd.f32 %v6509_v50, %v2047_v11  ;;  %v1762_v39 = vadd.f32 %v6513_v48, %v1452_v60  ;;  %v2042_v52 = vadd.f32 %v6516_v51, %v1763_v24  ;;  %v6520_v17 = vld [vmem:[#allocation51_spill] sm:$0xff]  ;;  %v2353_v7 = vld [vmem:[%s6392_s3 + $0x90] sm:$0xff]  ;;  %2679 = vmatpush.msra.mxu1 %v2543_v55 }
 0x349   : > { %v2043_v16 = vadd.f32 %v6514_v19, %v1764_v43  ;;  %v2323_v6 = vadd.f32 %v6515_v12, %v2045_v22  ;;  %v2356_v42 = vld [vmem:[%s6392_s3 + $0xa8] sm:$0xf]  ;;  %v4211_v11 = vld [vmem:[%s6393_s4 + $0x10] sm:$0xff] }
 0x34a   : > { %2448 = vmatpush.msra.mxu2 %v2331_v0  ;;  %v2041_v20 = vadd.f32 %v6518_v58, %v1762_v39  ;;  %v2320_v45 = vadd.f32 %v6520_v17, %v2042_v52  ;;  %v2345_v0 = vld [vmem:[%s6392_s3 + $0x50] sm:$0xff]  ;;  %2774 = vmatpush.msrb.mxu3 %v4211_v11 }
 0x34b   : > { %v2321_v53 = vadd.f32 %v6519_v38, %v2043_v16 }
 0x34c   : > { %2449 = vmatpush.msra.mxu2 %v2330_v36  ;;  %v2319_v62 = vadd.f32 %v6521_v23, %v2041_v20  ;;  %v2342_v36 = vld [vmem:[%s6392_s3 + $0x38] sm:$0xff] }
 0x34d   : > { %2423 = vmatmul.f32.gmra.mxu3 %v2343_v33 }
 0x34e   : > { %2450 = vmatpush.msra.mxu2 %v2329_v8  ;;  %v2355_v8 = vld [vmem:[%s6392_s3 + $0xa0] sm:$0xf] }
 0x350   : > { %2451 = vmatpush.msra.mxu2 %v2328_v18  ;;  %v2352_v18 = vld [vmem:[%s6392_s3 + $0x88] sm:$0xff] }
 0x352   : > { %2452 = vmatpush.msra.mxu2 %v2327_v28  ;;  %v5776_v28 = vld [vmem:[%s6398_s9] sm:$0x3f] }
 0x353   : > { %v5779_v26 = vperm.slane %v5776_v28, 1 }
 0x354   : > { %2453 = vmatpush.msra.mxu2 %v2326_v63 }
 0x355   : > { %2426 = vmatmul.f32.gmra.mxu3 %v2345_v0 }
 0x356   : > { %2454 = vmatpush.msra.mxu2 %v2325_v34 }
 0x358   : > { %2455 = vmatpush.msra.mxu2 %v2324_v61 }
 0x35a   : > { %2456 = vmatpush.msra.mxu2 %v2323_v6 }
 0x35c   : > { %2457 = vmatpush.msra.mxu2 %v2322_v30 }
 0x35d   : > { %2429 = vmatmul.f32.gmra.mxu3 %v2347_v49 }
 0x35e   : > { %2458 = vmatpush.msra.mxu2 %v2321_v53 }
 0x360   : > { %2459 = vmatpush.msra.mxu2 %v2320_v45 }
 0x362   : > { %2460 = vmatpush.msra.mxu2 %v2319_v62 }
 0x363   : > { %4177 = vmatmul.msk.f32.vlgmr.msra.gmra.mxu2 %vm2358_vm8, %v2336_v44 }
 0x365   : > { %2432 = vmatmul.f32.gmra.mxu3 %v2349_v37 }
 0x36b   : > { %4178 = vmatmul.msk.f32.gmra.mxu2 %vm2358_vm8, %v2338_v15 }
 0x36d   : > { %2435 = vmatmul.f32.gmra.mxu3 %v2351_v10 }
 0x373   : > { %4179 = vmatmul.msk.f32.gmra.mxu2 %vm2358_vm8, %v2340_v13 }
 0x375   : > { %2438 = vmatmul.f32.gmra.mxu3 %v2353_v7 }
 0x37b   : > { %4180 = vmatmul.msk.f32.gmra.mxu2 %vm2358_vm8, %v2342_v36 }
 0x37d   : > { %2441 = vmatmul.f32.gmra.mxu3 %v2355_v8 }
 0x383   : > { %4181 = vmatmul.msk.f32.gmra.mxu2 %vm2358_vm8, %v2344_v59 }
 0x38b   : > { %4182 = vmatmul.msk.f32.gmra.mxu2 %vm2358_vm8, %v2346_v31 }
 0x393   : > { %4183 = vmatmul.msk.f32.gmra.mxu2 %vm2358_vm8, %v2348_v54 }
 0x39b   : > { %4184 = vmatmul.msk.f32.gmra.mxu2 %vm2358_vm8, %v2350_v1 }
 0x3a3   : > { %4185 = vmatmul.msk.f32.gmra.mxu2 %vm2358_vm8, %v2352_v18 }
 0x3ab   : > { %4186 = vmatmul.msk.f32.gmra.mxu2 %vm2358_vm8, %v2354_v41 }
 0x3b0   : > { %v2412_v56 = vpop.f32.mrf.mxu3 }
 0x3b1   : > { %v2413_v35 = vadd.f32 %v2412_v56, %v5779_v26 }
 0x3b3   : > { %4187 = vmatmul.msk.f32.gmra.mxu2 %vm2358_vm8, %v2356_v42 }
 0x3b8   : > { %v2415_v2 = vpop.f32.mrf.mxu3 }
 0x3b9   : > { %v2416_v60 = vadd.f32 %v2415_v2, %v5779_v26 }
 0x3c0   : > { %v2418_v25 = vpop.f32.mrf.mxu3 }
 0x3c1   : > { %v2419_v34 = vadd.f32 %v2418_v25, %v5779_v26 }
 0x3c8   : > { %v2421_v9 = vpop.f32.mrf.mxu3 }
 0x3c9   : > { %v2422_v6 = vadd.f32 %v2421_v9, %v5779_v26 }
 0x3d0   : > { %v2424_v29 = vpop.f32.mrf.mxu3 }
 0x3d1   : > { %v2425_v33 = vadd.f32 %v2424_v29, %v5779_v26 }
 0x3d8   : > { %v2427_v58 = vpop.f32.mrf.mxu3 }
 0x3d9   : > { %v2428_v59 = vadd.f32 %v2427_v58, %v5779_v26 }
 0x3e0   : > { %v2430_v37 = vpop.f32.mrf.mxu3 }
 0x3e1   : > { %v2431_v56 = vadd.f32 %v2430_v37, %v5779_v26 }
 0x3e6   : > { %v2462_v40 = vpop.f32.mrf.mxu2 }
 0x3e7   : > { %v2463_v21 = vadd.f32 %v2462_v40, %v2413_v35 }
 0x3e8   : > { %v2433_v41 = vpop.f32.mrf.mxu3 }
 0x3e9   : > { %v2495_v63 = vmax.f32 %v2463_v21, 0.0 }
 0x3eb   : > { %v2518_v4 = vrot.slane %v2495_v63, 7 }
 0x3ed   : > { %v2541_v57 = vsel %vm2517_vm9, 0.0, %v2518_v4 }
 0x3ee   : > { %v2465_v43 = vpop.f32.mrf.mxu2  ;;  %4200 = vmatmul.msk.f32.vlgmr.msra.gmra.mxu1 %vm2569_vm10, %v2541_v57  ;;  %v2548_v47 = vrot.slane %v2541_v57, 1  ;;  %v2716_v32 = vrot.slane %v2541_v57, 2 }
 0x3ef   : > { %v2466_v27 = vadd.f32 %v2465_v43, %v2416_v60  ;;  %v2434_v60 = vadd.f32 %v2433_v41, %v5779_v26 }
 0x3f0   : > { %v2436_v57 = vpop.f32.mrf.mxu3 }
 0x3f1   : > { %v2496_v22 = vmax.f32 %v2466_v27, 0.0 }
 0x3f3   : > { %v2519_v50 = vrot.slane %v2496_v22, 7 }
 0x3f5   : > { %v2520_v24 = vsel %vm2517_vm9, %v2518_v4, %v2519_v50 }
 0x3f6   : > { %v2549_v46 = vrot.slane %v2520_v24, 1  ;;  %v2717_v61 = vrot.slane %v2520_v24, 2  ;;  %v2468_v14 = vpop.f32.mrf.mxu2  ;;  %4201 = vmatmul.msk.f32.gmra.mxu1 %vm2569_vm10, %v2520_v24 }
 0x3f7   : > { %v2469_v48 = vadd.f32 %v2468_v14, %v2419_v34 }
 0x3f8   : > { %v2718_v39 = vsel %vm1502_vm5, %v2716_v32, %v2717_v61  ;;  %v2550_v19 = vsel %vm1074_vm3, %v2548_v47, %v2549_v46 }
 0x3f9   : > { %v2497_v16 = vmax.f32 %v2469_v48, 0.0  ;;  %4212 = vmatmul.msk.f32.vlgmr.msrb.gmra.mxu3 %vm2569_vm10, %v2718_v39  ;;  %4189 = vmatmul.msk.f32.vlgmr.msra.gmra.mxu0 %vm2569_vm10, %v2550_v19  ;;  %v2439_v39 = vpop.f32.mrf.mxu3 }
 0x3fb   : > { %v2521_v12 = vrot.slane %v2497_v16, 7 }
 0x3fd   : > { %v2522_v51 = vsel %vm2517_vm9, %v2519_v50, %v2521_v12 }
 0x3fe   : > { %v2471_v52 = vpop.f32.mrf.mxu2  ;;  %v2719_v5 = vrot.slane %v2522_v51, 2  ;;  %v2551_v30 = vrot.slane %v2522_v51, 1  ;;  %4202 = vmatmul.msk.f32.gmra.mxu1 %vm2569_vm10, %v2522_v51 }
 0x3ff   : > { %v2472_v20 = vadd.f32 %v2471_v52, %v2422_v6 }
 0x400   : > { %v2720_v38 = vsel %vm1502_vm5, %v2717_v61, %v2719_v5  ;;  %v2552_v53 = vsel %vm1074_vm3, %v2549_v46, %v2551_v30  ;;  %v2437_v46 = vadd.f32 %v2436_v57, %v5779_v26 }
 0x401   : > { %v2498_v17 = vmax.f32 %v2472_v20, 0.0  ;;  %4213 = vmatmul.msk.f32.gmra.mxu3 %vm2569_vm10, %v2720_v38  ;;  %4190 = vmatmul.msk.f32.gmra.mxu0 %vm2569_vm10, %v2552_v53 }
 0x403   : > { %v2523_v45 = vrot.slane %v2498_v17, 7 }
 0x405   : > { %v2524_v23 = vsel %vm2517_vm9, %v2521_v12, %v2523_v45 }
 0x406   : > { %v2474_v62 = vpop.f32.mrf.mxu2  ;;  %v2721_v44 = vrot.slane %v2524_v23, 2  ;;  %v2553_v0 = vrot.slane %v2524_v23, 1  ;;  %4203 = vmatmul.msk.f32.gmra.mxu1 %vm2569_vm10, %v2524_v23 }
 0x407   : > { %v2475_v15 = vadd.f32 %v2474_v62, %v2425_v33 }
 0x408   : > { %v2722_v49 = vsel %vm1502_vm5, %v2719_v5, %v2721_v44  ;;  %v2554_v13 = vsel %vm1074_vm3, %v2551_v30, %v2553_v0  ;;  %v2440_v5 = vadd.f32 %v2439_v39, %v5779_v26 }
 0x409   : > { %v2499_v36 = vmax.f32 %v2475_v15, 0.0  ;;  %4214 = vmatmul.msk.f32.gmra.mxu3 %vm2569_vm10, %v2722_v49  ;;  %4191 = vmatmul.msk.f32.gmra.mxu0 %vm2569_vm10, %v2554_v13 }
 0x40b   : > { %v2525_v10 = vrot.slane %v2499_v36, 7 }
 0x40d   : > { %v2526_v7 = vsel %vm2517_vm9, %v2523_v45, %v2525_v10  ;;  %v2442_v45 = vpop.f32.mrf.mxu3 }
 0x40e   : > { %v2477_v31 = vpop.f32.mrf.mxu2  ;;  %v2723_v8 = vrot.slane %v2526_v7, 2  ;;  %v2555_v54 = vrot.slane %v2526_v7, 1  ;;  %4204 = vmatmul.msk.f32.gmra.mxu1 %vm2569_vm10, %v2526_v7 }
 0x40f   : > { %v2478_v3 = vadd.f32 %v2477_v31, %v2428_v59 }
 0x410   : > { %v2724_v55 = vsel %vm1502_vm5, %v2721_v44, %v2723_v8  ;;  %v2556_v1 = vsel %vm1074_vm3, %v2553_v0, %v2555_v54  ;;  %v2443_v44 = vadd.f32 %v2442_v45, %v5779_v26 }
 0x411   : > { %v2500_v18 = vmax.f32 %v2478_v3, 0.0  ;;  %4215 = vmatmul.msk.f32.gmra.mxu3 %vm2569_vm10, %v2724_v55  ;;  %4192 = vmatmul.msk.f32.gmra.mxu0 %vm2569_vm10, %v2556_v1 }
 0x413   : > { %v2527_v42 = vrot.slane %v2500_v18, 7 }
 0x415   : > { %v2528_v2 = vsel %vm2517_vm9, %v2525_v10, %v2527_v42 }
 0x416   : > { %v2480_v11 = vpop.f32.mrf.mxu2  ;;  %v2725_v25 = vrot.slane %v2528_v2, 2  ;;  %v2557_v35 = vrot.slane %v2528_v2, 1  ;;  %4205 = vmatmul.msk.f32.gmra.mxu1 %vm2569_vm10, %v2528_v2 }
 0x417   : > { %v2481_v40 = vadd.f32 %v2480_v11, %v2431_v56 }
 0x418   : > { %v2726_v21 = vsel %vm1502_vm5, %v2723_v8, %v2725_v25  ;;  %v2558_v63 = vsel %vm1074_vm3, %v2555_v54, %v2557_v35 }
 0x419   : > { %v2501_v9 = vmax.f32 %v2481_v40, 0.0  ;;  %4216 = vmatmul.msk.f32.gmra.mxu3 %vm2569_vm10, %v2726_v21  ;;  %4193 = vmatmul.msk.f32.gmra.mxu0 %vm2569_vm10, %v2558_v63 }
 0x41b   : > { %v2529_v4 = vrot.slane %v2501_v9, 7 }
 0x41d   : > { %v2530_v43 = vsel %vm2517_vm9, %v2527_v42, %v2529_v4 }
 0x41e   : > { %v2483_v27 = vpop.f32.mrf.mxu2  ;;  %v2727_v22 = vrot.slane %v2530_v43, 2  ;;  %v2559_v50 = vrot.slane %v2530_v43, 1  ;;  %4206 = vmatmul.msk.f32.gmra.mxu1 %vm2569_vm10, %v2530_v43 }
 0x41f   : > { %v2484_v34 = vadd.f32 %v2483_v27, %v2434_v60 }
 0x420   : > { %v2728_v29 = vsel %vm1502_vm5, %v2725_v25, %v2727_v22  ;;  %v2560_v24 = vsel %vm1074_vm3, %v2557_v35, %v2559_v50 }
 0x421   : > { %v2502_v47 = vmax.f32 %v2484_v34, 0.0  ;;  %4217 = vmatmul.msk.f32.gmra.mxu3 %vm2569_vm10, %v2728_v29  ;;  %4194 = vmatmul.msk.f32.gmra.mxu0 %vm2569_vm10, %v2560_v24 }
 0x423   : > { %v2531_v32 = vrot.slane %v2502_v47, 7 }
 0x425   : > { %v2532_v61 = vsel %vm2517_vm9, %v2529_v4, %v2531_v32 }
 0x426   : > { %v2486_v14 = vpop.f32.mrf.mxu2  ;;  %v2729_v48 = vrot.slane %v2532_v61, 2  ;;  %v2561_v19 = vrot.slane %v2532_v61, 1  ;;  %4207 = vmatmul.msk.f32.gmra.mxu1 %vm2569_vm10, %v2532_v61 }
 0x427   : > { %v2487_v16 = vadd.f32 %v2486_v14, %v2437_v46 }
 0x428   : > { %v2730_v12 = vsel %vm1502_vm5, %v2727_v22, %v2729_v48  ;;  %v2562_v6 = vsel %vm1074_vm3, %v2559_v50, %v2561_v19 }
 0x429   : > { %v2503_v51 = vmax.f32 %v2487_v16, 0.0  ;;  %4218 = vmatmul.msk.f32.gmra.mxu3 %vm2569_vm10, %v2730_v12  ;;  %4195 = vmatmul.msk.f32.gmra.mxu0 %vm2569_vm10, %v2562_v6 }
 0x42b   : > { %v2533_v52 = vrot.slane %v2503_v51, 7 }
 0x42d   : > { %v2534_v30 = vsel %vm2517_vm9, %v2531_v32, %v2533_v52 }
 0x42e   : > { %v2489_v58 = vpop.f32.mrf.mxu2  ;;  %v2731_v20 = vrot.slane %v2534_v30, 2  ;;  %v2563_v38 = vrot.slane %v2534_v30, 1  ;;  %4208 = vmatmul.msk.f32.gmra.mxu1 %vm2569_vm10, %v2534_v30 }
 0x42f   : > { %v2490_v53 = vadd.f32 %v2489_v58, %v2440_v5 }
 0x430   : > { %v2732_v17 = vsel %vm1502_vm5, %v2729_v48, %v2731_v20  ;;  %v2564_v33 = vsel %vm1074_vm3, %v2561_v19, %v2563_v38 }
 0x431   : > { %v2504_v23 = vmax.f32 %v2490_v53, 0.0  ;;  %4219 = vmatmul.msk.f32.gmra.mxu3 %vm2569_vm10, %v2732_v17  ;;  %4196 = vmatmul.msk.f32.gmra.mxu0 %vm2569_vm10, %v2564_v33 }
 0x433   : > { %v2535_v62 = vrot.slane %v2504_v23, 7 }
 0x435   : > { %v2536_v0 = vsel %vm2517_vm9, %v2533_v52, %v2535_v62 }
 0x436   : > { %v2492_v15 = vpop.f32.mrf.mxu2  ;;  %v2733_v49 = vrot.slane %v2536_v0, 2  ;;  %v2565_v13 = vrot.slane %v2536_v0, 1  ;;  %4209 = vmatmul.msk.f32.gmra.mxu1 %vm2569_vm10, %v2536_v0 }
 0x437   : > { %v2493_v37 = vadd.f32 %v2492_v15, %v2443_v44 }
 0x438   : > { %v2734_v36 = vsel %vm1502_vm5, %v2731_v20, %v2733_v49  ;;  %v2566_v10 = vsel %vm1074_vm3, %v2563_v38, %v2565_v13 }
 0x439   : > { %v2505_v59 = vmax.f32 %v2493_v37, 0.0  ;;  %4220 = vmatmul.msk.f32.gmra.mxu3 %vm2569_vm10, %v2734_v36  ;;  %4197 = vmatmul.msk.f32.gmra.mxu0 %vm2569_vm10, %v2566_v10 }
 0x43b   : > { %v2537_v7 = vrot.slane %v2505_v59, 7  ;;  %v2820_v59 = vld [vmem:[%s6394_s5] sm:$0xff] }
 0x43d   : > { %v2538_v26 = vsel %vm2517_vm9, %v2535_v62, %v2537_v7  ;;  %v2821_v7 = vld [vmem:[%s6394_s5 + $0x8] sm:$0xff] }
 0x43e   : > { %v2542_v31 = vsel %vm1781_vm6, %v2538_v26, 0.0  ;;  %v2822_v26 = vld [vmem:[%s6394_s5 + $0x10] sm:$0xff] }
 0x43f   : > { %v2735_v8 = vrot.slane %v2542_v31, 2  ;;  %v2567_v54 = vrot.slane %v2542_v31, 1  ;;  %4210 = vmatmul.msk.f32.gmra.mxu1 %vm2569_vm10, %v2542_v31  ;;  %v2823_v31 = vld [vmem:[%s6394_s5 + $0x18] sm:$0xf] }
 0x441   : > { %v2736_v3 = vsel %vm1502_vm5, %v2733_v49, %v2735_v8  ;;  %v2568_v55 = vsel %vm1074_vm3, %v2565_v13, %v2567_v54 }
 0x442   : > { %4221 = vmatmul.msk.f32.gmra.mxu3 %vm2569_vm10, %v2736_v3  ;;  %4198 = vmatmul.msk.f32.gmra.mxu0 %vm2569_vm10, %v2568_v55  ;;  %v2890_v3 = vld [vmem:[%s6395_s6 + $0x8] sm:$0xff]  ;;  %v2889_v55 = vld [vmem:[%s6395_s6] sm:$0xff] }
 0x44a   : > { %4222 = vmatmul.msk.f32.gmra.mxu3 %vm2569_vm10, %v2735_v8  ;;  %4199 = vmatmul.msk.f32.gmra.mxu0 %vm2569_vm10, %v2567_v54  ;;  %v2892_v8 = vld [vmem:[%s6395_s6 + $0x18] sm:$0xff]  ;;  %v2891_v54 = vld [vmem:[%s6395_s6 + $0x10] sm:$0xff] }
 0x44b   : > { %2965 = vmatpush.msrb.mxu1 %v2892_v8  ;;  %4388 = vmatpush.msra.mxu3 %v2892_v8 }
 0x44d   : > { %2966 = vmatpush.msrb.mxu1 %v2891_v54  ;;  %4390 = vmatpush.msra.mxu3 %v2891_v54 }
 0x44f   : > { %2967 = vmatpush.msrb.mxu1 %v2890_v3  ;;  %4392 = vmatpush.msra.mxu3 %v2890_v3 }
 0x451   : > { %2968 = vmatpush.msrb.mxu1 %v2889_v55  ;;  %4394 = vmatpush.msra.mxu3 %v2889_v55 }
 0x46b   : > { %v2681_v1 = vpop.f32.mrf.mxu1 }
 0x473   : > { %v2684_v18 = vpop.f32.mrf.mxu1 }
 0x476   : > { %v2609_v41 = vpop.f32.mrf.mxu0 }
 0x477   : > { %v2682_v42 = vadd.f32 %v2681_v1, %v2609_v41  ;;  %v4231_v1 = vld [vmem:[%s6395_s6 + $0x38] sm:$0xff]  ;;  %v4229_v41 = vld [vmem:[%s6395_s6 + $0x28] sm:$0xff] }
 0x478   : > { %2928 = vmatpush.msrb.mxu0 %v4231_v1  ;;  %v4297_v1 = vld [vmem:[%s6396_s7 + $0x158] sm:$0xff] }
 0x479   : > { %3351 = vmatpush.msrb.mxu3 %v4297_v1 }
 0x47b   : > { %v2687_v56 = vpop.f32.mrf.mxu1 }
 0x47c   : > { %v2776_v2 = vpop.f32.mrf.mxu3 }
 0x47d   : > { %v2809_v11 = vadd.f32 %v2776_v2, %v2682_v42  ;;  %v4228_v42 = vld [vmem:[%s6395_s6 + $0x20] sm:$0xff]  ;;  %v4242_v2 = vld [vmem:[%s6395_s6 + $0x50] sm:$0xff] }
 0x47e   : > { %v2612_v25 = vpop.f32.mrf.mxu0 }
 0x47f   : > { %v2685_v35 = vadd.f32 %v2684_v18, %v2612_v25  ;;  %v4230_v18 = vld [vmem:[%s6395_s6 + $0x30] sm:$0xff]  ;;  %v4240_v25 = vld [vmem:[%s6395_s6 + $0x40] sm:$0xff] }
 0x480   : > { %2929 = vmatpush.msrb.mxu0 %v4230_v18  ;;  %v4291_v18 = vld [vmem:[%s6396_s7 + $0x130] sm:$0xff] }
 0x482   : > { %2930 = vmatpush.msrb.mxu0 %v4229_v41  ;;  %v4296_v41 = vld [vmem:[%s6396_s7 + $0x150] sm:$0xff] }
 0x483   : > { %v2690_v63 = vpop.f32.mrf.mxu1  ;;  %3352 = vmatpush.msrb.mxu3 %v4296_v41 }
 0x484   : > { %v2779_v40 = vpop.f32.mrf.mxu3  ;;  %2931 = vmatpush.msrb.mxu0 %v4228_v42  ;;  %v4254_v42 = vld [vmem:[%s6396_s7 + $0x40] sm:$0xff] }
 0x485   : > { %v2810_v21 = vadd.f32 %v2779_v40, %v2685_v35  ;;  %v2824_v35 = vperm.slane %v5776_v28, 2 }
 0x486   : > { %v2615_v9 = vpop.f32.mrf.mxu0 }
 0x487   : > { %v2688_v4 = vadd.f32 %v2687_v56, %v2615_v9  ;;  %v4243_v56 = vld [vmem:[%s6395_s6 + $0x58] sm:$0xff] }
 0x48b   : > { %v2693_v22 = vpop.f32.mrf.mxu1 }
 0x48c   : > { %v2782_v60 = vpop.f32.mrf.mxu3 }
 0x48d   : > { %v2811_v57 = vadd.f32 %v2782_v60, %v2688_v4 }
 0x48e   : > { %v2618_v43 = vpop.f32.mrf.mxu0 }
 0x48f   : > { %v2691_v27 = vadd.f32 %v2690_v63, %v2618_v43 }
 0x493   : > { %v2696_v24 = vpop.f32.mrf.mxu1 }
 0x494   : > { %v2785_v50 = vpop.f32.mrf.mxu3 }
 0x495   : > { %v2812_v34 = vadd.f32 %v2785_v50, %v2691_v27 }
 0x496   : > { %v2621_v29 = vpop.f32.mrf.mxu0 }
 0x497   : > { %v2694_v37 = vadd.f32 %v2693_v22, %v2621_v29 }
 0x49b   : > { %v2699_v46 = vpop.f32.mrf.mxu1 }
 0x49c   : > { %v2788_v47 = vpop.f32.mrf.mxu3 }
 0x49d   : > { %v2813_v10 = vadd.f32 %v2788_v47, %v2694_v37  ;;  %v4248_v37 = vld [vmem:[%s6396_s7 + $0x20] sm:$0xff] }
 0x49e   : > { %v2624_v32 = vpop.f32.mrf.mxu0 }
 0x49f   : > { %v2697_v49 = vadd.f32 %v2696_v24, %v2624_v32 }
 0x4a3   : > { %v2702_v39 = vpop.f32.mrf.mxu1 }
 0x4a4   : > { %v2791_v61 = vpop.f32.mrf.mxu3 }
 0x4a5   : > { %v2814_v36 = vadd.f32 %v2791_v61, %v2697_v49  ;;  %v4276_v49 = vld [vmem:[%s6396_s7 + $0xd0] sm:$0xff] }
 0x4a6   : > { %v2627_v14 = vpop.f32.mrf.mxu0 }
 0x4a7   : > { %v2700_v0 = vadd.f32 %v2699_v46, %v2627_v14 }
 0x4ab   : > { %v2705_v6 = vpop.f32.mrf.mxu1 }
 0x4ac   : > { %v2794_v48 = vpop.f32.mrf.mxu3 }
 0x4ad   : > { %v2815_v13 = vadd.f32 %v2794_v48, %v2700_v0  ;;  %v4250_v0 = vld [vmem:[%s6396_s7 + $0x30] sm:$0xff] }
 0x4ae   : > { %v2630_v19 = vpop.f32.mrf.mxu0 }
 0x4af   : > { %v2703_v62 = vadd.f32 %v2702_v39, %v2630_v19 }
 0x4b3   : > { %v2708_v5 = vpop.f32.mrf.mxu1 }
 0x4b4   : > { %v2797_v16 = vpop.f32.mrf.mxu3 }
 0x4b5   : > { %v2816_v15 = vadd.f32 %v2797_v16, %v2703_v62  ;;  %v3046_v62 = vld [vmem:[%s6396_s7 + $0x10] sm:$0xff] }
 0x4b6   : > { %v2633_v12 = vpop.f32.mrf.mxu0 }
 0x4b7   : > { %v2706_v33 = vadd.f32 %v2705_v6, %v2633_v12 }
 0x4bc   : > { %v2800_v51 = vpop.f32.mrf.mxu3  ;;  %v2711_v20 = vpop.f32.mrf.mxu1 }
 0x4bd   : > { %v2817_v44 = vadd.f32 %v2800_v51, %v2706_v33  ;;  %v3047_v33 = vld [vmem:[%s6396_s7 + $0x18] sm:$0xff] }
 0x4be   : > { %3091 = vmatpush.msra.mxu1 %v3047_v33 }
 0x4bf   : > { %v2636_v52 = vpop.f32.mrf.mxu0 }
 0x4c0   : > { %v2709_v17 = vadd.f32 %v2708_v5, %v2636_v52  ;;  %3092 = vmatpush.msra.mxu1 %v3046_v62  ;;  %v4286_v62 = vld [vmem:[%s6396_s7 + $0x110] sm:$0xff] }
 0x4c5   : > { %v2803_v30 = vpop.f32.mrf.mxu3 }
 0x4c6   : > { %v2818_v23 = vadd.f32 %v2803_v30, %v2709_v17 }
 0x4c7   : > { %v2639_v58 = vpop.f32.mrf.mxu0 }
 0x4c8   : > { %v2712_v38 = vadd.f32 %v2711_v20, %v2639_v58 }
 0x4cd   : > { %v2806_v53 = vpop.f32.mrf.mxu3 }
 0x4ce   : > { %v2819_v45 = vadd.f32 %v2806_v53, %v2712_v38 }
 0x4d0   : > { %4223 = vmatpush.msk.msrb.mxu2 %vm1065_vm7, %v2819_v45 }
 0x4d2   : > { %2847 = vmatpush.msrb.mxu2 %v2818_v23  ;;  %v4251_v23 = vld [vmem:[%s6396_s7 + $0x38] sm:$0xff] }
 0x4d3   : > { %3069 = vmatpush.msra.mxu0 %v4251_v23  ;;  %v4282_v23 = vld [vmem:[%s6396_s7 + $0xf8] sm:$0xff] }
 0x4d4   : > { %2848 = vmatpush.msrb.mxu2 %v2817_v44  ;;  %v4277_v44 = vld [vmem:[%s6396_s7 + $0xd8] sm:$0xff] }
 0x4d5   : > { %3070 = vmatpush.msra.mxu0 %v4250_v0 }
 0x4d6   : > { %2849 = vmatpush.msrb.mxu2 %v2816_v15  ;;  %v3045_v15 = vld [vmem:[%s6396_s7 + $0x8] sm:$0xff] }
 0x4d7   : > { %3093 = vmatpush.msra.mxu1 %v3045_v15 }
 0x4d8   : > { %2850 = vmatpush.msrb.mxu2 %v2815_v13  ;;  %v4249_v13 = vld [vmem:[%s6396_s7 + $0x28] sm:$0xff] }
 0x4d9   : > { %3071 = vmatpush.msra.mxu0 %v4249_v13  ;;  %v4281_v13 = vld [vmem:[%s6396_s7 + $0xf0] sm:$0xff] }
 0x4da   : > { %2851 = vmatpush.msrb.mxu2 %v2814_v36  ;;  %v3044_v36 = vld [vmem:[%s6396_s7] sm:$0xff] }
 0x4db   : > { %3094 = vmatpush.msra.mxu1 %v3044_v36  ;;  %3072 = vmatpush.msra.mxu0 %v4248_v37  ;;  %v4285_v37 = vld [vmem:[%s6396_s7 + $0x108] sm:$0xff] }
 0x4dc   : > { %2852 = vmatpush.msrb.mxu2 %v2813_v10  ;;  %v4275_v10 = vld [vmem:[%s6396_s7 + $0xc8] sm:$0xff] }
 0x4de   : > { %2853 = vmatpush.msrb.mxu2 %v2812_v34 }
 0x4e0   : > { %2854 = vmatpush.msrb.mxu2 %v2811_v57 }
 0x4e2   : > { %2855 = vmatpush.msrb.mxu2 %v2810_v21 }
 0x4e4   : > { %2856 = vmatpush.msrb.mxu2 %v2809_v11  ;;  %v4241_v11 = vld [vmem:[%s6395_s6 + $0x48] sm:$0xff] }
 0x4e5   : > { %4224 = vmatmul.msk.f32.vlgmr.msrb.gmra.mxu2 %vm2825_vm11, %v2820_v59  ;;  %v4262_v59 = vld [vmem:[%s6396_s7 + $0x78] sm:$0xff] }
 0x4e6   : > { %4387 = vmatpush.msra.mxu2 %v2892_v8  ;;  %v4261_v8 = vld [vmem:[%s6396_s7 + $0x70] sm:$0xff] }
 0x4e8   : > { %4389 = vmatpush.msra.mxu2 %v2891_v54  ;;  %v4260_v54 = vld [vmem:[%s6396_s7 + $0x68] sm:$0xff] }
 0x4ea   : > { %4391 = vmatpush.msra.mxu2 %v2890_v3  ;;  %v4255_v3 = vld [vmem:[%s6396_s7 + $0x48] sm:$0xff] }
 0x4ec   : > { %4393 = vmatpush.msra.mxu2 %v2889_v55  ;;  %v4292_v55 = vld [vmem:[%s6396_s7 + $0x138] sm:$0xff] }
 0x4ed   : > { %4225 = vmatmul.msk.f32.gmra.mxu2 %vm2825_vm11, %v2821_v7  ;;  %v4274_v7 = vld [vmem:[%s6396_s7 + $0xc0] sm:$0xff] }
 0x4ee   : > { %3014 = vmatpush.msrb.mxu2 %v4243_v56  ;;  %v4259_v56 = vld [vmem:[%s6396_s7 + $0x60] sm:$0xff] }
 0x4f0   : > { %3015 = vmatpush.msrb.mxu2 %v4242_v2  ;;  %v4290_v2 = vld [vmem:[%s6396_s7 + $0x128] sm:$0xff] }
 0x4f2   : > { %3016 = vmatpush.msrb.mxu2 %v4241_v11  ;;  %v4295_v11 = vld [vmem:[%s6396_s7 + $0x148] sm:$0xff] }
 0x4f3   : > { %3353 = vmatpush.msrb.mxu3 %v4295_v11  ;;  %v4301_v11 = vld [vmem:[%s6396_s7 + $0x170] sm:$0xff] }
 0x4f4   : > { %3017 = vmatpush.msrb.mxu2 %v4240_v25 }
 0x4f5   : > { %4226 = vmatmul.msk.f32.gmra.mxu2 %vm2825_vm11, %v2822_v26  ;;  %v4257_v26 = vld [vmem:[%s6396_s7 + $0x58] sm:$0xff] }
 0x4fd   : > { %4227 = vmatmul.msk.f32.gmra.mxu2 %vm2825_vm11, %v2823_v31  ;;  %v4256_v31 = vld [vmem:[%s6396_s7 + $0x50] sm:$0xff] }
 0x568   : > { %v2858_v40 = vpop.f32.mrf.mxu2 }
 0x569   : > { %v2859_v21 = vadd.f32 %v2858_v40, %v2824_v35  ;;  %v4294_v40 = vld [vmem:[%s6396_s7 + $0x140] sm:$0xff] }
 0x56a   : > { %3354 = vmatpush.msrb.mxu3 %v4294_v40  ;;  %v4336_v40 = vld [vmem:[%s6396_s7 + $0x250] sm:$0xff] }
 0x56b   : > { %v2870_v63 = vmax.f32 %v2859_v21, 0.0  ;;  %v4317_v21 = vld [vmem:[%s6396_s7 + $0x1d8] sm:$0xff] }
 0x56d   : > { %v2878_v9 = vrot.slane %v2870_v63, 7  ;;  %v4316_v63 = vld [vmem:[%s6396_s7 + $0x1d0] sm:$0xff] }
 0x56f   : > { %v2887_v4 = vsel %vm2517_vm9, 0.0, %v2878_v9 }
 0x570   : > { %v2861_v60 = vpop.f32.mrf.mxu2  ;;  %4236 = vmatmul.msk.f32.vlgmr.msrb.gmra.mxu1 %vm2907_vm12, %v2887_v4  ;;  %v2900_v50 = vrot.slane %v2887_v4, 1  ;;  %v2987_v6 = vrot.slane %v2887_v4, 2 }
 0x571   : > { %v2862_v57 = vadd.f32 %v2861_v60, %v2824_v35  ;;  %3148 = vmatpush.msrb.mxu1 %v4262_v59  ;;  %v4337_v59 = vld [vmem:[%s6396_s7 + $0x258] sm:$0xff] }
 0x573   : > { %v2871_v43 = vmax.f32 %v2862_v57, 0.0  ;;  %3149 = vmatpush.msrb.mxu1 %v4261_v8  ;;  %v4314_v57 = vld [vmem:[%s6396_s7 + $0x1c0] sm:$0xff]  ;;  %v4331_v8 = vld [vmem:[%s6396_s7 + $0x230] sm:$0xff] }
 0x575   : > { %v2879_v27 = vrot.slane %v2871_v43, 7  ;;  %3150 = vmatpush.msrb.mxu1 %v4260_v54 }
 0x577   : > { %v2880_v22 = vsel %vm2517_vm9, %v2878_v9, %v2879_v27  ;;  %3151 = vmatpush.msrb.mxu1 %v4259_v56  ;;  %v4315_v9 = vld [vmem:[%s6396_s7 + $0x1c8] sm:$0xff] }
 0x578   : > { %v2901_v34 = vrot.slane %v2880_v22, 1  ;;  %v2864_v29 = vpop.f32.mrf.mxu2  ;;  %4237 = vmatmul.msk.f32.vlgmr.msra.gmra.mxu2 %vm2907_vm12, %v2880_v22  ;;  %v2988_v16 = vrot.slane %v2880_v22, 2  ;;  %v6027_v22 = vperm.slane %v5776_v28, 3  ;;  %v4267_v28 = vld [vmem:[%s6396_s7 + $0x98] sm:$0xff] }
 0x579   : > { %v2865_v24 = vadd.f32 %v2864_v29, %v2824_v35  ;;  %3235 = vmatpush.msra.mxu2 %v4277_v44 }
 0x57a   : > { %v2902_v47 = vsel %vm1074_vm3, %v2900_v50, %v2901_v34  ;;  %v2989_v52 = vsel %vm1502_vm5, %v2987_v6, %v2988_v16  ;;  %v4270_v6 = vld [vmem:[%s6396_s7 + $0xa8] sm:$0xff] }
 0x57b   : > { %v2872_v32 = vmax.f32 %v2865_v24, 0.0  ;;  %4232 = vmatmul.msk.f32.vlgmr.msrb.gmra.mxu0 %vm2907_vm12, %v2902_v47  ;;  %3236 = vmatpush.msra.mxu2 %v4276_v49  ;;  %v4309_v49 = vld [vmem:[%s6396_s7 + $0x1a0] sm:$0xff] }
 0x57c   : > { %3119 = vmatpush.msrb.mxu0 %v4257_v26  ;;  %v4284_v26 = vld [vmem:[%s6396_s7 + $0x100] sm:$0xff] }
 0x57d   : > { %v2881_v46 = vrot.slane %v2872_v32, 7  ;;  %3237 = vmatpush.msra.mxu2 %v4275_v10  ;;  %v4272_v32 = vld [vmem:[%s6396_s7 + $0xb8] sm:$0xff] }
 0x57e   : > { %3120 = vmatpush.msrb.mxu0 %v4256_v31  ;;  %v4332_v10 = vld [vmem:[%s6396_s7 + $0x238] sm:$0xff] }
 0x57f   : > { %v2882_v61 = vsel %vm2517_vm9, %v2879_v27, %v2881_v46  ;;  %3238 = vmatpush.msra.mxu2 %v4274_v7  ;;  %v4280_v7 = vld [vmem:[%s6396_s7 + $0xe8] sm:$0xff] }
 0x580   : > { %v2903_v14 = vrot.slane %v2882_v61, 1  ;;  %4238 = vmatmul.msk.f32.gmra.mxu2 %vm2907_vm12, %v2882_v61  ;;  %v2867_v48 = vpop.f32.mrf.mxu2  ;;  %v2990_v20 = vrot.slane %v2882_v61, 2  ;;  %3121 = vmatpush.msrb.mxu0 %v4255_v3  ;;  %v4279_v3 = vld [vmem:[%s6396_s7 + $0xe0] sm:$0xff] }
 0x581   : > { %v2868_v39 = vadd.f32 %v2867_v48, %v2824_v35  ;;  %v4289_v35 = vld [vmem:[%s6396_s7 + $0x120] sm:$0xff] }
 0x582   : > { %v2904_v19 = vsel %vm1074_vm3, %v2901_v34, %v2903_v14  ;;  %v2991_v53 = vsel %vm1502_vm5, %v2988_v16, %v2990_v20  ;;  %3122 = vmatpush.msrb.mxu0 %v4254_v42  ;;  %v4266_v16 = vld [vmem:[%s6396_s7 + $0x90] sm:$0xff] }
 0x583   : > { %v2873_v12 = vmax.f32 %v2868_v39, 0.0  ;;  %4233 = vmatmul.msk.f32.gmra.mxu0 %vm2907_vm12, %v2904_v19  ;;  %v4312_v19 = vld [vmem:[%s6396_s7 + $0x1b8] sm:$0xff]  ;;  %v4306_v42 = vld [vmem:[%s6396_s7 + $0x190] sm:$0xff] }
 0x585   : > { %v2883_v51 = vrot.slane %v2873_v12, 7 }
 0x587   : > { %v2884_v5 = vsel %vm2517_vm9, %v2881_v46, %v2883_v51  ;;  %v4311_v51 = vld [vmem:[%s6396_s7 + $0x1b0] sm:$0xff] }
 0x588   : > { %4244 = vmatmul.msk.f32.vlgmr.msrb.gmra.mxu2 %vm2907_vm12, %v2989_v52  ;;  %v2888_v30 = vsel %vm1781_vm6, %v2884_v5, 0.0  ;;  %v4265_v5 = vld [vmem:[%s6396_s7 + $0x88] sm:$0xff] }
 0x589   : > { %v2905_v58 = vrot.slane %v2888_v30, 1  ;;  %4239 = vmatmul.msk.f32.vlgmr.msra.gmra.mxu3 %vm2907_vm12, %v2888_v30  ;;  %v2992_v17 = vrot.slane %v2888_v30, 2  ;;  %3322 = vmatpush.msrb.mxu2 %v4292_v55  ;;  %v4269_v30 = vld [vmem:[%s6396_s7 + $0xa0] sm:$0xff]  ;;  %v4307_v55 = vld [vmem:[%s6396_s7 + $0x198] sm:$0xff] }
 0x58a   : > { %3467 = vmatpush.msra.mxu3 %v4317_v21  ;;  %v4329_v21 = vld [vmem:[%s6396_s7 + $0x220] sm:$0xff] }
 0x58b   : > { %v2906_v38 = vsel %vm1074_vm3, %v2903_v14, %v2905_v58  ;;  %v2993_v45 = vsel %vm1502_vm5, %v2990_v20, %v2992_v17  ;;  %3323 = vmatpush.msrb.mxu2 %v4291_v18  ;;  %v4271_v14 = vld [vmem:[%s6396_s7 + $0xb0] sm:$0xff]  ;;  %v4302_v18 = vld [vmem:[%s6396_s7 + $0x178] sm:$0xff] }
 0x58c   : > { %4234 = vmatmul.msk.f32.gmra.mxu0 %vm2907_vm12, %v2906_v38  ;;  %3468 = vmatpush.msra.mxu3 %v4316_v63 }
 0x58d   : > { %3324 = vmatpush.msrb.mxu2 %v4290_v2  ;;  %v4330_v2 = vld [vmem:[%s6396_s7 + $0x228] sm:$0xff] }
 0x58e   : > { %3469 = vmatpush.msra.mxu3 %v4315_v9  ;;  %v4300_v9 = vld [vmem:[%s6396_s7 + $0x168] sm:$0xff] }
 0x58f   : > { %3325 = vmatpush.msrb.mxu2 %v4289_v35 }
 0x590   : > { %4245 = vmatmul.msk.f32.gmra.mxu2 %vm2907_vm12, %v2991_v53  ;;  %3470 = vmatpush.msra.mxu3 %v4314_v57  ;;  %v4264_v53 = vld [vmem:[%s6396_s7 + $0x80] sm:$0xff] }
 0x591   : > { %v4299_v57 = vld [vmem:[%s6396_s7 + $0x160] sm:$0xff] }
 0x594   : > { %4235 = vmatmul.msk.f32.gmra.mxu0 %vm2907_vm12, %v2905_v58  ;;  %v4310_v58 = vld [vmem:[%s6396_s7 + $0x1a8] sm:$0xff] }
 0x598   : > { %4246 = vmatmul.msk.f32.gmra.mxu2 %vm2907_vm12, %v2993_v45 }
 0x5a0   : > { %4247 = vmatmul.msk.f32.gmra.mxu2 %vm2907_vm12, %v2992_v17  ;;  %v4287_v17 = vld [vmem:[%s6396_s7 + $0x118] sm:$0xff] }
 0x5ed   : > { %v2970_v43 = vpop.f32.mrf.mxu1 }
 0x5f8   : > { %v2933_v60 = vpop.f32.mrf.mxu0 }
 0x5f9   : > { %v2971_v27 = vadd.f32 %v2970_v43, %v2933_v60  ;;  %v4335_v60 = vld [vmem:[%s6396_s7 + $0x248] sm:$0xff]  ;;  %v4327_v43 = vld [vmem:[%s6396_s7 + $0x218] sm:$0xff] }
 0x5fb   : > { %v2973_v25 = vpop.f32.mrf.mxu2 }
 0x600   : > { %v2936_v24 = vpop.f32.mrf.mxu0 }
 0x601   : > { %v2974_v61 = vadd.f32 %v2973_v25, %v2936_v24  ;;  %v4305_v25 = vld [vmem:[%s6396_s7 + $0x188] sm:$0xff]  ;;  %v4334_v24 = vld [vmem:[%s6396_s7 + $0x240] sm:$0xff] }
 0x603   : > { %v2976_v4 = vpop.f32.mrf.mxu2 }
 0x609   : > { %v2939_v45 = vpop.f32.mrf.mxu0 }
 0x60a   : > { %v2977_v36 = vadd.f32 %v2976_v4, %v2939_v45  ;;  %v4304_v4 = vld [vmem:[%s6396_s7 + $0x180] sm:$0xff] }
 0x60b   : > { %v3019_v50 = vpop.f32.mrf.mxu2  ;;  %v4349_v45 = vld [vmem:[%s6396_s7 + $0x2a0] sm:$0xff] }
 0x60c   : > { %v3031_v34 = vadd.f32 %v3019_v50, %v2971_v27  ;;  %v4322_v50 = vld [vmem:[%s6396_s7 + $0x1f8] sm:$0xff] }
 0x60e   : > { %v3036_v29 = vadd.f32 %v6027_v22, %v3031_v34  ;;  %v4326_v34 = vld [vmem:[%s6396_s7 + $0x210] sm:$0xff] }
 0x610   : > { %v6030_v47 = vmax.f32 %v3036_v29, 0.0 }
 0x612   : > { %v3054_v46 = vrot.slane %v6030_v47, 1  ;;  %4253 = vmatmul.msk.f32.vlgmr.msra.gmra.mxu1 %vm2907_vm12, %v6030_v47  ;;  %v3220_v48 = vrot.slane %v6030_v47, 6  ;;  %v3133_v20 = vrot.slane %v6030_v47, 3  ;;  %v3104_v33 = vrot.slane %v6030_v47, 2 }
 0x613   : > { %3206 = vmatpush.msra.mxu1 %v4272_v32  ;;  %v3022_v39 = vpop.f32.mrf.mxu2  ;;  %v3191_v54 = vrot.slane %v6030_v47, 5  ;;  %v3162_v1 = vrot.slane %v6030_v47, 4  ;;  %v3249_v27 = vrot.slane %v6030_v47, 7  ;;  %v4352_v47 = vld [vmem:[%s6396_s7 + $0x2b8] sm:$0xff]  ;;  %v4321_v32 = vld [vmem:[%s6396_s7 + $0x1f0] sm:$0xff] }
 0x614   : > { %4252 = vmatmul.msk.f32.vlgmr.msra.gmra.mxu0 %vm2907_vm12, %v3054_v46  ;;  %v3032_v12 = vadd.f32 %v3022_v39, %v2974_v61  ;;  %4278 = vmatmul.msk.f32.vlgmr.msra.gmra.mxu2 %vm2907_vm12, %v3220_v48  ;;  %v4325_v46 = vld [vmem:[%s6396_s7 + $0x208] sm:$0xff]  ;;  %v4324_v48 = vld [vmem:[%s6396_s7 + $0x200] sm:$0xff]  ;;  %v4357_v39 = vld [vmem:[%s6396_s7 + $0x2d8] sm:$0xff] }
 0x615   : > { %3177 = vmatpush.msra.mxu0 %v4267_v28  ;;  %3207 = vmatpush.msra.mxu1 %v4271_v14  ;;  %v4351_v28 = vld [vmem:[%s6396_s7 + $0x2b0] sm:$0xff]  ;;  %v4320_v61 = vld [vmem:[%s6396_s7 + $0x1e8] sm:$0xff] }
 0x616   : > { %v3037_v52 = vadd.f32 %v6027_v22, %v3032_v12  ;;  %3438 = vmatpush.msra.mxu2 %v4312_v19  ;;  %v2942_v12 = vpop.f32.mrf.mxu0 }
 0x617   : > { %3178 = vmatpush.msra.mxu0 %v4266_v16  ;;  %3208 = vmatpush.msra.mxu1 %v4270_v6  ;;  %v4319_v16 = vld [vmem:[%s6396_s7 + $0x1e0] sm:$0xff]  ;;  %v4347_v6 = vld [vmem:[%s6396_s7 + $0x298] sm:$0xff] }
 0x618   : > { %v6070_v38 = vmax.f32 %v3037_v52, 0.0  ;;  %3439 = vmatpush.msra.mxu2 %v4311_v51  ;;  %v4350_v51 = vld [vmem:[%s6396_s7 + $0x2a8] sm:$0xff] }
 0x619   : > { %3179 = vmatpush.msra.mxu0 %v4265_v5  ;;  %3209 = vmatpush.msra.mxu1 %v4269_v30  ;;  %v4342_v5 = vld [vmem:[%s6396_s7 + $0x278] sm:$0xff]  ;;  %v2979_v30 = vpop.f32.mrf.mxu3 }
 0x61a   : > { %4263 = vmatmul.msk.f32.vlgmr.msrb.gmra.mxu1 %vm2907_vm12, %v3133_v20  ;;  %v3307_v44 = vrot.slane %v6070_v38, 1  ;;  %v3336_v0 = vrot.slane %v6070_v38, 2  ;;  %3440 = vmatpush.msra.mxu2 %v4310_v58  ;;  %v3423_v56 = vrot.slane %v6070_v38, 5  ;;  %v3452_v35 = vrot.slane %v6070_v38, 6  ;;  %v4356_v58 = vld [vmem:[%s6396_s7 + $0x2d0] sm:$0xff] }
 0x61b   : > { %3180 = vmatpush.msra.mxu0 %v4264_v53  ;;  %3293 = vmatpush.msrb.mxu1 %v4287_v17  ;;  %v3025_v15 = vpop.f32.mrf.mxu2  ;;  %v3394_v19 = vrot.slane %v6070_v38, 4  ;;  %v3365_v52 = vrot.slane %v6070_v38, 3  ;;  %v2980_v53 = vadd.f32 %v2979_v30, %v2942_v12  ;;  %v4346_v17 = vld [vmem:[%s6396_s7 + $0x290] sm:$0xff]  ;;  %v3867_v30 = vld [vmem:[%s6397_s8 + $0x48] sm:$0xff] }
 0x61c   : > { %4258 = vmatmul.msk.f32.vlgmr.msrb.gmra.mxu0 %vm2907_vm12, %v3104_v33  ;;  %4293 = vmatmul.msk.f32.vlgmr.msrb.gmra.mxu2 %vm2907_vm12, %v3307_v44  ;;  %v3033_v31 = vadd.f32 %v3025_v15, %v2977_v36  ;;  %v4341_v33 = vld [vmem:[%s6396_s7 + $0x270] sm:$0xff]  ;;  %v4345_v44 = vld [vmem:[%s6396_s7 + $0x288] sm:$0xff] }
 0x61d   : > { %3264 = vmatpush.msrb.mxu0 %v4282_v23  ;;  %3294 = vmatpush.msrb.mxu1 %v4286_v62  ;;  %v4355_v23 = vld [vmem:[%s6396_s7 + $0x2c8] sm:$0xff] }
 0x61e   : > { %4298 = vmatmul.msk.f32.vlgmr.msrb.gmra.mxu3 %vm2907_vm12, %v3336_v0  ;;  %3441 = vmatpush.msra.mxu2 %v4309_v49  ;;  %v3038_v41 = vadd.f32 %v6027_v22, %v3033_v31  ;;  %v4340_v0 = vld [vmem:[%s6396_s7 + $0x268] sm:$0xff]  ;;  %v4354_v49 = vld [vmem:[%s6396_s7 + $0x2c0] sm:$0xff]  ;;  %v4377_v31 = vld [vmem:[%s6396_s7 + $0x358] sm:$0xff] }
 0x61f   : > { %3265 = vmatpush.msrb.mxu0 %v4281_v13  ;;  %3295 = vmatpush.msrb.mxu1 %v4285_v37  ;;  %v4372_v13 = vld [vmem:[%s6396_s7 + $0x338] sm:$0xff]  ;;  %v4339_v37 = vld [vmem:[%s6396_s7 + $0x260] sm:$0xff] }
 0x620   : > { %3554 = vmatpush.msrb.mxu2 %v4332_v10  ;;  %3583 = vmatpush.msrb.mxu3 %v4337_v59  ;;  %v6150_v63 = vmax.f32 %v3038_v41, 0.0  ;;  %v4344_v59 = vld [vmem:[%s6396_s7 + $0x280] sm:$0xff] }
 0x621   : > { %3266 = vmatpush.msrb.mxu0 %v4280_v7  ;;  %3296 = vmatpush.msrb.mxu1 %v4284_v26  ;;  %v3481_v7 = vrot.slane %v6070_v38, 7  ;;  %v4362_v26 = vld [vmem:[%s6396_s7 + $0x2f8] sm:$0xff]  ;;  %v4369_v41 = vld [vmem:[%s6396_s7 + $0x320] sm:$0xff] }
 0x622   : > { %4273 = vmatmul.msk.f32.vlgmr.msra.gmra.mxu1 %vm2907_vm12, %v3191_v54  ;;  %3555 = vmatpush.msrb.mxu2 %v4331_v8  ;;  %v3539_v29 = vrot.slane %v6150_v63, 1  ;;  %v3568_v14 = vrot.slane %v6150_v63, 2  ;;  %v3655_v15 = vrot.slane %v6150_v63, 5  ;;  %v3684_v10 = vrot.slane %v6150_v63, 6  ;;  %v4361_v8 = vld [vmem:[%s6396_s7 + $0x2f0] sm:$0xff]  ;;  %v4370_v54 = vld [vmem:[%s6396_s7 + $0x328] sm:$0xff] }
 0x623   : > { %3267 = vmatpush.msrb.mxu0 %v4279_v3  ;;  %3409 = vmatpush.msra.mxu1 %v4307_v55  ;;  %v3028_v20 = vpop.f32.mrf.mxu2  ;;  %v4376_v55 = vld [vmem:[%s6396_s7 + $0x350] sm:$0xff] }
 0x624   : > { %4268 = vmatmul.msk.f32.vlgmr.msra.gmra.mxu0 %vm2907_vm12, %v3162_v1  ;;  %4313 = vmatmul.msk.f32.vlgmr.msra.gmra.mxu2 %vm2907_vm12, %v3423_v56  ;;  %v3034_v62 = vadd.f32 %v3028_v20, %v2980_v53  ;;  %v4366_v1 = vld [vmem:[%s6396_s7 + $0x310] sm:$0xff]  ;;  %v3626_v56 = vrot.slane %v6150_v63, 4 }
 0x625   : > { %3380 = vmatpush.msra.mxu0 %v4302_v18  ;;  %3410 = vmatpush.msra.mxu1 %v4306_v42  ;;  %v4360_v18 = vld [vmem:[%s6396_s7 + $0x2e8] sm:$0xff] }
 0x626   : > { %4318 = vmatmul.msk.f32.vlgmr.msra.gmra.mxu3 %vm2907_vm12, %v3452_v35  ;;  %3556 = vmatpush.msrb.mxu2 %v4330_v2  ;;  %v3039_v36 = vadd.f32 %v6027_v22, %v3034_v62  ;;  %v4371_v22 = vld [vmem:[%s6396_s7 + $0x330] sm:$0xff]  ;;  %v4375_v42 = vld [vmem:[%s6396_s7 + $0x348] sm:$0xff]  ;;  %v4359_v2 = vld [vmem:[%s6396_s7 + $0x2e0] sm:$0xff]  ;;  %v3597_v35 = vrot.slane %v6150_v63, 3 }
 0x627   : > { %3381 = vmatpush.msra.mxu0 %v4301_v11  ;;  %3411 = vmatpush.msra.mxu1 %v4305_v25  ;;  %v4365_v25 = vld [vmem:[%s6396_s7 + $0x308] sm:$0xff] }
 0x628   : > { %3584 = vmatpush.msrb.mxu3 %v4336_v40  ;;  %3557 = vmatpush.msrb.mxu2 %v4329_v21  ;;  %v3043_v3 = vmax.f32 %v3039_v36, 0.0  ;;  %v4374_v40 = vld [vmem:[%s6396_s7 + $0x340] sm:$0xff]  ;;  %v4382_v21 = vld [vmem:[%s6396_s7 + $0x378] sm:$0xff] }
 0x629   : > { %3382 = vmatpush.msra.mxu0 %v4300_v9  ;;  %3412 = vmatpush.msra.mxu1 %v4304_v4  ;;  %v4364_v9 = vld [vmem:[%s6396_s7 + $0x300] sm:$0xff] }
 0x62a   : > { %4288 = vmatmul.msk.f32.vlgmr.msrb.gmra.mxu1 %vm2907_vm12, %v6070_v38  ;;  %3585 = vmatpush.msrb.mxu3 %v4335_v60  ;;  %v4367_v38 = vld [vmem:[%s6396_s7 + $0x318] sm:$0xff]  ;;  %v3771_v11 = vrot.slane %v3043_v3, 1  ;;  %v3800_v4 = vrot.slane %v3043_v3, 2  ;;  %v4381_v60 = vld [vmem:[%s6396_s7 + $0x370] sm:$0xff]  ;;  %v3862_v36 = vld [vmem:[%s6397_s8 + $0x20] sm:$0xff] }
 0x62b   : > { %3383 = vmatpush.msra.mxu0 %v4299_v57  ;;  %3525 = vmatpush.msrb.mxu1 %v4327_v43  ;;  %v4380_v57 = vld [vmem:[%s6396_s7 + $0x368] sm:$0xff]  ;;  %v4379_v43 = vld [vmem:[%s6396_s7 + $0x360] sm:$0xff] }
 0x62c   : > { %4283 = vmatmul.msk.f32.vlgmr.msrb.gmra.mxu0 %vm2907_vm12, %v3249_v27  ;;  %4333 = vmatmul.msk.f32.vlgmr.msrb.gmra.mxu2 %vm2907_vm12, %v3539_v29  ;;  %v3713_v27 = vrot.slane %v6150_v63, 7 }
 0x62d   : > { %3496 = vmatpush.msrb.mxu0 %v4322_v50  ;;  %3526 = vmatpush.msrb.mxu1 %v4326_v34  ;;  %v3829_v50 = vrot.slane %v3043_v3, 3 }
 0x62e   : > { %3586 = vmatpush.msrb.mxu3 %v4334_v24  ;;  %3670 = vmatpush.msra.mxu2 %v4352_v47 }
 0x62f   : > { %3497 = vmatpush.msrb.mxu0 %v4321_v32  ;;  %3527 = vmatpush.msrb.mxu1 %v4325_v46  ;;  %v3873_v46 = vld [vmem:[%s6397_s8 + $0x78] sm:$0xff] }
 0x630   : > { %4338 = vmatmul.msk.f32.vlgmr.msrb.gmra.mxu3 %vm2907_vm12, %v3568_v14  ;;  %3671 = vmatpush.msra.mxu2 %v4351_v28  ;;  %v3871_v14 = vld [vmem:[%s6397_s8 + $0x68] sm:$0xff] }
 0x631   : > { %3498 = vmatpush.msrb.mxu0 %v4320_v61  ;;  %3528 = vmatpush.msrb.mxu1 %v4324_v48  ;;  %v3872_v61 = vld [vmem:[%s6397_s8 + $0x70] sm:$0xff] }
 0x632   : > { %4308 = vmatmul.msk.f32.vlgmr.msra.gmra.mxu1 %vm2907_vm12, %v3394_v19  ;;  %3699 = vmatpush.msra.mxu3 %v4357_v39  ;;  %v3870_v19 = vld [vmem:[%s6397_s8 + $0x60] sm:$0xff] }
 0x633   : > { %3499 = vmatpush.msrb.mxu0 %v4319_v16  ;;  %3641 = vmatpush.msra.mxu1 %v4347_v6  ;;  %v3869_v6 = vld [vmem:[%s6397_s8 + $0x58] sm:$0xff] }
 0x634   : > { %4303 = vmatmul.msk.f32.vlgmr.msra.gmra.mxu0 %vm2907_vm12, %v3365_v52  ;;  %3672 = vmatpush.msra.mxu2 %v4350_v51  ;;  %v3868_v52 = vld [vmem:[%s6397_s8 + $0x50] sm:$0xff] }
 0x635   : > { %3612 = vmatpush.msra.mxu0 %v4342_v5  ;;  %3700 = vmatpush.msra.mxu3 %v4356_v58 }
 0x636   : > { %3642 = vmatpush.msra.mxu1 %v4346_v17  ;;  %3673 = vmatpush.msra.mxu2 %v4349_v45  ;;  %v3866_v17 = vld [vmem:[%s6397_s8 + $0x40] sm:$0xff] }
 0x637   : > { %3613 = vmatpush.msra.mxu0 %v4341_v33  ;;  %3701 = vmatpush.msra.mxu3 %v4355_v23  ;;  %v3865_v23 = vld [vmem:[%s6397_s8 + $0x38] sm:$0xff] }
 0x638   : > { %4353 = vmatmul.msk.f32.vlgmr.msra.gmra.mxu2 %vm2907_vm12, %v3655_v15  ;;  %3643 = vmatpush.msra.mxu1 %v4345_v44  ;;  %v3864_v44 = vld [vmem:[%s6397_s8 + $0x30] sm:$0xff]  ;;  %v3863_v15 = vld [vmem:[%s6397_s8 + $0x28] sm:$0xff] }
 0x639   : > { %3614 = vmatpush.msra.mxu0 %v4340_v0  ;;  %3702 = vmatpush.msra.mxu3 %v4354_v49 }
 0x63a   : > { %4328 = vmatmul.msk.f32.vlgmr.msrb.gmra.mxu1 %vm2907_vm12, %v6150_v63  ;;  %3786 = vmatpush.msrb.mxu2 %v4372_v13 }
 0x63b   : > { %3615 = vmatpush.msra.mxu0 %v4339_v37  ;;  %4358 = vmatmul.msk.f32.vlgmr.msra.gmra.mxu3 %vm2907_vm12, %v3684_v10 }
 0x63c   : > { %4323 = vmatmul.msk.f32.vlgmr.msrb.gmra.mxu0 %vm2907_vm12, %v3481_v7  ;;  %3644 = vmatpush.msra.mxu1 %v4344_v59 }
 0x63d   : > { %3728 = vmatpush.msrb.mxu0 %v4362_v26  ;;  %3787 = vmatpush.msrb.mxu2 %v4371_v22 }
 0x63e   : > { %3815 = vmatpush.msrb.mxu3 %v4377_v31  ;;  %3757 = vmatpush.msrb.mxu1 %v4367_v38  ;;  %v3861_v31 = vld [vmem:[%s6397_s8 + $0x18] sm:$0xff]  ;;  %v3860_v38 = vld [vmem:[%s6397_s8 + $0x10] sm:$0xff] }
 0x63f   : > { %3729 = vmatpush.msrb.mxu0 %v4361_v8  ;;  %3788 = vmatpush.msrb.mxu2 %v4370_v54 }
 0x640   : > { %3816 = vmatpush.msrb.mxu3 %v4376_v55  ;;  %3758 = vmatpush.msrb.mxu1 %v4366_v1 }
 0x641   : > { %3730 = vmatpush.msrb.mxu0 %v4360_v18  ;;  %3789 = vmatpush.msrb.mxu2 %v4369_v41  ;;  %v3858_v41 = vld [vmem:[%s6397_s8] sm:$0xff] }
 0x642   : > { %4348 = vmatmul.msk.f32.vlgmr.msra.gmra.mxu1 %vm2907_vm12, %v3626_v56  ;;  %3817 = vmatpush.msrb.mxu3 %v4375_v42 }
 0x643   : > { %4373 = vmatmul.msk.f32.vlgmr.msrb.gmra.mxu2 %vm2907_vm12, %v3771_v11  ;;  %3731 = vmatpush.msrb.mxu0 %v4359_v2 }
 0x644   : > { %4343 = vmatmul.msk.f32.vlgmr.msra.gmra.mxu0 %vm2907_vm12, %v3597_v35  ;;  %3759 = vmatpush.msrb.mxu1 %v4365_v25 }
 0x645   : > { %3818 = vmatpush.msrb.mxu3 %v4374_v40  ;;  %3844 = vmatpush.msra.mxu0 %v4382_v21 }
 0x646   : > { %4378 = vmatmul.msk.f32.vlgmr.msrb.gmra.mxu3 %vm2907_vm12, %v3800_v4  ;;  %3760 = vmatpush.msrb.mxu1 %v4364_v9 }
 0x647   : > { %3845 = vmatpush.msra.mxu0 %v4381_v60 }
 0x648   : > { %3876 = vmatpush.msra.mxu1 %v3873_v46  ;;  %v4409_v46 = vld [vmem:[%s6398_s9] sm:$0x3f] }
 0x649   : > { %3846 = vmatpush.msra.mxu0 %v4380_v57 }
 0x64a   : > { %4368 = vmatmul.msk.f32.vlgmr.msrb.gmra.mxu1 %vm2907_vm12, %v3043_v3  ;;  %v3859_v3 = vld [vmem:[%s6397_s8 + $0x8] sm:$0xff] }
 0x64b   : > { %3847 = vmatpush.msra.mxu0 %v4379_v43  ;;  %3877 = vmatpush.msra.mxu1 %v3872_v61 }
 0x64c   : > { %4363 = vmatmul.msk.f32.vlgmr.msrb.gmra.mxu0 %vm2907_vm12, %v3713_v27 }
 0x64d   : > { %3878 = vmatpush.msra.mxu1 %v3871_v14 }
 0x64f   : > { %3879 = vmatpush.msra.mxu1 %v3870_v19 }
 0x651   : > { %3880 = vmatpush.msra.mxu1 %v3869_v6 }
 0x653   : > { %3881 = vmatpush.msra.mxu1 %v3868_v52 }
 0x654   : > { %4383 = vmatmul.msk.f32.vlgmr.msra.gmra.mxu0 %vm2907_vm12, %v3829_v50 }
 0x655   : > { %3882 = vmatpush.msra.mxu1 %v3867_v30 }
 0x657   : > { %3883 = vmatpush.msra.mxu1 %v3866_v17 }
 0x659   : > { %3884 = vmatpush.msra.mxu1 %v3865_v23 }
 0x65b   : > { %3885 = vmatpush.msra.mxu1 %v3864_v44 }
 0x65d   : > { %3886 = vmatpush.msra.mxu1 %v3863_v15 }
 0x65f   : > { %3887 = vmatpush.msra.mxu1 %v3862_v36 }
 0x661   : > { %3888 = vmatpush.msra.mxu1 %v3861_v31 }
 0x663   : > { %3889 = vmatpush.msra.mxu1 %v3860_v38 }
 0x665   : > { %3890 = vmatpush.msra.mxu1 %v3859_v3 }
 0x667   : > { %3891 = vmatpush.msra.mxu1 %v3858_v41 }
 0x68f   : > { %v3096_v34 = vpop.f32.mrf.mxu1 }
 0x691   : > { %v3074_v29 = vpop.f32.mrf.mxu0 }
 0x692   : > { %v3097_v32 = vadd.f32 %v3096_v34, %v3074_v29 }
 0x697   : > { %v3153_v24 = vpop.f32.mrf.mxu1  ;;  %v3240_v28 = vpop.f32.mrf.mxu2 }
 0x699   : > { %v3124_v47 = vpop.f32.mrf.mxu0 }
 0x69a   : > { %v3127_v63 = vadd.f32 %v3124_v47, %v3097_v32 }
 0x69c   : > { %v3156_v39 = vadd.f32 %v3153_v24, %v3127_v63 }
 0x69f   : > { %v3211_v48 = vpop.f32.mrf.mxu1  ;;  %v3327_v5 = vpop.f32.mrf.mxu2 }
 0x6a1   : > { %v3182_v16 = vpop.f32.mrf.mxu0  ;;  %v3356_v20 = vpop.f32.mrf.mxu3 }
 0x6a2   : > { %v3185_v12 = vadd.f32 %v3182_v16, %v3156_v39  ;;  %v3874_v39 = vrot.slane %v4409_v46, 5 }
 0x6a4   : > { %v3214_v51 = vadd.f32 %v3211_v48, %v3185_v12 }
 0x6a6   : > { %v3243_v53 = vadd.f32 %v3240_v28, %v3214_v51  ;;  %v3854_v28 = vrot.slane %v4409_v46, 4 }
 0x6a7   : > { %v3298_v58 = vpop.f32.mrf.mxu1  ;;  %v3443_v13 = vpop.f32.mrf.mxu2 }
 0x6a9   : > { %v3269_v45 = vpop.f32.mrf.mxu0  ;;  %v3472_v59 = vpop.f32.mrf.mxu3 }
 0x6aa   : > { %v3272_v33 = vadd.f32 %v3269_v45, %v3243_v53 }
 0x6ac   : > { %v3301_v62 = vadd.f32 %v3298_v58, %v3272_v33 }
 0x6ae   : > { %v3330_v0 = vadd.f32 %v3327_v5, %v3301_v62 }
 0x6af   : > { %v3414_v49 = vpop.f32.mrf.mxu1  ;;  %v3559_v1 = vpop.f32.mrf.mxu2 }
 0x6b0   : > { %v3359_v37 = vadd.f32 %v3356_v20, %v3330_v0 }
 0x6b1   : > { %v3385_v10 = vpop.f32.mrf.mxu0 }
 0x6b2   : > { %v3388_v7 = vadd.f32 %v3385_v10, %v3359_v37 }
 0x6b3   : > { %v3588_v42 = vpop.f32.mrf.mxu3 }
 0x6b4   : > { %v3417_v26 = vadd.f32 %v3414_v49, %v3388_v7 }
 0x6b6   : > { %v3446_v22 = vadd.f32 %v3443_v13, %v3417_v26 }
 0x6b7   : > { %v3530_v8 = vpop.f32.mrf.mxu1 }
 0x6b8   : > { %v3475_v54 = vadd.f32 %v3472_v59, %v3446_v22 }
 0x6b9   : > { %v3501_v55 = vpop.f32.mrf.mxu0 }
 0x6ba   : > { %v3504_v18 = vadd.f32 %v3501_v55, %v3475_v54 }
 0x6bb   : > { %v3675_v21 = vpop.f32.mrf.mxu2 }
 0x6bc   : > { %v3533_v56 = vadd.f32 %v3530_v8, %v3504_v18 }
 0x6be   : > { %v3562_v2 = vadd.f32 %v3559_v1, %v3533_v56  ;;  %v3704_v4 = vpop.f32.mrf.mxu3 }
 0x6bf   : > { %v3646_v35 = vpop.f32.mrf.mxu1 }
 0x6c0   : > { %v3591_v11 = vadd.f32 %v3588_v42, %v3562_v2 }
 0x6c1   : > { %v3617_v25 = vpop.f32.mrf.mxu0 }
 0x6c2   : > { %v3620_v40 = vadd.f32 %v3617_v25, %v3591_v11 }
 0x6c4   : > { %v3649_v9 = vadd.f32 %v3646_v35, %v3620_v40 }
 0x6c6   : > { %v3678_v60 = vadd.f32 %v3675_v21, %v3649_v9  ;;  %v3791_v29 = vpop.f32.mrf.mxu2 }
 0x6c7   : > { %v3762_v50 = vpop.f32.mrf.mxu1 }
 0x6c8   : > { %v3707_v57 = vadd.f32 %v3704_v4, %v3678_v60 }
 0x6c9   : > { %v3733_v43 = vpop.f32.mrf.mxu0  ;;  %v3820_v47 = vpop.f32.mrf.mxu3 }
 0x6ca   : > { %v3736_v27 = vadd.f32 %v3733_v43, %v3707_v57 }
 0x6cc   : > { %v3765_v34 = vadd.f32 %v3762_v50, %v3736_v27 }
 0x6ce   : > { %v3794_v24 = vadd.f32 %v3791_v29, %v3765_v34 }
 0x6d0   : > { %v3823_v32 = vadd.f32 %v3820_v47, %v3794_v24 }
 0x6d1   : > { %v3849_v63 = vpop.f32.mrf.mxu0 }
 0x6d2   : > { %v3852_v61 = vadd.f32 %v3849_v63, %v3823_v32 }
 0x6d4   : > { %v3856_v14 = vadd.f32 %v3854_v28, %v3852_v61 }
 0x6d6   : > { %v3857_v48 = vmax.f32 %v3856_v14, 0.0 }
 0x6d8   : > { %3892 = vmatmul.f32.vlgmr.msra.gmra.mxu1 %v3857_v48 }
 0x755   : > { %v3893_v19 = vpop.f32.mrf.mxu1 }
 0x756   : > { %v3894_v16 = vadd.f32 %v3893_v19, %v3874_v39 }
 0x758   : > { %v4384_v12 = vmul.f32 -1.442695, %v3894_v16 }
 0x75a   : > { %4404 = vpow2.f32 %v4384_v12 }
 0x760   : > { %v4405_v6 = vpop.eup %4404 }
 0x761   : > { %v3899_v51 = vadd.f32 1.0, %v4405_v6 }
 0x763   : > { %4406 = vrcp.f32 %v3899_v51  ;;  %v3911_v58 = vand.u32 2147483648, %v3899_v51  ;;  %v3909_v53 = vand.u32 2147483647, %v3899_v51  ;;  %vm3905_vm14 = vweird.f32 %v3899_v51 }
 0x765   : > { %v3912_v45 = vor.u32 1.1754944e-38, %v3911_v58  ;;  %vm3910_vm1 = vcmp.eq.f32.partialorder %v3909_v53, 8.507059e+37 }
 0x769   : > { %v4407_v52 = vpop.eup %4406 }
 0x76a   : > { %v3901_v5 = vmul.f32 %v4407_v52, %v3899_v51  ;;  %vm3906_vm13 = vweird.f32 %v4407_v52 }
 0x76b   : > { %vm3907_vm15 = vmor %vm3905_vm14, %vm3906_vm13 }
 0x76c   : > { %v3902_v30 = vsub.f32 1.0, %v3901_v5 }
 0x76e   : > { %v3903_v20 = vmul.f32 %v4407_v52, %v3902_v30 }
 0x770   : > { %v3904_v17 = vadd.f32 %v4407_v52, %v3903_v20 }
 0x772   : > { %v3908_v33 = vsel %vm3907_vm15, %v4407_v52, %v3904_v17 }
 0x773   : > { %v3913_v23 = vsel %vm3910_vm1, %v3912_v45, %v3908_v33 }
 0x774   : > { %3916 = vst.msk [vmem:[%s355_s17] sm:$0x1] %vm3915_vm0, %v3913_v23 }
 0x775 PF: > { %s20_s13 = sadd.s32 1, %s4416_s13  }
 0x776   : > { %p17_p4 = scmp.ge.s32.totalorder %s20_s13, 4  }
 0x778   :  { %19 = sbr.rel (!%p17_p4) target bundleno = 1 (0x1), region = 125 }

</bundles_post_ra>
